<compile_context>
chip_gen: v7x
topology: tpu7x:2x2x1
jax: 0.10.0
libtpu: 0.0.40
codegen_flags: <defaults>
</compile_context>

<pallas_src>
import functools

import jax
import jax.numpy as jnp
from jax import lax
from jax.experimental import pallas as pl
from jax.experimental.pallas import tpu as pltpu


def _lovasz_hinge_kernel(xr_ref, yr_ref, xc_ref, yc_ref, ycf_ref,
                         out_ref, rhs_ref, *, num_pixels, row_tile):
    """One (image b, row-tile t) step of the rank-based Lovasz hinge."""
    P = num_pixels
    TA = row_tile
    t = pl.program_id(1)
    row_off = t * TA

    @pl.when(t == 0)
    def _init():
        # Fresh per-image loss accumulator.
        out_ref[...] = jnp.zeros_like(out_ref)
        # Per-image MXU RHS (P, 128): lane 0 = labels (column), lane 1 = ones.
        y_full = ycf_ref[0]                                       # (P, 1)
        lane = lax.broadcasted_iota(jnp.int32, (P, 128), 1)
        rhs = jnp.where(lane == 0, y_full,
                        jnp.where(lane == 1, 1.0, 0.0))
        rhs_ref[...] = rhs.astype(jnp.bfloat16)                   # exact 0/1

    x_row = xr_ref[0]                  # (1, P)   logits of every pixel
    y_row = yr_ref[0]                  # (1, P)   labels of every pixel
    x_col = xc_ref[0]                  # (TA, 1)  logits of this tile's rows
    y_col = yc_ref[0]                  # (TA, 1)  labels of this tile's rows

    err_row = 1.0 - x_row * (2.0 * y_row - 1.0)     # (1, P)  hinge errors
    err_col = 1.0 - x_col * (2.0 * y_col - 1.0)     # (TA, 1)

    # M[a, b] == 1  <=>  pixel b sorts at a position <= pixel a's position
    # under a stable descending sort of the errors (ties broken by index).
    # Built from broadcasted small iotas: ~3 (TA, P) VALU passes + 1 select.
    col_ids = lax.broadcasted_iota(jnp.int32, (1, P), 1)          # pixel b
    row_ids = lax.broadcasted_iota(jnp.int32, (TA, 1), 0) + row_off  # pixel a
    tie = col_ids <= row_ids                                      # (TA, P)
    gt_cmp = err_row > err_col                                    # (TA, P)
    eq_cmp = err_row == err_col                                   # (TA, P)
    m = jnp.where(eq_cmp, tie.astype(jnp.float32),
                  gt_cmp.astype(jnp.float32))                     # 0/1 mask

    # Inclusive cumulative sums along the sorted order evaluated at each
    # row-pixel's own rank, computed on the MXU (bf16 operands are exact 0/1):
    #   cums[:, 0] = cumsum(gt_sorted)[rank_a],  cums[:, 1] = rank_a + 1
    cums = jnp.dot(m.astype(jnp.bfloat16), rhs_ref[...],
                   preferred_element_type=jnp.float32)            # (TA, 128)
    cum_gt = cums[:, 0:1]                                         # (TA, 1)
    cum_cnt = cums[:, 1:2]                                        # (TA, 1)
    cum_not = cum_cnt - cum_gt

    gts = jnp.sum(y_row)                        # total foreground pixels

    # jaccard[rank_a]
    jac = 1.0 - (gts - cum_gt) / (gts + cum_not)

    # jaccard[rank_a - 1]: drop the row pixel itself from the cumulative sums.
    cum_gt_p = cum_gt - y_col
    cum_not_p = cum_not - (1.0 - y_col)
    has_prev = cum_cnt > 1.0
    union_p = jnp.where(has_prev, gts + cum_not_p, 1.0)
    jac_p = jnp.where(has_prev, 1.0 - (gts - cum_gt_p) / union_p, 0.0)

    grad = jac - jac_p                          # lovasz_grad at each row's rank

    # loss = dot(relu(errors_sorted), grad) == sum_a relu(err_a) * grad[rank_a]
    partial = jnp.sum(jnp.maximum(err_col, 0.0) * grad)
    out_ref[...] = out_ref[...] + partial       # accumulate over row tiles


def _pick_row_tile(p, max_tile=512, vmem_budget_bytes=16 * 1024 * 1024):
    """Largest TA (multiple of 8, divides P) keeping ~6 (TA,P) f32 temps in budget."""
    if p <= max_tile:
        return p
    cap = max(8, min(max_tile, vmem_budget_bytes // (6 * 4 * p)))
    cap -= cap % 8
    for ta in range(cap, 7, -8):
        if p % ta == 0:
            return ta
    return p  # fall back to a single tile (VMEM-heavy only for odd P)


def lovasz_hinge_loss(logits, targets):
    """Forward of LovaszHingeLoss: input/target are [B, 1, H, W] (NCHW)."""
    assert logits.shape == targets.shape and logits.shape[1] == 1
    B = logits.shape[0]
    P = 1
    for d in logits.shape[1:]:
        P *= int(d)

    x = logits.reshape(B, P).astype(jnp.float32)
    y = targets.reshape(B, P).astype(jnp.float32)
    x_row = x.reshape(B, 1, P)
    y_row = y.reshape(B, 1, P)
    x_col = x.reshape(B, P, 1)      # pure reshapes: column views without transposes
    y_col = y.reshape(B, P, 1)

    TA = _pick_row_tile(P)
    T = P // TA

    kernel = functools.partial(_lovasz_hinge_kernel, num_pixels=P, row_tile=TA)

    per_image = pl.pallas_call(
        kernel,
        out_shape=jax.ShapeDtypeStruct((B, 1, 1), jnp.float32),
        grid_spec=pltpu.PrefetchScalarGridSpec(
            num_scalar_prefetch=0,
            grid=(B, T),
            in_specs=[
                pl.BlockSpec((1, 1, P), lambda b, t: (b, 0, 0)),    # logits row
                pl.BlockSpec((1, 1, P), lambda b, t: (b, 0, 0)),    # labels row
                pl.BlockSpec((1, TA, 1), lambda b, t: (b, t, 0)),   # logits col tile
                pl.BlockSpec((1, TA, 1), lambda b, t: (b, t, 0)),   # labels col tile
                pl.BlockSpec((1, P, 1), lambda b, t: (b, 0, 0)),    # labels col full
            ],
            out_specs=pl.BlockSpec((1, 1, 1), lambda b, t: (b, 0, 0)),
            scratch_shapes=[pltpu.VMEM((P, 128), jnp.bfloat16)],    # cached MXU RHS
        ),
        compiler_params=pltpu.CompilerParams(
            dimension_semantics=("parallel", "arbitrary")),
    )(x_row, y_row, x_col, y_col, y_col)

    return jnp.mean(per_image.reshape(B))       # per_image=True mean


def _lovasz_hinge_ref(logits, targets):
    """Pure-JAX reference mirroring the PyTorch lovasz_hinge(per_image=True)."""
    B = logits.shape[0]
    x = logits.reshape(B, -1).astype(jnp.float32)
    y = targets.reshape(B, -1).astype(jnp.float32)

    def per_image(xi, yi):
        signs = 2.0 * yi - 1.0
        errors = 1.0 - xi * signs
        order = jnp.argsort(-errors)          # stable descending sort
        es = errors[order]
        gs = yi[order]
        gts = gs.sum()
        inter = gts - jnp.cumsum(gs)
        union = gts + jnp.cumsum(1.0 - gs)
        jac = 1.0 - inter / union
        grad = jnp.concatenate([jac[:1], jac[1:] - jac[:-1]])
        return jnp.dot(jax.nn.relu(es), grad)

    return jnp.mean(jax.vmap(per_image)(x, y))


if __name__ == "__main__":
    key = jax.random.PRNGKey(0)
    # First shape: single-tile path.  Second shape: exercises row tiling
    # (P=2048 -> TA=256, 8 row tiles) and the per-image RHS/accumulator reuse.
    for (B, C, H, W) in [(2, 1, 16, 16), (2, 1, 32, 64)]:
        key, k1, k2 = jax.random.split(key, 3)
        logits = jax.random.normal(k1, (B, C, H, W), dtype=jnp.float32)
        targets = (jax.random.uniform(k2, (B, C, H, W)) > 0.5).astype(jnp.float32)

        loss = lovasz_hinge_loss(logits, targets)
        jax.block_until_ready(loss)

        ref = _lovasz_hinge_ref(logits, targets)
        assert jnp.allclose(loss, ref, rtol=1e-4, atol=1e-5), (loss, ref, (B, C, H, W))

    print("KERNEL_OK")
</pallas_src>

<mosaic_0001>
module attributes {stable_mosaic.version = 11 : i64} {
  func.func @_lovasz_hinge_kernel(%arg0: i32, %arg1: i32, %arg2: memref<1x1x256xf32, #tpu.memory_space<vmem>>, %arg3: memref<1x1x256xf32, #tpu.memory_space<vmem>>, %arg4: memref<1x256x1xf32, #tpu.memory_space<vmem>>, %arg5: memref<1x256x1xf32, #tpu.memory_space<vmem>>, %arg6: memref<1x256x1xf32, #tpu.memory_space<vmem>>, %arg7: memref<1x1x1xf32, #tpu.memory_space<vmem>>, %arg8: memref<256x128xbf16, #tpu.memory_space<vmem>>) attributes {dimension_semantics = [#tpu.dimension_semantics<parallel>, #tpu.dimension_semantics<arbitrary>], iteration_bounds = array<i64: 2, 1>, scalar_prefetch = 0 : i64, scratch_operands = 1 : i64, tpu.core_type = #tpu.core_type<tc>, window_params = [{transform_indices = @transform_0, window_bounds = array<i64: 1, 1, 256>}, {transform_indices = @transform_1, window_bounds = array<i64: 1, 1, 256>}, {transform_indices = @transform_2, window_bounds = array<i64: 1, 256, 1>}, {transform_indices = @transform_3, window_bounds = array<i64: 1, 256, 1>}, {transform_indices = @transform_4, window_bounds = array<i64: 1, 256, 1>}, {transform_indices = @transform_5, window_bounds = array<i64: 1, 1, 1>}]} {
    %c256_i32 = arith.constant 256 : i32
    %0 = arith.muli %arg1, %c256_i32 : i32
    %c0_i32 = arith.constant 0 : i32
    %1 = arith.cmpi eq, %arg1, %c0_i32 : i32
    %2 = arith.extui %1 : i1 to i32
    %c0_i32_0 = arith.constant 0 : i32
    %3 = arith.cmpi ne, %2, %c0_i32_0 : i32
    scf.if %3 {
      %cst_35 = arith.constant 0.000000e+00 : f32
      %90 = vector.broadcast %cst_35 : f32 to vector<1x1x1xf32>
      %c0_36 = arith.constant 0 : index
      %c0_37 = arith.constant 0 : index
      %c0_38 = arith.constant 0 : index
      %91 = vector.load %arg7[%c0_36, %c0_37, %c0_38] : memref<1x1x1xf32, #tpu.memory_space<vmem>>, vector<1x1x1xf32>
      tpu.vector_store %arg7[%c0_36, %c0_37, %c0_38], %90 {strides = array<i32>} : memref<1x1x1xf32, #tpu.memory_space<vmem>>, vector<1x1x1xf32>,
      %c0_39 = arith.constant 0 : index
      %c0_40 = arith.constant 0 : index
      %c0_41 = arith.constant 0 : index
      %92 = vector.load %arg6[%c0_39, %c0_40, %c0_41] : memref<1x256x1xf32, #tpu.memory_space<vmem>>, vector<1x256x1xf32>
      %93 = vector.shape_cast %92 : vector<1x256x1xf32> to vector<256x1xf32>
      %94 = tpu.iota {dimensions = array<i32: 1>} : vector<256x128xi32>
      %c0_i32_42 = arith.constant 0 : i32
      %95 = vector.broadcast %c0_i32_42 : i32 to vector<256x128xi32>
      %96 = arith.cmpi eq, %94, %95 : vector<256x128xi32>
      %c1_i32 = arith.constant 1 : i32
      %97 = vector.broadcast %c1_i32 : i32 to vector<256x128xi32>
      %98 = arith.cmpi eq, %94, %97 : vector<256x128xi32>
      %cst_43 = arith.constant 1.000000e+00 : f32
      %cst_44 = arith.constant 0.000000e+00 : f32
      %99 = vector.broadcast %cst_43 : f32 to vector<256x128xf32>
      %100 = vector.broadcast %cst_44 : f32 to vector<256x128xf32>
      %101 = arith.select %98, %99, %100 : vector<256x128xi1>, vector<256x128xf32>
      %102 = vector.shape_cast %93 : vector<256x1xf32> to vector<256x1xf32>
      %103 = vector.broadcast %102 : vector<256x1xf32> to vector<256x128xf32>
      %104 = arith.select %96, %103, %101 : vector<256x128xi1>, vector<256x128xf32>
      %105 = arith.truncf %104 : vector<256x128xf32> to vector<256x128xbf16>
      %c0_45 = arith.constant 0 : index
      %c0_46 = arith.constant 0 : index
      %106 = vector.load %arg8[%c0_45, %c0_46] : memref<256x128xbf16, #tpu.memory_space<vmem>>, vector<256x128xbf16>
      tpu.vector_store %arg8[%c0_45, %c0_46], %105 {strides = array<i32>} : memref<256x128xbf16, #tpu.memory_space<vmem>>, vector<256x128xbf16>,
    } else {
    }
    %c0 = arith.constant 0 : index
    %c0_1 = arith.constant 0 : index
    %c0_2 = arith.constant 0 : index
    %4 = vector.load %arg2[%c0, %c0_1, %c0_2] : memref<1x1x256xf32, #tpu.memory_space<vmem>>, vector<1x1x256xf32>
    %5 = vector.shape_cast %4 : vector<1x1x256xf32> to vector<1x256xf32>
    %c0_3 = arith.constant 0 : index
    %c0_4 = arith.constant 0 : index
    %c0_5 = arith.constant 0 : index
    %6 = vector.load %arg3[%c0_3, %c0_4, %c0_5] : memref<1x1x256xf32, #tpu.memory_space<vmem>>, vector<1x1x256xf32>
    %7 = vector.shape_cast %6 : vector<1x1x256xf32> to vector<1x256xf32>
    %c0_6 = arith.constant 0 : index
    %c0_7 = arith.constant 0 : index
    %c0_8 = arith.constant 0 : index
    %8 = vector.load %arg4[%c0_6, %c0_7, %c0_8] : memref<1x256x1xf32, #tpu.memory_space<vmem>>, vector<1x256x1xf32>
    %9 = vector.shape_cast %8 : vector<1x256x1xf32> to vector<256x1xf32>
    %c0_9 = arith.constant 0 : index
    %c0_10 = arith.constant 0 : index
    %c0_11 = arith.constant 0 : index
    %10 = vector.load %arg5[%c0_9, %c0_10, %c0_11] : memref<1x256x1xf32, #tpu.memory_space<vmem>>, vector<1x256x1xf32>
    %11 = vector.shape_cast %10 : vector<1x256x1xf32> to vector<256x1xf32>
    %cst = arith.constant 2.000000e+00 : f32
    %12 = vector.broadcast %cst : f32 to vector<1x256xf32>
    %13 = arith.mulf %12, %7 : vector<1x256xf32>
    %cst_12 = arith.constant 1.000000e+00 : f32
    %14 = vector.broadcast %cst_12 : f32 to vector<1x256xf32>
    %15 = arith.subf %13, %14 : vector<1x256xf32>
    %16 = arith.mulf %5, %15 : vector<1x256xf32>
    %cst_13 = arith.constant 1.000000e+00 : f32
    %17 = vector.broadcast %cst_13 : f32 to vector<1x256xf32>
    %18 = arith.subf %17, %16 : vector<1x256xf32>
    %cst_14 = arith.constant 2.000000e+00 : f32
    %19 = vector.broadcast %cst_14 : f32 to vector<256x1xf32>
    %20 = arith.mulf %19, %11 : vector<256x1xf32>
    %cst_15 = arith.constant 1.000000e+00 : f32
    %21 = vector.broadcast %cst_15 : f32 to vector<256x1xf32>
    %22 = arith.subf %20, %21 : vector<256x1xf32>
    %23 = arith.mulf %9, %22 : vector<256x1xf32>
    %cst_16 = arith.constant 1.000000e+00 : f32
    %24 = vector.broadcast %cst_16 : f32 to vector<256x1xf32>
    %25 = arith.subf %24, %23 : vector<256x1xf32>
    %26 = tpu.iota {dimensions = array<i32: 1>} : vector<1x256xi32>
    %27 = tpu.iota {dimensions = array<i32: 0>} : vector<256x1xi32>
    %28 = vector.broadcast %0 : i32 to vector<256x1xi32>
    %29 = arith.addi %27, %28 : vector<256x1xi32>
    %30 = vector.broadcast %26 : vector<1x256xi32> to vector<256x256xi32>
    %31 = vector.broadcast %29 : vector<256x1xi32> to vector<256x256xi32>
    %32 = arith.cmpi sle, %30, %31 : vector<256x256xi32>
    %33 = vector.broadcast %18 : vector<1x256xf32> to vector<256x256xf32>
    %34 = vector.broadcast %25 : vector<256x1xf32> to vector<256x256xf32>
    %35 = arith.cmpf ogt, %33, %34 : vector<256x256xf32>
    %36 = vector.broadcast %18 : vector<1x256xf32> to vector<256x256xf32>
    %37 = vector.broadcast %25 : vector<256x1xf32> to vector<256x256xf32>
    %38 = arith.cmpf oeq, %36, %37 : vector<256x256xf32>
    %39 = arith.extui %32 : vector<256x256xi1> to vector<256x256xi32>
    %40 = arith.sitofp %39 : vector<256x256xi32> to vector<256x256xf32>
    %41 = arith.extui %35 : vector<256x256xi1> to vector<256x256xi32>
    %42 = arith.sitofp %41 : vector<256x256xi32> to vector<256x256xf32>
    %43 = arith.select %38, %40, %42 : vector<256x256xi1>, vector<256x256xf32>
    %44 = arith.truncf %43 : vector<256x256xf32> to vector<256x256xbf16>
    %c0_17 = arith.constant 0 : index
    %c0_18 = arith.constant 0 : index
    %45 = vector.load %arg8[%c0_17, %c0_18] : memref<256x128xbf16, #tpu.memory_space<vmem>>, vector<256x128xbf16>
    %cst_19 = arith.constant dense<0.000000e+00> : vector<256x128xf32>
    %46 = tpu.matmul %44, %45, %cst_19 {dimension_numbers = #tpu.dot_dimension_numbers<[1], [0], [0], [1], [0, 0, 1, 1], [], []>} : vector<256x256xbf16>, vector<256x128xbf16>, vector<256x128xf32> -> vector<256x128xf32>
    %47 = vector.extract_strided_slice %46 {offsets = [0, 0], sizes = [256, 1], strides = [1, 1]} : vector<256x128xf32> to vector<256x1xf32>
    %48 = vector.extract_strided_slice %46 {offsets = [0, 1], sizes = [256, 1], strides = [1, 1]} : vector<256x128xf32> to vector<256x1xf32>
    %49 = arith.subf %48, %47 : vector<256x1xf32>
    %50 = vector.shape_cast %7 : vector<1x256xf32> to vector<1x1x256xf32>
    %cst_20 = arith.constant dense<0.000000e+00> : vector<1xf32>
    %51 = vector.multi_reduction <add>, %50, %cst_20 [1, 2] : vector<1x1x256xf32> to vector<1xf32>
    %52 = vector.shape_cast %51 : vector<1xf32> to vector<1x1x1xf32>
    %53 = vector.extract %52[0, 0, 0] : f32 from vector<1x1x1xf32>
    %54 = vector.broadcast %53 : f32 to vector<256x1xf32>
    %55 = arith.subf %54, %47 : vector<256x1xf32>
    %56 = vector.broadcast %53 : f32 to vector<256x1xf32>
    %57 = arith.addf %56, %49 : vector<256x1xf32>
    %58 = arith.divf %55, %57 : vector<256x1xf32>
    %cst_21 = arith.constant 1.000000e+00 : f32
    %59 = vector.broadcast %cst_21 : f32 to vector<256x1xf32>
    %60 = arith.subf %59, %58 : vector<256x1xf32>
    %61 = arith.subf %47, %11 : vector<256x1xf32>
    %cst_22 = arith.constant 1.000000e+00 : f32
    %62 = vector.broadcast %cst_22 : f32 to vector<256x1xf32>
    %63 = arith.subf %62, %11 : vector<256x1xf32>
    %64 = arith.subf %49, %63 : vector<256x1xf32>
    %cst_23 = arith.constant 1.000000e+00 : f32
    %65 = vector.broadcast %cst_23 : f32 to vector<256x1xf32>
    %66 = arith.cmpf ogt, %48, %65 : vector<256x1xf32>
    %67 = vector.broadcast %53 : f32 to vector<256x1xf32>
    %68 = arith.addf %67, %64 : vector<256x1xf32>
    %cst_24 = arith.constant 1.000000e+00 : f32
    %69 = vector.broadcast %cst_24 : f32 to vector<256x1xf32>
    %70 = arith.select %66, %68, %69 : vector<256x1xi1>, vector<256x1xf32>
    %71 = vector.broadcast %53 : f32 to vector<256x1xf32>
    %72 = arith.subf %71, %61 : vector<256x1xf32>
    %73 = arith.divf %72, %70 : vector<256x1xf32>
    %cst_25 = arith.constant 1.000000e+00 : f32
    %74 = vector.broadcast %cst_25 : f32 to vector<256x1xf32>
    %75 = arith.subf %74, %73 : vector<256x1xf32>
    %cst_26 = arith.constant 0.000000e+00 : f32
    %76 = vector.broadcast %cst_26 : f32 to vector<256x1xf32>
    %77 = arith.select %66, %75, %76 : vector<256x1xi1>, vector<256x1xf32>
    %78 = arith.subf %60, %77 : vector<256x1xf32>
    %cst_27 = arith.constant 0.000000e+00 : f32
    %79 = vector.broadcast %cst_27 : f32 to vector<256x1xf32>
    %80 = arith.maximumf %25, %79 : vector<256x1xf32>
    %81 = arith.mulf %80, %78 : vector<256x1xf32>
    %82 = vector.shape_cast %81 : vector<256x1xf32> to vector<1x256x1xf32>
    %cst_28 = arith.constant dense<0.000000e+00> : vector<1xf32>
    %83 = vector.multi_reduction <add>, %82, %cst_28 [1, 2] : vector<1x256x1xf32> to vector<1xf32>
    %84 = vector.shape_cast %83 : vector<1xf32> to vector<1x1x1xf32>
    %85 = vector.extract %84[0, 0, 0] : f32 from vector<1x1x1xf32>
    %c0_29 = arith.constant 0 : index
    %c0_30 = arith.constant 0 : index
    %c0_31 = arith.constant 0 : index
    %86 = vector.load %arg7[%c0_29, %c0_30, %c0_31] : memref<1x1x1xf32, #tpu.memory_space<vmem>>, vector<1x1x1xf32>
    %87 = vector.broadcast %85 : f32 to vector<1x1x1xf32>
    %88 = arith.addf %86, %87 : vector<1x1x1xf32>
    %c0_32 = arith.constant 0 : index
    %c0_33 = arith.constant 0 : index
    %c0_34 = arith.constant 0 : index
    %89 = vector.load %arg7[%c0_32, %c0_33, %c0_34] : memref<1x1x1xf32, #tpu.memory_space<vmem>>, vector<1x1x1xf32>
    tpu.vector_store %arg7[%c0_32, %c0_33, %c0_34], %88 {strides = array<i32>} : memref<1x1x1xf32, #tpu.memory_space<vmem>>, vector<1x1x1xf32>,
    return
  }
  func.func @transform_0(%arg0: i32, %arg1: i32) -> (i32, i32, i32) {
    %c0_i32 = arith.constant 0 : i32
    %c0_i32_0 = arith.constant 0 : i32
    %c0_i32_1 = arith.constant 0 : i32
    return %arg0, %c0_i32, %c0_i32_0 : i32, i32, i32
  }
  func.func @transform_1(%arg0: i32, %arg1: i32) -> (i32, i32, i32) {
    %c0_i32 = arith.constant 0 : i32
    %c0_i32_0 = arith.constant 0 : i32
    %c0_i32_1 = arith.constant 0 : i32
    return %arg0, %c0_i32, %c0_i32_0 : i32, i32, i32
  }
  func.func @transform_2(%arg0: i32, %arg1: i32) -> (i32, i32, i32) {
    %c0_i32 = arith.constant 0 : i32
    %c0_i32_0 = arith.constant 0 : i32
    return %arg0, %arg1, %c0_i32 : i32, i32, i32
  }
  func.func @transform_3(%arg0: i32, %arg1: i32) -> (i32, i32, i32) {
    %c0_i32 = arith.constant 0 : i32
    %c0_i32_0 = arith.constant 0 : i32
    return %arg0, %arg1, %c0_i32 : i32, i32, i32
  }
  func.func @transform_4(%arg0: i32, %arg1: i32) -> (i32, i32, i32) {
    %c0_i32 = arith.constant 0 : i32
    %c0_i32_0 = arith.constant 0 : i32
    %c0_i32_1 = arith.constant 0 : i32
    return %arg0, %c0_i32, %c0_i32_0 : i32, i32, i32
  }
  func.func @transform_5(%arg0: i32, %arg1: i32) -> (i32, i32, i32) {
    %c0_i32 = arith.constant 0 : i32
    %c0_i32_0 = arith.constant 0 : i32
    %c0_i32_1 = arith.constant 0 : i32
    return %arg0, %c0_i32, %c0_i32_0 : i32, i32, i32
  }
}

</mosaic_0001>

<bundles_post_ra>
// kernel: tpu_custom_call.1
= control target key start
LH: loop header
LB: loop body
LE: loop exit
PB: predicated region body
PF: predicated region fallthrough
CT: control target
= control target key end

     0   :  { %s4043_s18 = smov 0   ;;  %s4045_s19 = smov 0   ;;  %s6369_s0 = inlined_call_operand.vmem [shape: f32[2,1,256], index: 0, kind: input, shape index: {}]   ;;  %s6370_s1 = inlined_call_operand.vmem [shape: f32[2,1,256], index: 1, kind: input, shape index: {}]   ;;  %s6371_s2 = inlined_call_operand.vmem [shape: f32[2,256,1], index: 2, kind: input, shape index: {}]   ;;  %s6372_s3 = inlined_call_operand.vmem [shape: f32[2,256,1], index: 3, kind: input, shape index: {}]   ;;  %s6373_s4 = inlined_call_operand.vmem [shape: f32[2,256,1], index: 4, kind: input, shape index: {}]   ;;  %s6374_s5 = inlined_call_operand.vmem [shape: f32[2,1,1], index: 5, kind: output, shape index: {}]  }
   0x1   :  { %s4047_s20 = smov 0  }
   0x2 LB: > { %s27_s21 = sadd.s32 1, %s4003_s19  ;;  %p3397_p0 = scmp.ge.s32.totalorder %s4007_s20, 1  ;;  %s4007_s20 = sphi %s4047_s20, %s15_s20   ;;  %s4003_s19 = sphi %s4045_s19, %s6729_s19   ;;  %s3999_s18 = sphi %s4043_s18, %s6728_s18  }
   0x3   : > { %p29_p1 = scmp.ge.s32.totalorder %s27_s21, 2  ;;  %p251_p2 = scmp.lt.s32.totalorder %s4007_s20, 3 }
   0x5   : > { %s6731_s21 = smov (%p29_p1, %s27_s21), 0  ;;  %p252_p3 = pnand %p3397_p0, %p251_p2 }
   0x7   : > { %255 = sbr.rel (%p252_p3) target bundleno = 1253 (0x4e5), region = 40 }
   0xe   : > { %p303_p4 = scmp.lt.s32.totalorder %s3999_s18, 1  ;;  %v4009_v0 = vmov 0   ;;  %vm1938_vm1 = vcmask 1040384   ;;  %s4011_s14 = smov 1  }
   0xf   : > { %3751 = vset.pattern.permute.xlu1 %v4009_v0  ;;  %3740 = vset.pattern.permute.xlu0 %v4009_v0  ;;  %s4012_s16 = smov 127  }
  0x10   : > { %s6733_s18 = smov (!%p303_p4, %s3999_s18), 1 }
  0x11   : > { %s4064_s22 = sshll.u32 %s6733_s18, 8  ;;  %s3398_s7 = sshll.u32 %s6733_s18, 1 }
  0x12   : > { %s4070_s25 = scalar_lea.vmem %s6373_s4, %s4064_s22  ;;  %s4094_s28 = scalar_lea.vmem %s6372_s3, %s4064_s22 }
  0x13   : > { %v365_v1 = vld [vmem:[%s4070_s25 + $0x90] sm:$0xff]  ;;  %v366_v2 = vld [vmem:[%s4070_s25 + $0x98] sm:$0xff]  ;;  %v363_v4 = vld [vmem:[%s4070_s25 + $0x80] sm:$0xff]  ;;  %s4119_s6 = scalar_lea.vmem %s6371_s2, %s4064_s22  ;;  %s310_s10 = scalar_lea.vmem %s6370_s1, %s3398_s7 }
  0x14   : > { %v3752_v3 = vpack.i.bf16 %v366_v2, %v365_v1  ;;  %v364_v5 = vld [vmem:[%s4070_s25 + $0x88] sm:$0xff]  ;;  %v349_v7 = vld [vmem:[%s4070_s25 + $0x10] sm:$0xff]  ;;  %v350_v8 = vld [vmem:[%s4070_s25 + $0x18] sm:$0xff]  ;;  %s306_s13 = scalar_lea.vmem %s6369_s0, %s3398_s7  ;;  %s338_s23 = scalar_lea.vmem %s6374_s5, %s6733_s18 }
  0x15   : > { %v3741_v6 = vpack.i.bf16 %v364_v5, %v363_v4  ;;  %v347_v9 = vld [vmem:[%s4070_s25] sm:$0xff]  ;;  %v3757_v10 = vpack.i.bf16 %v350_v8, %v349_v7  ;;  %v348_v11 = vld [vmem:[%s4070_s25 + $0x8] sm:$0xff]  ;;  %v353_v19 = vld [vmem:[%s4070_s25 + $0x30] sm:$0xff] }
  0x16   : > { %3753 = vperm.xlu1 %3751, %v3752_v3   ;;  %v3746_v12 = vpack.i.bf16 %v348_v11, %v347_v9  ;;  %v351_v13 = vld [vmem:[%s4070_s25 + $0x20] sm:$0xff]  ;;  %v352_v14 = vld [vmem:[%s4070_s25 + $0x28] sm:$0xff]  ;;  %v354_v20 = vld [vmem:[%s4070_s25 + $0x38] sm:$0xff] }
  0x17   : > { %3742 = vperm.xlu0 %3740, %v3741_v6   ;;  %v367_v15 = vld [vmem:[%s4070_s25 + $0xa0] sm:$0xff]  ;;  %v368_v16 = vld [vmem:[%s4070_s25 + $0xa8] sm:$0xff]  ;;  %v3767_v17 = vpack.i.bf16 %v352_v14, %v351_v13  ;;  %v369_v21 = vld [vmem:[%s4070_s25 + $0xb0] sm:$0xff]  ;;  %v3777_v23 = vpack.i.bf16 %v354_v20, %v353_v19 }
  0x18   : > { %v3762_v18 = vpack.i.bf16 %v368_v16, %v367_v15  ;;  %v370_v22 = vld [vmem:[%s4070_s25 + $0xb8] sm:$0xff]  ;;  %v355_v25 = vld [vmem:[%s4070_s25 + $0x40] sm:$0xff]  ;;  %v356_v26 = vld [vmem:[%s4070_s25 + $0x48] sm:$0xff] }
  0x19   : > { %v3772_v24 = vpack.i.bf16 %v370_v22, %v369_v21  ;;  %v371_v27 = vld [vmem:[%s4070_s25 + $0xc0] sm:$0xff]  ;;  %v372_v28 = vld [vmem:[%s4070_s25 + $0xc8] sm:$0xff]  ;;  %v3787_v29 = vpack.i.bf16 %v356_v26, %v355_v25  ;;  %v357_v31 = vld [vmem:[%s4070_s25 + $0x50] sm:$0xff] }
  0x1a   : > { %3758 = vperm.xlu1 %3751, %v3757_v10   ;;  %v3782_v30 = vpack.i.bf16 %v372_v28, %v371_v27  ;;  %v358_v32 = vld [vmem:[%s4070_s25 + $0x58] sm:$0xff]  ;;  %v4101_v33 = vld [vmem:[%s4094_s28 + $0x8] sm:$0xff]  ;;  %v373_v34 = vld [vmem:[%s4070_s25 + $0xd0] sm:$0xff] }
  0x1b   : > { %3747 = vperm.xlu0 %3740, %v3746_v12   ;;  %v374_v35 = vld [vmem:[%s4070_s25 + $0xd8] sm:$0xff]  ;;  %v4106_v36 = vld [vmem:[%s4094_s28] sm:$0xff]  ;;  %v3797_v37 = vpack.i.bf16 %v358_v32, %v357_v31  ;;  %v679_v38 = vmul.f32 2.0, %v4101_v33  ;;  %v360_v41 = vld [vmem:[%s4070_s25 + $0x68] sm:$0xff] }
  0x1c   : > { %v3792_v39 = vpack.i.bf16 %v374_v35, %v373_v34  ;;  %v359_v40 = vld [vmem:[%s4070_s25 + $0x60] sm:$0xff]  ;;  %v678_v42 = vmul.f32 2.0, %v4106_v36  ;;  %v645_v43 = vld [vmem:[%s4094_s28 + $0x18] sm:$0xff]  ;;  %v376_v45 = vld [vmem:[%s4070_s25 + $0xe8] sm:$0xff] }
  0x1d   : > { %v375_v44 = vld [vmem:[%s4070_s25 + $0xe0] sm:$0xff]  ;;  %v4122_v46 = vld [vmem:[%s4094_s28 + $0x10] sm:$0xff]  ;;  %v3807_v47 = vpack.i.bf16 %v360_v41, %v359_v40  ;;  %v362_v49 = vld [vmem:[%s4070_s25 + $0x78] sm:$0xff]  ;;  %v3408_v50 = vadd.f32 -1.0, %v679_v38  ;;  %v681_v51 = vmul.f32 2.0, %v645_v43 }
  0x1e   : > { %3768 = vperm.xlu1 %3751, %v3767_v17   ;;  %v361_v48 = vld [vmem:[%s4070_s25 + $0x70] sm:$0xff]  ;;  %v3802_v52 = vpack.i.bf16 %v376_v45, %v375_v44  ;;  %v611_v54 = vld [vmem:[%s4119_s6 + $0x8] sm:$0xff]  ;;  %v3407_v55 = vadd.f32 -1.0, %v678_v42  ;;  %v680_v56 = vmul.f32 2.0, %v4122_v46  ;;  %v378_v58 = vld [vmem:[%s4070_s25 + $0xf8] sm:$0xff] }
  0x1f   : > { %3763 = vperm.xlu0 %3740, %v3762_v18   ;;  %v377_v53 = vld [vmem:[%s4070_s25 + $0xf0] sm:$0xff]  ;;  %v4130_v57 = vld [vmem:[%s4094_s28 + $0x28] sm:$0xff]  ;;  %v610_v59 = vld [vmem:[%s4119_s6] sm:$0xff]  ;;  %v3817_v61 = vpack.i.bf16 %v362_v49, %v361_v48  ;;  %v4137_v62 = vmul.f32 %v3408_v50, %v611_v54  ;;  %v3410_v63 = vadd.f32 -1.0, %v681_v51 }
  0x20   : > { %v4135_v60 = vld [vmem:[%s4094_s28 + $0x20] sm:$0xff]  ;;  %v683_v0 = vmul.f32 2.0, %v4130_v57  ;;  %v3812_v1 = vpack.i.bf16 %v378_v58, %v377_v53  ;;  %v4140_v2 = vmul.f32 %v3407_v55, %v610_v59  ;;  %v613_v3 = vld [vmem:[%s4119_s6 + $0x18] sm:$0xff]  ;;  %v3409_v4 = vadd.f32 -1.0, %v680_v56  ;;  %v612_v7 = vld [vmem:[%s4119_s6 + $0x10] sm:$0xff] }
  0x21   : > { %6482 = vst [vmem:[#allocation3_spill] sm:$0xff] %v4137_v62  ;;  %v682_v5 = vmul.f32 2.0, %v4135_v60  ;;  %v4145_v6 = vld [vmem:[%s4094_s28 + $0x38] sm:$0xff]  ;;  %v4149_v8 = vld [vmem:[%s4094_s28 + $0x30] sm:$0xff]  ;;  %v6392_v9 = vsub.f32 1.0, %v4137_v62  ;;  %v4152_v10 = vmul.f32 %v3410_v63, %v613_v3  ;;  %v615_v15 = vld [vmem:[%s4119_s6 + $0x28] sm:$0xff] }
  0x22   : > { %3778 = vperm.xlu1 %3751, %v3777_v23   ;;  %6483 = vst [vmem:[#allocation4_spill] sm:$0xff] %v4140_v2  ;;  %v3412_v11 = vadd.f32 -1.0, %v683_v0  ;;  %v685_v12 = vmul.f32 2.0, %v4145_v6  ;;  %v6391_v13 = vsub.f32 1.0, %v4140_v2  ;;  %v4156_v14 = vmul.f32 %v3409_v4, %v612_v7  ;;  %v4161_v18 = vld [vmem:[%s4094_s28 + $0x88] sm:$0xff]  ;;  %v614_v19 = vld [vmem:[%s4119_s6 + $0x20] sm:$0xff] }
  0x23   : > { %3773 = vperm.xlu0 %3740, %v3772_v24   ;;  %6484 = vst [vmem:[#allocation5_spill] sm:$0xff] %v4152_v10  ;;  %v3411_v16 = vadd.f32 -1.0, %v682_v5  ;;  %v684_v17 = vmul.f32 2.0, %v4149_v8  ;;  %v4165_v20 = vld [vmem:[%s4094_s28 + $0x80] sm:$0xff]  ;;  %v6387_v21 = vsub.f32 1.0, %v4152_v10  ;;  %v695_v24 = vmul.f32 2.0, %v4161_v18 }
  0x24   : > { %6485 = vst [vmem:[#allocation6_spill] sm:$0xff] %v4156_v14  ;;  %v4170_v22 = vmul.f32 %v3412_v11, %v615_v15  ;;  %v3414_v23 = vadd.f32 -1.0, %v685_v12  ;;  %v6389_v25 = vsub.f32 1.0, %v4156_v14  ;;  %v617_v27 = vld [vmem:[%s4119_s6 + $0x38] sm:$0xff]  ;;  %v616_v31 = vld [vmem:[%s4119_s6 + $0x30] sm:$0xff]  ;;  %v4185_v32 = vld [vmem:[%s4094_s28 + $0x40] sm:$0xff] }
  0x25   : > { %v4176_v26 = vmul.f32 %v3411_v16, %v614_v19  ;;  %v3413_v28 = vadd.f32 -1.0, %v684_v17  ;;  %v627_v41 = vld [vmem:[%s4119_s6 + $0x88] sm:$0xff]  ;;  %v686_v43 = vmul.f32 2.0, %v4185_v32  ;;  %v4201_v44 = vld [vmem:[%s4094_s28 + $0x98] sm:$0xff]  ;;  %v626_v45 = vld [vmem:[%s4119_s6 + $0x80] sm:$0xff] }
  0x26   : > { %3788 = vperm.xlu1 %3751, %v3787_v29   ;;  %6486 = vst [vmem:[#allocation7_spill] sm:$0xff] %v4170_v22  ;;  %v694_v29 = vmul.f32 2.0, %v4165_v20  ;;  %v6385_v34 = vsub.f32 1.0, %v4170_v22  ;;  %v4190_v35 = vmul.f32 %v3414_v23, %v617_v27  ;;  %v697_v51 = vmul.f32 2.0, %v4201_v44  ;;  %v619_v54 = vld [vmem:[%s4119_s6 + $0x48] sm:$0xff]  ;;  %v4221_v58 = vld [vmem:[%s4094_s28 + $0x58] sm:$0xff] }
  0x27   : > { %3783 = vperm.xlu0 %3740, %v3782_v30   ;;  %6487 = vst [vmem:[#allocation8_spill] sm:$0xff] %v4176_v26  ;;  %v4181_v30 = vld [vmem:[%s4094_s28 + $0x48] sm:$0xff]  ;;  %v4196_v40 = vmul.f32 %v3413_v28, %v616_v31  ;;  %v3415_v55 = vadd.f32 -1.0, %v686_v43  ;;  %v618_v59 = vld [vmem:[%s4119_s6 + $0x40] sm:$0xff]  ;;  %v689_v3 = vmul.f32 2.0, %v4221_v58  ;;  %v629_v7 = vld [vmem:[%s4119_s6 + $0x98] sm:$0xff] }
  0x28   : > { %6488 = vst [vmem:[#allocation9_spill] sm:$0xff] %v4190_v35  ;;  %v687_v38 = vmul.f32 2.0, %v4181_v30  ;;  %v3423_v42 = vadd.f32 -1.0, %v694_v29  ;;  %v6381_v48 = vsub.f32 1.0, %v4190_v35  ;;  %v4241_v15 = vld [vmem:[%s4094_s28 + $0xa8] sm:$0xff]  ;;  %v628_v16 = vld [vmem:[%s4119_s6 + $0x90] sm:$0xff] }
  0x29   : > { %6489 = vst [vmem:[#allocation10_spill] sm:$0xff] %v4196_v40  ;;  %v4236_v5 = vmul.f32 %v3415_v55, %v618_v59  ;;  %v4245_v17 = vld [vmem:[%s4094_s28 + $0xa0] sm:$0xff]  ;;  %v699_v27 = vmul.f32 2.0, %v4241_v15  ;;  %v621_v31 = vld [vmem:[%s4119_s6 + $0x58] sm:$0xff]  ;;  %v631_v59 = vld [vmem:[%s4119_s6 + $0xa8] sm:$0xff]  ;;  %v2276_v35 = vsub.f32 1.0, %v4135_v60 }
  0x2a   : > { %3798 = vperm.xlu1 %3751, %v3797_v37   ;;  %v3424_v37 = vadd.f32 -1.0, %v695_v24  ;;  %v3416_v50 = vadd.f32 -1.0, %v687_v38  ;;  %v4216_v53 = vmul.f32 %v3423_v42, %v626_v45  ;;  %v3418_v24 = vadd.f32 -1.0, %v689_v3  ;;  %v620_v42 = vld [vmem:[%s4119_s6 + $0x50] sm:$0xff]  ;;  %v4265_v43 = vld [vmem:[%s4094_s28 + $0x60] sm:$0xff] }
  0x2b   : > { %3793 = vperm.xlu0 %3740, %v3792_v39   ;;  %v6386_v39 = vsub.f32 1.0, %v4176_v26  ;;  %6493 = vst [vmem:[#allocation14_spill] sm:$0xff] %v4236_v5  ;;  %v6380_v28 = vsub.f32 1.0, %v4236_v5  ;;  %v698_v38 = vmul.f32 2.0, %v4245_v17  ;;  %v690_v3 = vmul.f32 2.0, %v4265_v43 }
  0x2c   : > { %v4210_v49 = vmul.f32 %v3424_v37, %v627_v41  ;;  %6491 = vst [vmem:[#allocation12_spill] sm:$0xff] %v4216_v53  ;;  %v4230_v0 = vmul.f32 %v3416_v50, %v619_v54  ;;  %v6377_v4 = vsub.f32 1.0, %v4216_v53  ;;  %v4261_v41 = vld [vmem:[%s4094_s28 + $0x68] sm:$0xff]  ;;  %v4270_v50 = vmul.f32 %v3418_v24, %v621_v31  ;;  %v636_v53 = vld [vmem:[%s4119_s6 + $0xd0] sm:$0xff] }
  0x2d   : > { %v691_v54 = vmul.f32 2.0, %v4261_v41 }
  0x2e   : > { %3808 = vperm.xlu1 %3751, %v3807_v47   ;;  %v4205_v47 = vld [vmem:[%s4094_s28 + $0x90] sm:$0xff]  ;;  %6490 = vst [vmem:[#allocation11_spill] sm:$0xff] %v4210_v49  ;;  %v6375_v63 = vsub.f32 1.0, %v4210_v49  ;;  %6492 = vst [vmem:[#allocation13_spill] sm:$0xff] %v4230_v0  ;;  %v6379_v19 = vsub.f32 1.0, %v4230_v0 }
  0x2f   : > { %3803 = vperm.xlu0 %3740, %v3802_v52   ;;  %v6383_v52 = vsub.f32 1.0, %v4196_v40  ;;  %v696_v56 = vmul.f32 2.0, %v4205_v47  ;;  %6496 = vst [vmem:[#allocation17_spill] sm:$0xff] %v4270_v50 }
  0x31   : > { %v3425_v11 = vadd.f32 -1.0, %v696_v56 }
  0x32   : > { %3818 = vperm.xlu1 %3751, %v3817_v61   ;;  %v4225_v61 = vld [vmem:[%s4094_s28 + $0x50] sm:$0xff] }
  0x33   : > { %3813 = vperm.xlu0 %3740, %v3812_v1   ;;  %v3426_v1 = vadd.f32 -1.0, %v697_v51  ;;  %v688_v12 = vmul.f32 2.0, %v4225_v61  ;;  %v4256_v29 = vmul.f32 %v3425_v11, %v628_v16  ;;  %v3428_v51 = vadd.f32 -1.0, %v699_v27  ;;  %v630_v11 = vld [vmem:[%s4119_s6 + $0xa0] sm:$0xff] }
  0x34   : > { %v6382_v16 = vsub.f32 1.0, %v4270_v50  ;;  %v3420_v27 = vadd.f32 -1.0, %v691_v54  ;;  %v4305_v54 = vld [vmem:[%s4094_s28 + $0x70] sm:$0xff] }
  0x35   : > { %v4250_v23 = vmul.f32 %v3426_v1, %v629_v7  ;;  %6495 = vst [vmem:[#allocation16_spill] sm:$0xff] %v4256_v29  ;;  %v3417_v37 = vadd.f32 -1.0, %v688_v12  ;;  %v6378_v55 = vsub.f32 1.0, %v4256_v29  ;;  %v3427_v1 = vadd.f32 -1.0, %v698_v38  ;;  %v4281_v7 = vld [vmem:[%s4094_s28 + $0xb8] sm:$0xff]  ;;  %v4285_v12 = vld [vmem:[%s4094_s28 + $0xb0] sm:$0xff] }
  0x36   : > { %957 = vperm.xlu1 %3751, %v6392_v9   ;;  %v4290_v24 = vmul.f32 %v3428_v51, %v631_v59  ;;  %v701_v31 = vmul.f32 2.0, %v4281_v7  ;;  %v622_v51 = vld [vmem:[%s4119_s6 + $0x60] sm:$0xff]  ;;  %v635_v9 = vld [vmem:[%s4119_s6 + $0xc8] sm:$0xff]  ;;  %v637_v29 = vld [vmem:[%s4119_s6 + $0xd8] sm:$0xff] }
  0x37   : > { %952 = vperm.xlu0 %3740, %v6391_v13   ;;  %6494 = vst [vmem:[#allocation15_spill] sm:$0xff] %v4250_v23  ;;  %v6376_v45 = vsub.f32 1.0, %v4250_v23  ;;  %v4276_v56 = vmul.f32 %v3417_v37, %v620_v42  ;;  %v4296_v38 = vmul.f32 %v3427_v1, %v630_v11  ;;  %v623_v42 = vld [vmem:[%s4119_s6 + $0x68] sm:$0xff] }
  0x38   : > { %6498 = vst [vmem:[#allocation19_spill] sm:$0xff] %v4290_v24  ;;  %v6388_v59 = vsub.f32 1.0, %v4290_v24  ;;  %v3430_v1 = vadd.f32 -1.0, %v701_v31  ;;  %v4325_v31 = vld [vmem:[%s4094_s28 + $0xc0] sm:$0xff] }
  0x39   : > { %6497 = vst [vmem:[#allocation18_spill] sm:$0xff] %v4276_v56  ;;  %v6384_v37 = vsub.f32 1.0, %v4276_v56  ;;  %6499 = vst [vmem:[#allocation20_spill] sm:$0xff] %v4296_v38  ;;  %v6390_v11 = vsub.f32 1.0, %v4296_v38 }
  0x3a   : > { %967 = vperm.xlu1 %3751, %v6387_v21  }
  0x3b   : > { %962 = vperm.xlu0 %3740, %v6389_v25   ;;  %v4341_v25 = vld [vmem:[%s4094_s28 + $0xd8] sm:$0xff] }
  0x3e   : > { %977 = vperm.xlu1 %3751, %v6385_v34  }
  0x3f   : > { %972 = vperm.xlu0 %3740, %v6386_v39   ;;  %v625_v39 = vld [vmem:[%s4119_s6 + $0x78] sm:$0xff] }
  0x42   : > { %987 = vperm.xlu1 %3751, %v6381_v48  }
  0x43   : > { %982 = vperm.xlu0 %3740, %v6383_v52   ;;  %v4321_v52 = vld [vmem:[%s4094_s28 + $0xc8] sm:$0xff] }
  0x46   : > { %1037 = vperm.xlu1 %3751, %v6375_v63   ;;  %v3419_v63 = vadd.f32 -1.0, %v690_v3 }
  0x47   : > { %1032 = vperm.xlu0 %3740, %v6377_v4   ;;  %v4301_v4 = vld [vmem:[%s4094_s28 + $0x78] sm:$0xff] }
  0x48   : > { %v693_v3 = vmul.f32 2.0, %v4301_v4 }
  0x4a   : > { %997 = vperm.xlu1 %3751, %v6379_v19   ;;  %v4316_v19 = vmul.f32 %v3419_v63, %v622_v51  ;;  %v3422_v63 = vadd.f32 -1.0, %v693_v3  ;;  %v671_v3 = vld [vmem:[%s4094_s28 + $0xe8] sm:$0xff] }
  0x4b   : > { %992 = vperm.xlu0 %3740, %v6380_v28   ;;  %v633_v28 = vld [vmem:[%s4119_s6 + $0xb8] sm:$0xff] }
  0x4c   : > { %6501 = vst [vmem:[#allocation22_spill] sm:$0xff] %v4316_v19  ;;  %v6395_v51 = vsub.f32 1.0, %v4316_v19 }
  0x4e   : > { %1047 = vperm.xlu1 %3751, %v6376_v45   ;;  %v700_v45 = vmul.f32 2.0, %v4285_v12 }
  0x4f   : > { %1042 = vperm.xlu0 %3740, %v6378_v55   ;;  %v4310_v55 = vmul.f32 %v3420_v27, %v623_v42  ;;  %v632_v27 = vld [vmem:[%s4119_s6 + $0xb0] sm:$0xff] }
  0x50   : > { %v3429_v48 = vadd.f32 -1.0, %v700_v45  ;;  %v703_v45 = vmul.f32 2.0, %v4321_v52 }
  0x51   : > { %6500 = vst [vmem:[#allocation21_spill] sm:$0xff] %v4310_v55  ;;  %v6394_v42 = vsub.f32 1.0, %v4310_v55 }
  0x52   : > { %1007 = vperm.xlu1 %3751, %v6382_v16   ;;  %v692_v16 = vmul.f32 2.0, %v4305_v54  ;;  %v4336_v34 = vmul.f32 %v3429_v48, %v632_v27  ;;  %v3432_v48 = vadd.f32 -1.0, %v703_v45 }
  0x53   : > { %1002 = vperm.xlu0 %3740, %v6384_v37   ;;  %v4330_v37 = vmul.f32 %v3430_v1, %v633_v28  ;;  %v624_v28 = vld [vmem:[%s4119_s6 + $0x70] sm:$0xff] }
  0x54   : > { %6503 = vst [vmem:[#allocation24_spill] sm:$0xff] %v4336_v34  ;;  %v3421_v21 = vadd.f32 -1.0, %v692_v16  ;;  %v4345_v1 = vld [vmem:[%s4094_s28 + $0xd0] sm:$0xff]  ;;  %v705_v16 = vmul.f32 2.0, %v4341_v25  ;;  %v4368_v27 = vmul.f32 %v3432_v48, %v635_v9 }
  0x55   : > { %6502 = vst [vmem:[#allocation23_spill] sm:$0xff] %v4330_v37  ;;  %v6506_v45 = vsub.f32 1.0, %v4330_v37 }
  0x56   : > { %1057 = vperm.xlu1 %3751, %v6388_v59   ;;  %v702_v59 = vmul.f32 2.0, %v4325_v31  ;;  %v4356_v13 = vmul.f32 %v3421_v21, %v624_v28  ;;  %6507 = vst [vmem:[#allocation27_spill] sm:$0xff] %v4368_v27  ;;  %v3434_v21 = vadd.f32 -1.0, %v705_v16  ;;  %v707_v28 = vmul.f32 2.0, %v671_v3 }
  0x57   : > { %1052 = vperm.xlu0 %3740, %v6390_v11   ;;  %v4350_v11 = vmul.f32 %v3422_v63, %v625_v39  ;;  %v634_v39 = vld [vmem:[%s4119_s6 + $0xc0] sm:$0xff]  ;;  %v6405_v3 = vsub.f32 1.0, %v4368_v27 }
  0x58   : > { %6505 = vst [vmem:[#allocation26_spill] sm:$0xff] %v4356_v13  ;;  %v3431_v24 = vadd.f32 -1.0, %v702_v59  ;;  %v4363_v63 = vld [vmem:[%s4094_s28 + $0xe0] sm:$0xff]  ;;  %v6508_v59 = vsub.f32 1.0, %v4336_v34  ;;  %v6413_v38 = vsub.f32 1.0, %v4356_v13  ;;  %v4383_v48 = vmul.f32 %v3434_v21, %v637_v29 }
  0x59   : > { %6504 = vst [vmem:[#allocation25_spill] sm:$0xff] %v4350_v11  ;;  %v706_v37 = vmul.f32 2.0, %v4363_v63  ;;  %v6510_v9 = vsub.f32 1.0, %v4350_v11  ;;  %v3436_v16 = vadd.f32 -1.0, %v707_v28  ;;  %v638_v11 = vld [vmem:[%s4119_s6 + $0xe0] sm:$0xff] }
  0x5a   : > { %1017 = vperm.xlu1 %3751, %v6394_v42   ;;  %v704_v42 = vmul.f32 2.0, %v4345_v1  ;;  %v4373_v23 = vmul.f32 %v3431_v24, %v634_v39  ;;  %6511 = vst [vmem:[#allocation29_spill] sm:$0xff] %v4383_v48  ;;  %v639_v39 = vld [vmem:[%s4119_s6 + $0xe8] sm:$0xff]  ;;  %v6411_v29 = vsub.f32 1.0, %v4383_v48 }
  0x5b   : > { %1012 = vperm.xlu0 %3740, %v6395_v51   ;;  %v672_v51 = vld [vmem:[%s4094_s28 + $0xf0] sm:$0xff]  ;;  %v3435_v34 = vadd.f32 -1.0, %v706_v37  ;;  %v4395_v21 = vmul.f32 %v3436_v16, %v639_v39 }
  0x5c   : > { %6509 = vst [vmem:[#allocation28_spill] sm:$0xff] %v4373_v23  ;;  %v3433_v49 = vadd.f32 -1.0, %v704_v42  ;;  %v6412_v24 = vsub.f32 1.0, %v4373_v23  ;;  %v708_v55 = vmul.f32 2.0, %v672_v51  ;;  %v640_v51 = vld [vmem:[%s4119_s6 + $0xf0] sm:$0xff] }
  0x5d   : > { %6513 = vst [vmem:[#allocation31_spill] sm:$0xff] %v4395_v21 }
  0x5e   : > { %1067 = vperm.xlu1 %3751, %v6506_v45   ;;  %v673_v45 = vld [vmem:[%s4094_s28 + $0xf8] sm:$0xff]  ;;  %v4388_v42 = vmul.f32 %v3433_v49, %v636_v53  ;;  %v4400_v49 = vmul.f32 %v3435_v34, %v638_v11  ;;  %v3437_v37 = vadd.f32 -1.0, %v708_v55  ;;  %v609_v11 = vld [vmem:[%s310_s10] sm:$0x3] }
  0x5f   : > { %1062 = vperm.xlu0 %3740, %v6508_v59   ;;  %v709_v59 = vmul.f32 2.0, %v673_v45  ;;  %v641_v53 = vld [vmem:[%s4119_s6 + $0xf8] sm:$0xff]  ;;  %v674_v39 = vmul.f32 2.0, %v609_v11 }
  0x60   : > { %6512 = vst [vmem:[#allocation30_spill] sm:$0xff] %v4388_v42  ;;  %v6409_v45 = vsub.f32 1.0, %v4388_v42  ;;  %6514 = vst [vmem:[#allocation32_spill] sm:$0xff] %v4400_v49  ;;  %v6406_v16 = vsub.f32 1.0, %v4400_v49 }
  0x61   : > { %v3438_v28 = vadd.f32 -1.0, %v709_v59  ;;  %v4412_v59 = vmul.f32 %v3437_v37, %v640_v51  ;;  %v608_v37 = vld [vmem:[%s306_s13] sm:$0x3] }
  0x62   : > { %1027 = vperm.xlu1 %3751, %v6510_v9   ;;  %v6407_v9 = vsub.f32 1.0, %v4395_v21 }
  0x63   : > { %1022 = vperm.xlu0 %3740, %v6413_v38   ;;  %6516 = vst [vmem:[#allocation34_spill] sm:$0xff] %v4412_v59  ;;  %v6410_v55 = vsub.f32 1.0, %v4412_v59 }
  0x66   : > { %1077 = vperm.xlu1 %3751, %v6405_v3   ;;  %v4407_v3 = vmul.f32 %v3438_v28, %v641_v53  ;;  %v379_v28 = vlaneseq  ;;  %v3406_v53 = vadd.f32 -1.0, %v674_v39 }
  0x67   : > { %1072 = vperm.xlu0 %3740, %v6412_v24  }
  0x68   : > { %6515 = vst [vmem:[#allocation33_spill] sm:$0xff] %v4407_v3  ;;  %v6408_v34 = vsub.f32 1.0, %v4407_v3  ;;  %v4431_v51 = vand.u32 127, %v379_v28 }
  0x6a   : > { %1087 = vperm.xlu1 %3751, %v6411_v29   ;;  %vm382_vm0 = vcmp.eq.s32.totalorder %v4431_v51, 1  ;;  %v6417_v29 = vmov 0.0   ;;  %v4447_v49 = vadd.s32 128, %v4431_v51  ;;  %vm381_vm13 = vcmp.eq.s32.totalorder %v4431_v51, 0 }
  0x6b   : > { %1082 = vperm.xlu0 %3740, %v6409_v45   ;;  %v4439_v24 = vsel %vm382_vm0, 1.0, %v6417_v29 }
  0x6e   : > { %1097 = vperm.xlu1 %3751, %v6407_v9   ;;  %v676_v9 = vmul.f32 %v3406_v53, %v608_v37 }
  0x6f   : > { %1092 = vperm.xlu0 %3740, %v6406_v16   ;;  %v4433_v16 = vshrl.u32 %v379_v28, 7 }
  0x71   : > { %v946_v45 = vsub.s32 1, %v4433_v16  ;;  %v811_v38 = vadd.s32 8, %v4433_v16  ;;  %v812_v39 = vadd.s32 16, %v4433_v16  ;;  %v813_v59 = vadd.s32 24, %v4433_v16 }
  0x72   : > { %1107 = vperm.xlu1 %3751, %v6408_v34   ;;  %v942_v34 = vsub.s32 0, %v4433_v16  ;;  %v814_v53 = vadd.s32 32, %v4433_v16  ;;  %v815_v37 = vadd.s32 40, %v4433_v16  ;;  %v827_v29 = vadd.s32 136, %v4433_v16 }
  0x73   : > { %1102 = vperm.xlu0 %3740, %v6410_v55   ;;  %v677_v55 = vsub.f32 1.0, %v676_v9  ;;  %v1935_v3 = vrot.slane %v609_v11, %v946_v45  ;;  %v826_v9 = vadd.s32 128, %v4433_v16  ;;  %vm875_vm2 = vcmp.le.s32.totalorder %v4431_v51, %v4433_v16 }
  0x74   : > { %v1931_v28 = vrot.slane %v609_v11, %v942_v34  ;;  %v2272_v11 = vsub.f32 1.0, %v4106_v36  ;;  %vm877_vm3 = vcmp.le.s32.totalorder %v4431_v51, %v811_v38  ;;  %vm879_vm4 = vcmp.le.s32.totalorder %v4431_v51, %v812_v39 }
  0x75   : > { %v4451_v21 = vrot.slane %v677_v55, %v942_v34  ;;  %v4453_v42 = vrot.slane %v677_v55, %v946_v45  ;;  %vm881_vm5 = vcmp.le.s32.totalorder %v4431_v51, %v813_v59  ;;  %v816_v48 = vadd.s32 48, %v4433_v16 }
  0x76   : > { %v1939_v23 = vsel %vm1938_vm1, %v1931_v28, 0.0  ;;  %v1940_v27 = vsel %vm1938_vm1, %v1935_v3, 0.0  ;;  %vm883_vm6 = vcmp.le.s32.totalorder %v4431_v51, %v814_v53  ;;  %2336 = vrot.lane.b32.xlu1 %v2272_v11, %s4011_s14  ;;  %v2273_v45 = vsub.f32 1.0, %v4101_v33 }
  0x77   : > { %vm908_vm7 = vcmp.le.s32.totalorder %v4447_v49, %v826_v9  ;;  %vm910_vm8 = vcmp.le.s32.totalorder %v4447_v49, %v827_v29  ;;  %vm885_vm9 = vcmp.le.s32.totalorder %v4431_v51, %v815_v37  ;;  %v817_v36 = vadd.s32 56, %v4433_v16 }
  0x78   : > { %v6517_v38 = vmov 0.0   ;;  %v818_v33 = vadd.s32 64, %v4433_v16  ;;  %v1941_v39 = vadd.f32 %v1940_v27, %v1939_v23  ;;  %v819_v53 = vadd.s32 72, %v4433_v16 }
  0x79   : > { %v4473_v3 = vsel %vm875_vm2, 1.0, %v6517_v38  ;;  %v4476_v34 = vsel %vm877_vm3, 1.0, %v6517_v38  ;;  %v4479_v55 = vsel %vm879_vm4, 1.0, %v6517_v38  ;;  %v4485_v29 = vsel %vm881_vm5, 1.0, %v6517_v38 }
  0x7a   : > { %v4488_v28 = vsel %vm883_vm6, 1.0, %v6517_v38  ;;  %v4492_v37 = vsel %vm908_vm7, 1.0, %v6517_v38  ;;  %v4495_v9 = vsel %vm910_vm8, 1.0, %v6517_v38  ;;  %v4498_v11 = vsel %vm885_vm9, 1.0, %v6517_v38  ;;  %2338 = vrot.lane.b32.xlu1 %v2273_v45, %s4011_s14 }
  0x7b   : > { %v2274_v59 = vsub.f32 1.0, %v4122_v46  ;;  %v828_v23 = vadd.s32 144, %v4433_v16  ;;  %v829_v27 = vadd.s32 152, %v4433_v16  ;;  %vm887_vm10 = vcmp.le.s32.totalorder %v4431_v51, %v816_v48 }
  0x7c   : > { %vm889_vm11 = vcmp.le.s32.totalorder %v4431_v51, %v817_v36  ;;  %v830_v13 = vadd.s32 160, %v4433_v16  ;;  %vm891_vm12 = vcmp.le.s32.totalorder %v4431_v51, %v818_v33  ;;  %v820_v19 = vadd.s32 80, %v4433_v16 }
  0x7d   : > { %v821_v50 = vadd.s32 88, %v4433_v16  ;;  %v831_v46 = vadd.s32 168, %v4433_v16  ;;  %vm893_vm14 = vcmp.le.s32.totalorder %v4431_v51, %v819_v53  ;;  %v822_v45 = vadd.s32 96, %v4433_v16 }
  0x7e   : > { %v823_v48 = vadd.s32 104, %v4433_v16  ;;  %v4516_v56 = vsel %vm887_vm10, 1.0, %v6517_v38  ;;  %v832_v0 = vadd.s32 176, %v4433_v16  ;;  %v833_v5 = vadd.s32 184, %v4433_v16  ;;  %2340 = vrot.lane.b32.xlu1 %v2274_v59, %s4011_s14 }
  0x7f   : > { %vm912_vm15 = vcmp.le.s32.totalorder %v4447_v49, %v828_v23  ;;  %vm914_vm0 = vcmp.le.s32.totalorder %v4447_v49, %v829_v27  ;;  %v4527_v53 = vsel %vm889_vm11, 1.0, %v6517_v38  ;;  %v4532_v40 = vsel %vm891_vm12, 1.0, %v6517_v38 }
  0x80   : > { %vm916_vm1 = vcmp.le.s32.totalorder %v4447_v49, %v830_v13  ;;  %v4536_v59 = vsel %vm893_vm14, 1.0, %v6517_v38  ;;  %vm895_vm2 = vcmp.le.s32.totalorder %v4431_v51, %v820_v19  ;;  %vm897_vm3 = vcmp.le.s32.totalorder %v4431_v51, %v821_v50 }
  0x81   : > { %6518 = vst [vmem:[#allocation35_spill] sm:$0xff] %v4536_v59  ;;  %vm918_vm4 = vcmp.le.s32.totalorder %v4447_v49, %v831_v46  ;;  %v834_v60 = vadd.s32 192, %v4433_v16  ;;  %vm899_vm5 = vcmp.le.s32.totalorder %v4431_v51, %v822_v45  ;;  %vm901_vm6 = vcmp.le.s32.totalorder %v4431_v51, %v823_v48 }
  0x82   : > { %v4545_v36 = vsel %vm912_vm15, 1.0, %v6517_v38  ;;  %vm920_vm7 = vcmp.le.s32.totalorder %v4447_v49, %v832_v0  ;;  %vm922_vm8 = vcmp.le.s32.totalorder %v4447_v49, %v833_v5  ;;  %2344 = vrot.lane.b32.xlu1 %v2276_v35, %s4011_s14  ;;  %v2277_v19 = vsub.f32 1.0, %v4130_v57 }
  0x83   : > { %v4554_v50 = vsel %vm914_vm0, 1.0, %v6517_v38  ;;  %v4557_v33 = vsel %vm895_vm2, 1.0, %v6517_v38  ;;  %v835_v23 = vadd.s32 200, %v4433_v16  ;;  %v4566_v35 = vsel %vm916_vm1, 1.0, %v6517_v38 }
  0x84   : > { %6519 = vst [vmem:[#allocation36_spill] sm:$0xff] %v4557_v33  ;;  %6521 = vst [vmem:[#allocation38_spill] sm:$0xff] %v4566_v35  ;;  %v4569_v57 = vsel %vm918_vm4, 1.0, %v6517_v38  ;;  %v4572_v5 = vsel %vm899_vm5, 1.0, %v6517_v38  ;;  %v4575_v27 = vsel %vm901_vm6, 1.0, %v6517_v38  ;;  %v4578_v45 = vsel %vm920_vm7, 1.0, %v6517_v38 }
  0x85   : > { %6522 = vst [vmem:[#allocation39_spill] sm:$0xff] %v4569_v57  ;;  %6523 = vst [vmem:[#allocation40_spill] sm:$0xff] %v4572_v5  ;;  %v4581_v48 = vsel %vm922_vm8, 1.0, %v6517_v38  ;;  %vm924_vm9 = vcmp.le.s32.totalorder %v4447_v49, %v834_v60  ;;  %v2278_v13 = vsub.f32 1.0, %v4149_v8  ;;  %vm926_vm10 = vcmp.le.s32.totalorder %v4447_v49, %v835_v23 }
  0x86   : > { %6524 = vst [vmem:[#allocation41_spill] sm:$0xff] %v4575_v27  ;;  %6525 = vst [vmem:[#allocation42_spill] sm:$0xff] %v4578_v45  ;;  %2346 = vrot.lane.b32.xlu1 %v2277_v19, %s4011_s14  ;;  %v836_v2 = vadd.s32 208, %v4433_v16  ;;  %v4589_v62 = vadd.s32 112, %v4433_v16  ;;  %v4592_v27 = vadd.s32 120, %v4433_v16  ;;  %v4601_v19 = vsel %vm924_vm9, 1.0, %v6517_v38 }
  0x87   : > { %6526 = vst [vmem:[#allocation43_spill] sm:$0xff] %v4581_v48  ;;  %6527 = vst [vmem:[#allocation44_spill] sm:$0xff] %v4601_v19  ;;  %v2279_v33 = vsub.f32 1.0, %v4145_v6 }
  0x88   : > { %vm928_vm11 = vcmp.le.s32.totalorder %v4447_v49, %v836_v2  ;;  %vm903_vm12 = vcmp.le.s32.totalorder %v4431_v51, %v4589_v62  ;;  %vm905_vm14 = vcmp.le.s32.totalorder %v4431_v51, %v4592_v27  ;;  %v2282_v62 = vsub.f32 1.0, %v4225_v61 }
  0x8a   : > { %2348 = vrot.lane.b32.xlu1 %v2278_v13, %s4011_s14 }
  0x8e   : > { %2350 = vrot.lane.b32.xlu1 %v2279_v33, %s4011_s14 }
  0x92   : > { %1942 = vadd.xlane.f32.xlu0 %v1941_v39  ;;  %v4560_v39 = vsel %vm897_vm3, 1.0, %v6517_v38 }
  0x93   : > { %6520 = vst [vmem:[#allocation37_spill] sm:$0xff] %v4560_v39 }
  0x95   : > { %v3754_v0 = vpop.permute.xlu1 %3753 }
  0x96   : > { %v3743_v46 = vpop.permute.xlu0 %3742  ;;  %v3756_v22 = vunpack.i.h.bf16 %v3754_v0  ;;  %v3755_v26 = vunpack.i.l.bf16 %v3754_v0  ;;  %v837_v0 = vadd.s32 216, %v4433_v16 }
  0x97   : > { %v3745_v10 = vunpack.i.h.bf16 %v3743_v46  ;;  %v3744_v14 = vunpack.i.l.bf16 %v3743_v46 }
  0x98   : > { %vm930_vm15 = vcmp.le.s32.totalorder %v4447_v49, %v837_v0  ;;  %v839_v0 = vadd.s32 232, %v4433_v16 }
  0x99   : > { %v3759_v5 = vpop.permute.xlu1 %3758  ;;  %v560_v8 = vsel %vm381_vm13, %v3744_v14, %v4439_v24  ;;  %v561_v60 = vsel %vm381_vm13, %v3745_v10, %v4439_v24  ;;  %v562_v14 = vsel %vm381_vm13, %v3755_v26, %v4439_v24  ;;  %v563_v10 = vsel %vm381_vm13, %v3756_v22, %v4439_v24 }
  0x9a   : > { %v3761_v46 = vunpack.i.h.bf16 %v3759_v5  ;;  %v3760_v45 = vunpack.i.l.bf16 %v3759_v5  ;;  %v3748_v48 = vpop.permute.xlu0 %3747  ;;  %v584_v39 = vpack.c.bf16 %v561_v60, %v560_v8  ;;  %v4615_v5 = vsel %vm926_vm10, 1.0, %v6517_v38 }
  0x9b   : > { %v3750_v35 = vunpack.i.h.bf16 %v3748_v48  ;;  %v3749_v57 = vunpack.i.l.bf16 %v3748_v48  ;;  %6528 = vst [vmem:[#allocation45_spill] sm:$0xff] %v4615_v5  ;;  %v585_v13 = vpack.c.bf16 %v563_v10, %v562_v14  ;;  %v840_v14 = vadd.s32 240, %v4433_v16 }
  0x9c   : > { %3580 = vmatprep.subr.bf16.mxu0 %v584_v39  ;;  %3692 = vmatprep.subr.bf16.mxu1 %v584_v39  ;;  %v2280_v39 = vsub.f32 1.0, %v4185_v32  ;;  %v546_v8 = vsel %vm381_vm13, %v3760_v45, %v4439_v24  ;;  %v547_v60 = vsel %vm381_vm13, %v3761_v46, %v4439_v24  ;;  %v4640_v32 = vsel %vm928_vm11, 1.0, %v6517_v38 }
  0x9d   : > { %v3769_v6 = vpop.permute.xlu1 %3768  ;;  %v544_v22 = vsel %vm381_vm13, %v3749_v57, %v4439_v24  ;;  %v545_v26 = vsel %vm381_vm13, %v3750_v35, %v4439_v24  ;;  %6529 = vst [vmem:[#allocation46_spill] sm:$0xff] %v4640_v32  ;;  %v4643_v35 = vsel %vm930_vm15, 1.0, %v6517_v38  ;;  %v838_v45 = vadd.s32 224, %v4433_v16 }
  0x9e   : > { %v3764_v23 = vpop.permute.xlu0 %3763  ;;  %v576_v48 = vpack.c.bf16 %v545_v26, %v544_v22  ;;  %v3771_v57 = vunpack.i.h.bf16 %v3769_v6  ;;  %v3770_v19 = vunpack.i.l.bf16 %v3769_v6  ;;  %6530 = vst [vmem:[#allocation47_spill] sm:$0xff] %v4643_v35  ;;  %v2281_v10 = vsub.f32 1.0, %v4181_v30  ;;  %2352 = vrot.lane.b32.xlu1 %v2280_v39, %s4011_s14 }
  0x9f   : > { %v3766_v5 = vunpack.i.h.bf16 %v3764_v23  ;;  %v3765_v59 = vunpack.i.l.bf16 %v3764_v23  ;;  %v577_v23 = vpack.c.bf16 %v547_v60, %v546_v8  ;;  %vm932_vm0 = vcmp.le.s32.totalorder %v4447_v49, %v838_v45 }
  0xa0   : > { %3581 = vmatpush3.bf16.msra.mxu0 %v576_v48  ;;  %3700 = vmatpush3.bf16.msra.mxu1 %v576_v48  ;;  %v548_v32 = vsel %vm381_vm13, %v3770_v19, %v4439_v24  ;;  %vm934_vm1 = vcmp.le.s32.totalorder %v4447_v49, %v839_v0  ;;  %v4668_v30 = vsel %vm903_vm12, 1.0, %v6517_v38  ;;  %v4674_v19 = vsel %vm905_vm14, 1.0, %v6517_v38 }
  0xa1   : > { %3582 = vmatprep.subr.bf16.mxu0 %v585_v13  ;;  %3693 = vmatprep.subr.bf16.mxu1 %v585_v13  ;;  %v3779_v46 = vpop.permute.xlu1 %3778  ;;  %v564_v33 = vsel %vm381_vm13, %v3765_v59, %v4439_v24  ;;  %v565_v2 = vsel %vm381_vm13, %v3766_v5, %v4439_v24  ;;  %v549_v59 = vsel %vm381_vm13, %v3771_v57, %v4439_v24  ;;  %v4694_v61 = vsel %vm932_vm0, 1.0, %v6517_v38 }
  0xa2   : > { %v3781_v6 = vunpack.i.h.bf16 %v3779_v46  ;;  %v3780_v22 = vunpack.i.l.bf16 %v3779_v46  ;;  %v3774_v26 = vpop.permute.xlu0 %3773  ;;  %v586_v48 = vpack.c.bf16 %v565_v2, %v564_v33  ;;  %vm936_vm2 = vcmp.le.s32.totalorder %v4447_v49, %v840_v14  ;;  %2354 = vrot.lane.b32.xlu1 %v2281_v10, %s4011_s14 }
  0xa3   : > { %v3776_v35 = vunpack.i.h.bf16 %v3774_v26  ;;  %v3775_v13 = vunpack.i.l.bf16 %v3774_v26  ;;  %v578_v57 = vpack.c.bf16 %v549_v59, %v548_v32  ;;  %v4699_v32 = vsel %vm934_vm1, 1.0, %v6517_v38 }
  0xa4   : > { %3583 = vmatpush3.bf16.msra.mxu0 %v577_v23  ;;  %3701 = vmatpush3.bf16.msra.mxu1 %v577_v23  ;;  %v550_v46 = vsel %vm381_vm13, %v3780_v22, %v4439_v24  ;;  %v551_v33 = vsel %vm381_vm13, %v3781_v6, %v4439_v24  ;;  %v4707_v6 = vsel %vm936_vm2, 1.0, %v6517_v38  ;;  %v2283_v22 = vsub.f32 1.0, %v4221_v58 }
  0xa5   : > { %3584 = vmatprep.subr.bf16.mxu0 %v586_v48  ;;  %3694 = vmatprep.subr.bf16.mxu1 %v586_v48  ;;  %v3789_v5 = vpop.permute.xlu1 %3788  ;;  %v566_v39 = vsel %vm381_vm13, %v3775_v13, %v4439_v24  ;;  %v567_v8 = vsel %vm381_vm13, %v3776_v35, %v4439_v24  ;;  %v4702_v35 = vadd.s32 248, %v4433_v16  ;;  %v2284_v16 = vsub.f32 1.0, %v4265_v43 }
  0xa6   : > { %v3784_v60 = vpop.permute.xlu0 %3783  ;;  %v587_v27 = vpack.c.bf16 %v567_v8, %v566_v39  ;;  %v3791_v2 = vunpack.i.h.bf16 %v3789_v5  ;;  %v3790_v26 = vunpack.i.l.bf16 %v3789_v5  ;;  %v579_v5 = vpack.c.bf16 %v551_v33, %v550_v46  ;;  %2356 = vrot.lane.b32.xlu1 %v2282_v62, %s4011_s14 }
  0xa7   : > { %v3786_v23 = vunpack.i.h.bf16 %v3784_v60  ;;  %v3785_v48 = vunpack.i.l.bf16 %v3784_v60  ;;  %v2285_v43 = vsub.f32 1.0, %v4261_v41  ;;  %v2286_v46 = vsub.f32 1.0, %v4305_v54 }
  0xa8   : > { %3585 = vmatpush3.bf16.msra.mxu0 %v578_v57  ;;  %3702 = vmatpush3.bf16.msra.mxu1 %v578_v57  ;;  %v552_v57 = vsel %vm381_vm13, %v3790_v26, %v4439_v24 }
  0xa9   : > { %3586 = vmatprep.subr.bf16.mxu0 %v587_v27  ;;  %3695 = vmatprep.subr.bf16.mxu1 %v587_v27  ;;  %v3799_v10 = vpop.permute.xlu1 %3798  ;;  %v568_v45 = vsel %vm381_vm13, %v3785_v48, %v4439_v24  ;;  %v569_v0 = vsel %vm381_vm13, %v3786_v23, %v4439_v24  ;;  %v553_v27 = vsel %vm381_vm13, %v3791_v2, %v4439_v24  ;;  %v2288_v48 = vsub.f32 1.0, %v4165_v20 }
  0xaa   : > { %v3801_v13 = vunpack.i.h.bf16 %v3799_v10  ;;  %v3800_v59 = vunpack.i.l.bf16 %v3799_v10  ;;  %v3794_v14 = vpop.permute.xlu0 %3793  ;;  %v588_v39 = vpack.c.bf16 %v569_v0, %v568_v45  ;;  %2358 = vrot.lane.b32.xlu1 %v2283_v22, %s4011_s14 }
  0xab   : > { %v3796_v8 = vunpack.i.h.bf16 %v3794_v14  ;;  %v3795_v60 = vunpack.i.l.bf16 %v3794_v14 }
  0xac   : > { %3587 = vmatpush3.bf16.msra.mxu0 %v579_v5  ;;  %3703 = vmatpush3.bf16.msra.mxu1 %v579_v5  ;;  %v554_v58 = vsel %vm381_vm13, %v3800_v59, %v4439_v24  ;;  %v555_v23 = vsel %vm381_vm13, %v3801_v13, %v4439_v24  ;;  %v580_v59 = vpack.c.bf16 %v553_v27, %v552_v57 }
  0xad   : > { %3588 = vmatprep.subr.bf16.mxu0 %v588_v39  ;;  %3696 = vmatprep.subr.bf16.mxu1 %v588_v39  ;;  %v3809_v26 = vpop.permute.xlu1 %3808  ;;  %v570_v2 = vsel %vm381_vm13, %v3795_v60, %v4439_v24  ;;  %v571_v62 = vsel %vm381_vm13, %v3796_v8, %v4439_v24  ;;  %v2289_v60 = vsub.f32 1.0, %v4161_v18  ;;  %v581_v8 = vpack.c.bf16 %v555_v23, %v554_v58 }
  0xae   : > { %v3811_v10 = vunpack.i.h.bf16 %v3809_v26  ;;  %v3810_v45 = vunpack.i.l.bf16 %v3809_v26  ;;  %v3804_v0 = vpop.permute.xlu0 %3803  ;;  %v589_v14 = vpack.c.bf16 %v571_v62, %v570_v2  ;;  %v2293_v62 = vsub.f32 1.0, %v4241_v15  ;;  %2360 = vrot.lane.b32.xlu1 %v2284_v16, %s4011_s14 }
  0xaf   : > { %v3806_v5 = vunpack.i.h.bf16 %v3804_v0  ;;  %v3805_v39 = vunpack.i.l.bf16 %v3804_v0 }
  0xb0   : > { %3589 = vmatpush3.bf16.msra.mxu0 %v580_v59  ;;  %3704 = vmatpush3.bf16.msra.mxu1 %v580_v59  ;;  %v556_v13 = vsel %vm381_vm13, %v3810_v45, %v4439_v24  ;;  %v557_v58 = vsel %vm381_vm13, %v3811_v10, %v4439_v24 }
  0xb1   : > { %3590 = vmatprep.subr.bf16.mxu0 %v589_v14  ;;  %3697 = vmatprep.subr.bf16.mxu1 %v589_v14  ;;  %v3819_v27 = vpop.permute.xlu1 %3818  ;;  %v572_v22 = vsel %vm381_vm13, %v3805_v39, %v4439_v24  ;;  %v573_v2 = vsel %vm381_vm13, %v3806_v5, %v4439_v24  ;;  %v2294_v14 = vsub.f32 1.0, %v4285_v12  ;;  %v2295_v39 = vsub.f32 1.0, %v4281_v7 }
  0xb2   : > { %v3821_v23 = vunpack.i.h.bf16 %v3819_v27  ;;  %v3820_v45 = vunpack.i.l.bf16 %v3819_v27  ;;  %v3814_v0 = vpop.permute.xlu0 %3813  ;;  %v590_v59 = vpack.c.bf16 %v573_v2, %v572_v22  ;;  %v2296_v5 = vsub.f32 1.0, %v4325_v31  ;;  %2362 = vrot.lane.b32.xlu1 %v2285_v43, %s4011_s14 }
  0xb3   : > { %v3816_v57 = vunpack.i.h.bf16 %v3814_v0  ;;  %v3815_v26 = vunpack.i.l.bf16 %v3814_v0  ;;  %v582_v33 = vpack.c.bf16 %v557_v58, %v556_v13  ;;  %v2297_v27 = vsub.f32 1.0, %v4321_v52 }
  0xb4   : > { %3591 = vmatpush3.bf16.msra.mxu0 %v581_v8  ;;  %3705 = vmatpush3.bf16.msra.mxu1 %v581_v8  ;;  %v558_v10 = vsel %vm381_vm13, %v3820_v45, %v4439_v24  ;;  %v2298_v22 = vsub.f32 1.0, %v4345_v1  ;;  %v559_v13 = vsel %vm381_vm13, %v3821_v23, %v4439_v24  ;;  %v2299_v58 = vsub.f32 1.0, %v4341_v25  ;;  %v6579_v1 = vld [vmem:[#allocation46_spill] sm:$0xff] }
  0xb5   : > { %3592 = vmatprep.subr.bf16.mxu0 %v590_v59  ;;  %3698 = vmatprep.subr.bf16.mxu1 %v590_v59  ;;  %v958_v2 = vpop.permute.xlu1 %957  ;;  %v574_v16 = vsel %vm381_vm13, %v3815_v26, %v4439_v24  ;;  %v575_v8 = vsel %vm381_vm13, %v3816_v57, %v4439_v24  ;;  %v583_v43 = vpack.c.bf16 %v559_v13, %v558_v10 }
  0xb6   : > { %v953_v45 = vpop.permute.xlu0 %952  ;;  %v591_v0 = vpack.c.bf16 %v575_v8, %v574_v16  ;;  %vm1113_vm3 = vcmp.gt.f32.partialorder %v4453_v42, %v958_v2  ;;  %vm1177_vm4 = vcmp.eq.f32.partialorder %v4453_v42, %v958_v2  ;;  %vm1112_vm5 = vcmp.gt.f32.partialorder %v4451_v21, %v958_v2  ;;  %2364 = vrot.lane.b32.xlu1 %v2286_v46, %s4011_s14 }
  0xb7   : > { %vm1111_vm6 = vcmp.gt.f32.partialorder %v4453_v42, %v953_v45  ;;  %vm1175_vm7 = vcmp.eq.f32.partialorder %v4453_v42, %v953_v45  ;;  %v3474_v26 = vsel %vm1113_vm3, 1.0, %v6517_v38  ;;  %vm4783_vm8 = vmneg %vm1177_vm4  ;;  %vm1110_vm13 = vcmp.gt.f32.partialorder %v4451_v21, %v953_v45 }
  0xb8   : > { %3593 = vmatpush3.bf16.msra.mxu0 %v582_v33  ;;  %3706 = vmatpush3.bf16.msra.mxu1 %v582_v33  ;;  %v3472_v24 = vsel %vm1111_vm6, 1.0, %v6517_v38  ;;  %vm4792_vm9 = vmneg %vm1175_vm7  ;;  %vm1174_vm10 = vcmp.eq.f32.partialorder %v4451_v21, %v953_v45  ;;  %vm1176_vm11 = vcmp.eq.f32.partialorder %v4451_v21, %v958_v2  ;;  %v3471_v23 = vsel %vm1110_vm13, 1.0, %v6517_v38 }
  0xb9   : > { %3594 = vmatprep.subr.bf16.mxu0 %v591_v0  ;;  %3699 = vmatprep.subr.bf16.mxu1 %v591_v0  ;;  %v968_v59 = vpop.permute.xlu1 %967  ;;  %vm3537_vm12 = vmpackc.low %vm4783_vm8, %vm4792_vm9  ;;  %v3538_v41 = vpack.c.bf16 %v3474_v26, %v3472_v24  ;;  %v3473_v33 = vsel %vm1112_vm5, 1.0, %v6517_v38  ;;  %v1494_v16 = vsel %vm1174_vm10, %v4473_v3, %v3471_v23  ;;  %v2300_v3 = vsub.f32 1.0, %v4363_v63 }
  0xba   : > { %vm1117_vm14 = vcmp.gt.f32.partialorder %v4453_v42, %v968_v59  ;;  %v963_v8 = vpop.permute.xlu0 %962  ;;  %v1496_v45 = vsel %vm1176_vm11, %v4476_v34, %v3473_v33  ;;  %vm1181_vm15 = vcmp.eq.f32.partialorder %v4453_v42, %v968_v59  ;;  %vm1116_vm0 = vcmp.gt.f32.partialorder %v4451_v21, %v968_v59 }
  0xbb   : > { %vm1115_vm1 = vcmp.gt.f32.partialorder %v4453_v42, %v963_v8  ;;  %3539 = vmatprep.mubr.msk.bf16.mxu0 %vm3537_vm12, %v3538_v41  ;;  %vm1179_vm2 = vcmp.eq.f32.partialorder %v4453_v42, %v963_v8  ;;  %v3478_v10 = vsel %vm1117_vm14, 1.0, %v6517_v38  ;;  %vm4814_vm3 = vmneg %vm1181_vm15  ;;  %vm1114_vm5 = vcmp.gt.f32.partialorder %v4451_v21, %v963_v8 }
  0xbc   : > { %3595 = vmatpush3.bf16.msra.mxu0 %v583_v43  ;;  %3707 = vmatpush3.bf16.msra.mxu1 %v583_v43  ;;  %v3476_v34 = vsel %vm1115_vm1, 1.0, %v6517_v38  ;;  %vm4823_vm4 = vmneg %vm1179_vm2  ;;  %vm1178_vm6 = vcmp.eq.f32.partialorder %v4451_v21, %v963_v8  ;;  %vm1180_vm7 = vcmp.eq.f32.partialorder %v4451_v21, %v968_v59  ;;  %v1558_v26 = vpack.c.bf16 %v1496_v45, %v1494_v16 }
  0xbd   : > { %v978_v0 = vpop.permute.xlu1 %977  ;;  %v3543_v54 = vpack.c.bf16 %v3478_v10, %v3476_v34  ;;  %v3475_v46 = vsel %vm1114_vm5, 1.0, %v6517_v38  ;;  %v3477_v57 = vsel %vm1116_vm0, 1.0, %v6517_v38  ;;  %vm3542_vm10 = vmpackc.low %vm4814_vm3, %vm4823_vm4 }
  0xbe   : > { %vm1121_vm8 = vcmp.gt.f32.partialorder %v4453_v42, %v978_v0  ;;  %v973_v24 = vpop.permute.xlu0 %972  ;;  %v1498_v51 = vsel %vm1178_vm6, %v4479_v55, %v3475_v46  ;;  %v1500_v23 = vsel %vm1180_vm7, %v4485_v29, %v3477_v57  ;;  %vm1185_vm13 = vcmp.eq.f32.partialorder %v4453_v42, %v978_v0 }
  0xbf   : > { %vm1119_vm9 = vcmp.gt.f32.partialorder %v4453_v42, %v973_v24  ;;  %1639 = vmatmul.mubr.bf16.vlgmr.msra.gmra.mrb[0].mxu0 %v1558_v26  ;;  %v1560_v41 = vpack.c.bf16 %v1500_v23, %v1498_v51  ;;  %vm1183_vm11 = vcmp.eq.f32.partialorder %v4453_v42, %v973_v24  ;;  %v3482_v59 = vsel %vm1121_vm8, 1.0, %v6517_v38  ;;  %vm4866_vm4 = vmneg %vm1185_vm13 }
  0xc0   : > { %v6539_v55 = vsub.f32 1.0, %v4301_v4  ;;  %3544 = vmatprep.mubr.msk.bf16.mxu0 %vm3542_vm10, %v3543_v54  ;;  %v3480_v29 = vsel %vm1119_vm9, 1.0, %v6517_v38  ;;  %vm1118_vm12 = vcmp.gt.f32.partialorder %v4451_v21, %v973_v24  ;;  %vm1120_vm14 = vcmp.gt.f32.partialorder %v4451_v21, %v978_v0  ;;  %vm4881_vm6 = vmneg %vm1183_vm11 }
  0xc1   : > { %vm1182_vm15 = vcmp.eq.f32.partialorder %v4451_v21, %v973_v24  ;;  %v988_v43 = vpop.permute.xlu1 %987  ;;  %v3548_v33 = vpack.c.bf16 %v3482_v59, %v3480_v29  ;;  %vm1184_vm0 = vcmp.eq.f32.partialorder %v4451_v21, %v978_v0  ;;  %v3479_v16 = vsel %vm1118_vm12, 1.0, %v6517_v38 }
  0xc2   : > { %2366 = vrot.lane.b32.xlu1 %v6539_v55, %s4011_s14  ;;  %v3481_v8 = vsel %vm1120_vm14, 1.0, %v6517_v38  ;;  %vm1125_vm1 = vcmp.gt.f32.partialorder %v4453_v42, %v988_v43  ;;  %v983_v4 = vpop.permute.xlu0 %982  ;;  %v4857_v45 = vsel %vm1182_vm15, %v4488_v28, %v3479_v16  ;;  %vm1189_vm2 = vcmp.eq.f32.partialorder %v4453_v42, %v988_v43  ;;  %vm3547_vm15 = vmpackc.low %vm4866_vm4, %vm4881_vm6 }
  0xc3   : > { %v4860_v10 = vsel %vm1184_vm0, %v4498_v11, %v3481_v8  ;;  %vm1123_vm3 = vcmp.gt.f32.partialorder %v4453_v42, %v983_v4  ;;  %vm1187_vm5 = vcmp.eq.f32.partialorder %v4453_v42, %v983_v4  ;;  %v4874_v28 = vsel %vm1125_vm1, 1.0, %v6517_v38 }
  0xc4   : > { %v1562_v34 = vpack.c.bf16 %v4860_v10, %v4857_v45  ;;  %v4886_v13 = vsel %vm1123_vm3, 1.0, %v6517_v38  ;;  %vm1122_vm7 = vcmp.gt.f32.partialorder %v4451_v21, %v983_v4  ;;  %vm1124_vm8 = vcmp.gt.f32.partialorder %v4451_v21, %v988_v43 }
  0xc5   : > { %vm1186_vm13 = vcmp.eq.f32.partialorder %v4451_v21, %v983_v4  ;;  %v1038_v0 = vpop.permute.xlu1 %1037  ;;  %v3553_v20 = vpack.c.bf16 %v4874_v28, %v4886_v13  ;;  %vm1188_vm9 = vcmp.eq.f32.partialorder %v4451_v21, %v988_v43  ;;  %v3485_v26 = vsel %vm1124_vm8, 1.0, %v6517_v38  ;;  %vm4935_vm8 = vmneg %vm1189_vm2 }
  0xc6   : > { %2368 = vrot.lane.b32.xlu1 %v2288_v48, %s4011_s14  ;;  %v3483_v48 = vsel %vm1122_vm7, 1.0, %v6517_v38  ;;  %v1033_v54 = vpop.permute.xlu0 %1032  ;;  %vm1145_vm10 = vcmp.gt.f32.partialorder %v4453_v42, %v1038_v0  ;;  %vm1209_vm11 = vcmp.eq.f32.partialorder %v4453_v42, %v1038_v0  ;;  %vm1144_vm12 = vcmp.gt.f32.partialorder %v4451_v21, %v1038_v0 }
  0xc7   : > { %vm1208_vm14 = vcmp.eq.f32.partialorder %v4451_v21, %v1038_v0  ;;  %1647 = vmatmul.mubr.bf16.gmra.mrb[4].mxu0 %v1560_v41  ;;  %vm1143_vm0 = vcmp.gt.f32.partialorder %v4453_v42, %v1033_v54  ;;  %vm1207_vm1 = vcmp.eq.f32.partialorder %v4453_v42, %v1033_v54  ;;  %v3506_v46 = vsel %vm1145_vm10, 1.0, %v6517_v38 }
  0xc8   : > { %vm1142_vm3 = vcmp.gt.f32.partialorder %v4451_v21, %v1033_v54  ;;  %3549 = vmatprep.mubr.msk.bf16.mxu0 %vm3547_vm15, %v3548_v33  ;;  %v3504_v57 = vsel %vm1143_vm0, 1.0, %v6517_v38  ;;  %v1529_v24 = vsel %vm1209_vm11, %v4495_v9, %v3506_v46  ;;  %vm1206_vm7 = vcmp.eq.f32.partialorder %v4451_v21, %v1033_v54 }
  0xc9   : > { %v3503_v51 = vsel %vm1142_vm3, 1.0, %v6517_v38  ;;  %v998_v23 = vpop.permute.xlu1 %997  ;;  %v1527_v41 = vsel %vm1207_vm1, %v4492_v37, %v3504_v57  ;;  %v3505_v59 = vsel %vm1144_vm12, 1.0, %v6517_v38  ;;  %v4922_v18 = vsel %vm1186_vm13, %v4516_v56, %v3483_v48 }
  0xca   : > { %2370 = vrot.lane.b32.xlu1 %v2289_v60, %s4011_s14  ;;  %v1526_v55 = vsel %vm1206_vm7, 1.0, %v3503_v51  ;;  %vm1129_vm4 = vcmp.gt.f32.partialorder %v4453_v42, %v998_v23  ;;  %v993_v9 = vpop.permute.xlu0 %992  ;;  %v1575_v60 = vpack.c.bf16 %v1529_v24, %v1527_v41  ;;  %v1528_v29 = vsel %vm1208_vm14, 1.0, %v3505_v59  ;;  %v6552_v41 = vld [vmem:[#allocation35_spill] sm:$0xff] }
  0xcb   : > { %v4930_v37 = vsel %vm1188_vm9, %v4527_v53, %v3485_v26  ;;  %vm1127_vm6 = vcmp.gt.f32.partialorder %v4453_v42, %v993_v9  ;;  %v1574_v33 = vpack.c.bf16 %v1528_v29, %v1526_v55  ;;  %vm1191_vm13 = vcmp.eq.f32.partialorder %v4453_v42, %v993_v9  ;;  %vm4947_vm9 = vmneg %vm1187_vm5  ;;  %v6558_v53 = vld [vmem:[#allocation38_spill] sm:$0xff] }
  0xcc   : > { %v1564_v16 = vpack.c.bf16 %v4930_v37, %v4922_v18  ;;  %v6546_v8 = vsub.f32 1.0, %v4205_v47  ;;  %1702 = vmatprep.mubr.bf16.mxu1 %v1575_v60  ;;  %v4953_v43 = vsel %vm1127_vm6, 1.0, %v6517_v38  ;;  %v4956_v2 = vsel %vm1129_vm4, 1.0, %v6517_v38  ;;  %vm3552_vm3 = vmpackc.low %vm4935_vm8, %vm4947_vm9  ;;  %v6557_v37 = vld [vmem:[#allocation39_spill] sm:$0xff] }
  0xcd   : > { %vm1126_vm10 = vcmp.gt.f32.partialorder %v4451_v21, %v993_v9  ;;  %1703 = vmatmul.mubr.bf16.vlgmr.msra.gmra.mrb[0].mxu1 %v1574_v33  ;;  %v1048_v47 = vpop.permute.xlu1 %1047  ;;  %v3558_v28 = vpack.c.bf16 %v4956_v2, %v4953_v43  ;;  %vm1128_vm5 = vcmp.gt.f32.partialorder %v4451_v21, %v998_v23  ;;  %vm1190_vm11 = vcmp.eq.f32.partialorder %v4451_v21, %v993_v9 }
  0xce   : > { %2372 = vrot.lane.b32.xlu1 %v6546_v8, %s4011_s14  ;;  %vm1192_vm12 = vcmp.eq.f32.partialorder %v4451_v21, %v998_v23  ;;  %v1043_v4 = vpop.permute.xlu0 %1042  ;;  %vm1149_vm14 = vcmp.gt.f32.partialorder %v4453_v42, %v1048_v47  ;;  %vm1213_vm15 = vcmp.eq.f32.partialorder %v4453_v42, %v1048_v47  ;;  %vm1148_vm0 = vcmp.gt.f32.partialorder %v4451_v21, %v1048_v47 }
  0xcf   : > { %vm1212_vm1 = vcmp.eq.f32.partialorder %v4451_v21, %v1048_v47  ;;  %1655 = vmatmul.mubr.bf16.gmra.mrb[8].mxu0 %v1562_v34  ;;  %vm1147_vm7 = vcmp.gt.f32.partialorder %v4453_v42, %v1043_v4  ;;  %vm1211_vm4 = vcmp.eq.f32.partialorder %v4453_v42, %v1043_v4  ;;  %v3510_v11 = vsel %vm1149_vm14, 1.0, %v6517_v38 }
  0xd0   : > { %vm1146_vm6 = vcmp.gt.f32.partialorder %v4451_v21, %v1043_v4  ;;  %v6549_v13 = vsub.f32 1.0, %v4201_v44  ;;  %3554 = vmatprep.mubr.msk.bf16.mxu0 %vm3552_vm3, %v3553_v20  ;;  %v3508_v45 = vsel %vm1147_vm7, 1.0, %v6517_v38  ;;  %v1533_v10 = vsel %vm1213_vm15, %v4554_v50, %v3510_v11 }
  0xd1   : > { %vm1210_vm2 = vcmp.eq.f32.partialorder %v4451_v21, %v1043_v4  ;;  %v3507_v34 = vsel %vm1146_vm6, 1.0, %v6517_v38  ;;  %v4986_v0 = vpop.permute.xlu1 %1007  ;;  %v1531_v48 = vsel %vm1211_vm4, %v4545_v36, %v3508_v45  ;;  %v3509_v26 = vsel %vm1148_vm0, 1.0, %v6517_v38 }
  0xd2   : > { %2374 = vrot.lane.b32.xlu1 %v6549_v13, %s4011_s14  ;;  %v1530_v54 = vsel %vm1210_vm2, 1.0, %v3507_v34  ;;  %v3487_v44 = vsel %vm1126_vm10, 1.0, %v6517_v38  ;;  %vm1133_vm8 = vcmp.gt.f32.partialorder %v4453_v42, %v4986_v0  ;;  %v1003_v50 = vpop.permute.xlu0 %1002  ;;  %v1577_v20 = vpack.c.bf16 %v1533_v10, %v1531_v48  ;;  %vm5005_vm2 = vmneg %vm1191_vm13  ;;  %v6563_v48 = vld [vmem:[#allocation36_spill] sm:$0xff] }
  0xd3   : > { %v1532_v46 = vsel %vm1212_vm1, 1.0, %v3509_v26  ;;  %v3489_v36 = vsel %vm1128_vm5, 1.0, %v6517_v38  ;;  %vm1131_vm9 = vcmp.gt.f32.partialorder %v4453_v42, %v1003_v50  ;;  %v5012_v51 = vsel %vm1190_vm11, %v4532_v40, %v3487_v44  ;;  %v6574_v13 = vld [vmem:[#allocation44_spill] sm:$0xff] }
  0xd4   : > { %v1576_v57 = vpack.c.bf16 %v1532_v46, %v1530_v54  ;;  %v5017_v59 = vsel %vm1192_vm12, %v6552_v41, %v3489_v36  ;;  %v6553_v55 = vsub.f32 1.0, %v4245_v17  ;;  %1710 = vmatprep.mubr.bf16.mxu1 %v1577_v20  ;;  %vm6554_vm13 = vcmp.eq.f32.partialorder %v4453_v42, %v998_v23  ;;  %v6564_v54 = vld [vmem:[#allocation37_spill] sm:$0xff] }
  0xd5   : > { %vm5024_vm10 = vmneg %vm6554_vm13  ;;  %v1566_v40 = vpack.c.bf16 %v5017_v59, %v5012_v51  ;;  %vm1195_vm5 = vcmp.eq.f32.partialorder %v4453_v42, %v1003_v50  ;;  %vm1197_vm11 = vcmp.eq.f32.partialorder %v4453_v42, %v4986_v0  ;;  %v5034_v9 = vsel %vm1131_vm9, 1.0, %v6517_v38  ;;  %v1058_v17 = vpop.permute.xlu1 %1057  ;;  %v6566_v59 = vld [vmem:[#allocation42_spill] sm:$0xff] }
  0xd6   : > { %2376 = vrot.lane.b32.xlu1 %v6553_v55, %s4011_s14  ;;  %1711 = vmatmul.mubr.bf16.gmra.mrb[4].mxu1 %v1576_v57  ;;  %v3494_v23 = vsel %vm1133_vm8, 1.0, %v6517_v38  ;;  %vm1130_vm12 = vcmp.gt.f32.partialorder %v4451_v21, %v1003_v50  ;;  %vm1132_vm14 = vcmp.gt.f32.partialorder %v4451_v21, %v4986_v0  ;;  %vm1194_vm15 = vcmp.eq.f32.partialorder %v4451_v21, %v1003_v50  ;;  %v1053_v29 = vpop.permute.xlu0 %1052  ;;  %vm3557_vm4 = vmpackc.low %vm5024_vm10, %vm5005_vm2  ;;  %v6565_v57 = vld [vmem:[#allocation43_spill] sm:$0xff] }
  0xd7   : > { %vm1153_vm0 = vcmp.gt.f32.partialorder %v4453_v42, %v1058_v17  ;;  %vm1217_vm1 = vcmp.eq.f32.partialorder %v4453_v42, %v1058_v17  ;;  %vm1152_vm3 = vcmp.gt.f32.partialorder %v4451_v21, %v1058_v17  ;;  %vm1216_vm7 = vcmp.eq.f32.partialorder %v4451_v21, %v1058_v17  ;;  %1663 = vmatmul.mubr.bf16.gmra.mrb[12].mxu0 %v1564_v16 }
  0xd8   : > { %vm1151_vm6 = vcmp.gt.f32.partialorder %v4453_v42, %v1053_v29  ;;  %vm1215_vm8 = vcmp.eq.f32.partialorder %v4453_v42, %v1053_v29  ;;  %v3514_v33 = vsel %vm1153_vm0, 1.0, %v6517_v38  ;;  %vm1150_vm9 = vcmp.gt.f32.partialorder %v4451_v21, %v1053_v29  ;;  %3559 = vmatprep.mubr.msk.bf16.mxu0 %vm3557_vm4, %v3558_v28 }
  0xd9   : > { %v3512_v18 = vsel %vm1151_vm6, 1.0, %v6517_v38  ;;  %v1537_v56 = vsel %vm1217_vm1, %v6557_v37, %v3514_v33  ;;  %vm1214_vm13 = vcmp.eq.f32.partialorder %v4451_v21, %v1053_v29  ;;  %v3511_v16 = vsel %vm1150_vm9, 1.0, %v6517_v38  ;;  %v5066_v8 = vpop.permute.xlu1 %1017  ;;  %vm5086_vm1 = vmneg %vm1197_vm11 }
  0xda   : > { %2378 = vrot.lane.b32.xlu1 %v2293_v62, %s4011_s14  ;;  %v1535_v43 = vsel %vm1215_vm8, %v6558_v53, %v3512_v18  ;;  %v3513_v2 = vsel %vm1152_vm3, 1.0, %v6517_v38  ;;  %v1534_v47 = vsel %vm1214_vm13, 1.0, %v3511_v16  ;;  %v3563_v15 = vpack.c.bf16 %v3494_v23, %v5034_v9  ;;  %v5075_v62 = vpop.permute.xlu0 %1012  ;;  %vm5102_vm11 = vmneg %vm1195_vm5  ;;  %v6572_v16 = vld [vmem:[#allocation41_spill] sm:$0xff] }
  0xdb   : > { %vm1137_vm2 = vcmp.gt.f32.partialorder %v4453_v42, %v5066_v8  ;;  %v1579_v28 = vpack.c.bf16 %v1537_v56, %v1535_v43  ;;  %v1536_v4 = vsel %vm1216_vm7, 1.0, %v3513_v2  ;;  %vm1196_vm10 = vcmp.eq.f32.partialorder %v4451_v21, %v4986_v0  ;;  %vm3562_vm6 = vmpackc.low %vm5086_vm1, %vm5102_vm11 }
  0xdc   : > { %vm1135_vm0 = vcmp.gt.f32.partialorder %v4453_v42, %v5075_v62  ;;  %v1578_v11 = vpack.c.bf16 %v1536_v4, %v1534_v47  ;;  %v3491_v45 = vsel %vm1130_vm12, 1.0, %v6517_v38  ;;  %v3493_v10 = vsel %vm1132_vm14, 1.0, %v6517_v38 }
  0xdd   : > { %1718 = vmatprep.mubr.bf16.mxu1 %v1579_v28  ;;  %v1514_v26 = vsel %vm1194_vm15, %v6563_v48, %v3491_v45  ;;  %v1516_v44 = vsel %vm1196_vm10, %v6564_v54, %v3493_v10  ;;  %vm1199_vm12 = vcmp.eq.f32.partialorder %v4453_v42, %v5075_v62  ;;  %vm1201_vm14 = vcmp.eq.f32.partialorder %v4453_v42, %v5066_v8  ;;  %v1068_v12 = vpop.permute.xlu1 %1067 }
  0xde   : > { %2380 = vrot.lane.b32.xlu1 %v2294_v14, %s4011_s14  ;;  %1719 = vmatmul.mubr.bf16.gmra.mrb[8].mxu1 %v1578_v11  ;;  %v1568_v14 = vpack.c.bf16 %v1516_v44, %v1514_v26  ;;  %v3496_v0 = vsel %vm1135_vm0, 1.0, %v6517_v38  ;;  %v3498_v20 = vsel %vm1137_vm2, 1.0, %v6517_v38  ;;  %vm1134_vm5 = vcmp.gt.f32.partialorder %v4451_v21, %v5075_v62  ;;  %v1063_v50 = vpop.permute.xlu0 %1062  ;;  %vm5159_vm11 = vmneg %vm1201_vm14 }
  0xdf   : > { %vm1157_vm15 = vcmp.gt.f32.partialorder %v4453_v42, %v1068_v12  ;;  %vm1221_vm3 = vcmp.eq.f32.partialorder %v4453_v42, %v1068_v12  ;;  %vm1156_vm7 = vcmp.gt.f32.partialorder %v4451_v21, %v1068_v12  ;;  %vm1220_vm4 = vcmp.eq.f32.partialorder %v4451_v21, %v1068_v12  ;;  %1671 = vmatmul.mubr.bf16.gmra.mrb[16].mxu0 %v1566_v40 }
  0xe0   : > { %vm1155_vm8 = vcmp.gt.f32.partialorder %v4453_v42, %v1063_v50  ;;  %vm1219_vm9 = vcmp.eq.f32.partialorder %v4453_v42, %v1063_v50  ;;  %v3518_v46 = vsel %vm1157_vm15, 1.0, %v6517_v38  ;;  %vm1154_vm13 = vcmp.gt.f32.partialorder %v4451_v21, %v1063_v50  ;;  %3564 = vmatprep.mubr.msk.bf16.mxu0 %vm3562_vm6, %v3563_v15 }
  0xe1   : > { %v3516_v36 = vsel %vm1155_vm8, 1.0, %v6517_v38  ;;  %v1541_v24 = vsel %vm1221_vm3, %v6565_v57, %v3518_v46  ;;  %vm1218_vm2 = vcmp.eq.f32.partialorder %v4451_v21, %v1063_v50  ;;  %v3515_v51 = vsel %vm1154_vm13, 1.0, %v6517_v38  ;;  %v5140_v41 = vpop.permute.xlu1 %1027  ;;  %v6580_v46 = vld [vmem:[#allocation47_spill] sm:$0xff] }
  0xe2   : > { %2382 = vrot.lane.b32.xlu1 %v2295_v39, %s4011_s14  ;;  %v1539_v55 = vsel %vm1219_vm9, %v6566_v59, %v3516_v36  ;;  %v3517_v60 = vsel %vm1156_vm7, 1.0, %v6517_v38  ;;  %v1538_v40 = vsel %vm1218_vm2, 1.0, %v3515_v51  ;;  %v3568_v7 = vpack.c.bf16 %v3498_v20, %v3496_v0  ;;  %v5148_v39 = vpop.permute.xlu0 %1022  ;;  %vm5173_vm7 = vmneg %vm1199_vm12 }
  0xe3   : > { %vm1141_vm10 = vcmp.gt.f32.partialorder %v4453_v42, %v5140_v41  ;;  %v1581_v9 = vpack.c.bf16 %v1541_v24, %v1539_v55  ;;  %v1540_v17 = vsel %vm1220_vm4, 1.0, %v3517_v60  ;;  %vm1136_vm0 = vcmp.gt.f32.partialorder %v4451_v21, %v5066_v8  ;;  %vm3567_vm9 = vmpackc.low %vm5159_vm11, %vm5173_vm7 }
  0xe4   : > { %vm1139_vm1 = vcmp.gt.f32.partialorder %v4453_v42, %v5148_v39  ;;  %v1580_v23 = vpack.c.bf16 %v1540_v17, %v1538_v40  ;;  %vm1198_vm15 = vcmp.eq.f32.partialorder %v4451_v21, %v5075_v62  ;;  %vm1200_vm3 = vcmp.eq.f32.partialorder %v4451_v21, %v5066_v8  ;;  %v6573_v62 = vld [vmem:[#allocation45_spill] sm:$0xff] }
  0xe5   : > { %1726 = vmatprep.mubr.bf16.mxu1 %v1581_v9  ;;  %v3495_v18 = vsel %vm1134_vm5, 1.0, %v6517_v38  ;;  %v3497_v37 = vsel %vm1136_vm0, 1.0, %v6517_v38  ;;  %vm1203_vm14 = vcmp.eq.f32.partialorder %v4453_v42, %v5148_v39  ;;  %vm1205_vm4 = vcmp.eq.f32.partialorder %v4453_v42, %v5140_v41  ;;  %v1078_v31 = vpop.permute.xlu1 %1077  ;;  %v3950_v9 = vld [vmem:[%s4094_s28 + $0xe8] sm:$0xff] }
  0xe6   : > { %2384 = vrot.lane.b32.xlu1 %v2296_v5, %s4011_s14  ;;  %1727 = vmatmul.mubr.bf16.gmra.mrb[12].mxu1 %v1580_v23  ;;  %v6571_v5 = vld [vmem:[#allocation40_spill] sm:$0xff]  ;;  %v1520_v8 = vsel %vm1200_vm3, %v6572_v16, %v3497_v37  ;;  %v3500_v53 = vsel %vm1139_vm1, 1.0, %v6517_v38  ;;  %v3502_v43 = vsel %vm1141_vm10, 1.0, %v6517_v38  ;;  %v1073_v2 = vpop.permute.xlu0 %1072  ;;  %vm1161_vm12 = vcmp.gt.f32.partialorder %v4453_v42, %v1078_v31  ;;  %vm5225_vm11 = vmneg %vm1205_vm4 }
  0xe7   : > { %v1518_v56 = vsel %vm1198_vm15, %v6571_v5, %v3495_v18  ;;  %vm1225_vm5 = vcmp.eq.f32.partialorder %v4453_v42, %v1078_v31  ;;  %vm1160_vm6 = vcmp.gt.f32.partialorder %v4451_v21, %v1078_v31  ;;  %vm1224_vm8 = vcmp.eq.f32.partialorder %v4451_v21, %v1078_v31  ;;  %1679 = vmatmul.mubr.bf16.gmra.mrb[20].mxu0 %v1568_v14  ;;  %vm5240_vm4 = vmneg %vm1203_vm14  ;;  %v3951_v5 = vld [vmem:[%s4094_s28 + $0xf0] sm:$0xff] }
  0xe8   : > { %vm1159_vm13 = vcmp.gt.f32.partialorder %v4453_v42, %v1073_v2  ;;  %vm1223_vm2 = vcmp.eq.f32.partialorder %v4453_v42, %v1073_v2  ;;  %v3522_v47 = vsel %vm1161_vm12, 1.0, %v6517_v38  ;;  %vm1158_vm10 = vcmp.gt.f32.partialorder %v4451_v21, %v1073_v2  ;;  %3569 = vmatprep.mubr.msk.bf16.mxu0 %vm3567_vm9, %v3568_v7 }
  0xe9   : > { %v3520_v15 = vsel %vm1159_vm13, 1.0, %v6517_v38  ;;  %v1545_v28 = vsel %vm1225_vm5, %v6573_v62, %v3522_v47  ;;  %vm1222_vm0 = vcmp.eq.f32.partialorder %v4451_v21, %v1073_v2  ;;  %v3519_v4 = vsel %vm1158_vm10, 1.0, %v6517_v38  ;;  %v1088_v11 = vpop.permute.xlu1 %1087  ;;  %vm3572_vm13 = vmpackc.low %vm5225_vm11, %vm5240_vm4  ;;  %v5316_v62 = vld [vmem:[%s4094_s28 + $0x18] sm:$0xff] }
  0xea   : > { %2386 = vrot.lane.b32.xlu1 %v2297_v27, %s4011_s14  ;;  %v1543_v45 = vsel %vm1223_vm2, %v6574_v13, %v3520_v15  ;;  %v3521_v10 = vsel %vm1160_vm6, 1.0, %v6517_v38  ;;  %v1542_v34 = vsel %vm1222_vm0, 1.0, %v3519_v4  ;;  %v1570_v48 = vpack.c.bf16 %v1520_v8, %v1518_v56  ;;  %v1083_v52 = vpop.permute.xlu0 %1082  ;;  %6581 = vst [vmem:[#allocation35_spill] sm:$0xff] %v5316_v62  ;;  %v3953_v4 = vld [vmem:[%s4094_s28 + $0xf8] sm:$0xff] }
  0xeb   : > { %v1583_v27 = vpack.c.bf16 %v1545_v28, %v1543_v45  ;;  %v1544_v26 = vsel %vm1224_vm8, 1.0, %v3521_v10  ;;  %v3573_v54 = vpack.c.bf16 %v3502_v43, %v3500_v53  ;;  %vm1165_vm1 = vcmp.gt.f32.partialorder %v4453_v42, %v1088_v11 }
  0xec   : > { %v1582_v44 = vpack.c.bf16 %v1544_v26, %v1542_v34  ;;  %vm1163_vm15 = vcmp.gt.f32.partialorder %v4453_v42, %v1083_v52  ;;  %vm1227_vm3 = vcmp.eq.f32.partialorder %v4453_v42, %v1083_v52  ;;  %vm1229_vm7 = vcmp.eq.f32.partialorder %v4453_v42, %v1088_v11 }
  0xed   : > { %vm938_vm12 = vcmp.le.s32.totalorder %v4447_v49, %v4702_v35  ;;  %1734 = vmatprep.mubr.bf16.mxu1 %v1583_v27  ;;  %v3524_v0 = vsel %vm1163_vm15, 1.0, %v6517_v38  ;;  %v3526_v20 = vsel %vm1165_vm1, 1.0, %v6517_v38  ;;  %vm1162_vm5 = vcmp.gt.f32.partialorder %v4451_v21, %v1083_v52  ;;  %v1098_v50 = vpop.permute.xlu1 %1097 }
  0xee   : > { %2388 = vrot.lane.b32.xlu1 %v2298_v22, %s4011_s14  ;;  %vm1164_vm6 = vcmp.gt.f32.partialorder %v4451_v21, %v1088_v11  ;;  %1735 = vmatmul.mubr.bf16.gmra.mrb[16].mxu1 %v1582_v44  ;;  %v1547_v22 = vsel %vm1227_vm3, %v6579_v1, %v3524_v0  ;;  %v1549_v36 = vsel %vm1229_vm7, %v6580_v46, %v3526_v20  ;;  %v1093_v57 = vpop.permute.xlu0 %1092  ;;  %v3523_v51 = vsel %vm1162_vm5, 1.0, %v6517_v38 }
  0xef   : > { %vm1226_vm8 = vcmp.eq.f32.partialorder %v4451_v21, %v1083_v52  ;;  %vm1228_vm14 = vcmp.eq.f32.partialorder %v4451_v21, %v1088_v11  ;;  %v1585_v24 = vpack.c.bf16 %v1549_v36, %v1547_v22  ;;  %v3525_v59 = vsel %vm1164_vm6, 1.0, %v6517_v38  ;;  %1687 = vmatmul.mubr.bf16.gmra.mrb[24].mxu0 %v1570_v48 }
  0xf0   : > { %vm1169_vm9 = vcmp.gt.f32.partialorder %v4453_v42, %v1098_v50  ;;  %v1546_v55 = vsel %vm1226_vm8, 1.0, %v3523_v51  ;;  %v1548_v60 = vsel %vm1228_vm14, 1.0, %v3525_v59  ;;  %vm1167_vm2 = vcmp.gt.f32.partialorder %v4453_v42, %v1093_v57  ;;  %3574 = vmatprep.mubr.msk.bf16.mxu0 %vm3572_vm13, %v3573_v54 }
  0xf1   : > { %vm1231_vm10 = vcmp.eq.f32.partialorder %v4453_v42, %v1093_v57  ;;  %1742 = vmatprep.mubr.bf16.mxu1 %v1585_v24  ;;  %vm1233_vm0 = vcmp.eq.f32.partialorder %v4453_v42, %v1098_v50  ;;  %v3528_v40 = vsel %vm1167_vm2, 1.0, %v6517_v38  ;;  %v3530_v7 = vsel %vm1169_vm9, 1.0, %v6517_v38  ;;  %v1108_v18 = vpop.permute.xlu1 %1107 }
  0xf2   : > { %2390 = vrot.lane.b32.xlu1 %v2299_v58, %s4011_s14  ;;  %v2301_v17 = vsub.f32 1.0, %v3950_v9  ;;  %v1551_v23 = vsel %vm1231_vm10, %v4694_v61, %v3528_v40  ;;  %v1553_v29 = vsel %vm1233_vm0, %v4699_v32, %v3530_v7  ;;  %vm1138_vm1 = vcmp.gt.f32.partialorder %v4451_v21, %v5148_v39  ;;  %v1103_v25 = vpop.permute.xlu0 %1102 }
  0xf3   : > { %vm1140_vm11 = vcmp.gt.f32.partialorder %v4451_v21, %v5140_v41  ;;  %v1584_v58 = vpack.c.bf16 %v1548_v60, %v1546_v55  ;;  %vm1202_vm15 = vcmp.eq.f32.partialorder %v4451_v21, %v5148_v39  ;;  %vm1204_vm3 = vcmp.eq.f32.partialorder %v4451_v21, %v5140_v41 }
  0xf4   : > { %v3499_v33 = vsel %vm1138_vm1, 1.0, %v6517_v38  ;;  %v3501_v61 = vsel %vm1140_vm11, 1.0, %v6517_v38  ;;  %vm1166_vm7 = vcmp.gt.f32.partialorder %v4451_v21, %v1093_v57  ;;  %vm1168_vm4 = vcmp.gt.f32.partialorder %v4451_v21, %v1098_v50 }
  0xf5   : > { %v1522_v32 = vsel %vm1202_vm15, %v4668_v30, %v3499_v33  ;;  %v1587_v37 = vpack.c.bf16 %v1553_v29, %v1551_v23  ;;  %v1524_v39 = vsel %vm1204_vm3, %v4674_v19, %v3501_v61  ;;  %vm1230_vm5 = vcmp.eq.f32.partialorder %v4451_v21, %v1093_v57  ;;  %v5322_v27 = vpop.permute.xlu1 %2336 }
  0xf6   : > { %2392 = vrot.lane.b32.xlu1 %v2300_v3, %s4011_s14  ;;  %vm1232_vm6 = vcmp.eq.f32.partialorder %v4451_v21, %v1098_v50  ;;  %1743 = vmatmul.mubr.bf16.gmra.mrb[20].mxu1 %v1584_v58  ;;  %v1572_v41 = vpack.c.bf16 %v1524_v39, %v1522_v32  ;;  %v3527_v30 = vsel %vm1166_vm7, 1.0, %v6517_v38  ;;  %v3529_v31 = vsel %vm1168_vm4, 1.0, %v6517_v38 }
  0xf7   : > { %vm1171_vm8 = vcmp.gt.f32.partialorder %v4453_v42, %v1103_v25  ;;  %1750 = vmatprep.mubr.bf16.mxu1 %v1587_v37  ;;  %vm1173_vm14 = vcmp.gt.f32.partialorder %v4453_v42, %v1108_v18  ;;  %vm1235_vm9 = vcmp.eq.f32.partialorder %v4453_v42, %v1103_v25  ;;  %vm1237_vm13 = vcmp.eq.f32.partialorder %v4453_v42, %v1108_v18 }
  0xf8   : > { %v3470_v63 = vsel %vm938_vm12, 1.0, %v6517_v38  ;;  %1695 = vmatmul.mubr.bf16.gmra.mrb[28].mxu0 %v1572_v41  ;;  %v3532_v19 = vsel %vm1171_vm8, 1.0, %v6517_v38  ;;  %v3534_v3 = vsel %vm1173_vm14, 1.0, %v6517_v38  ;;  %v2302_v56 = vsub.f32 1.0, %v3951_v5 }
  0xf9   : > { %v1550_v16 = vsel %vm1230_vm5, 1.0, %v3527_v30  ;;  %v1552_v42 = vsel %vm1232_vm6, 1.0, %v3529_v31  ;;  %v1555_v8 = vsel %vm1235_vm9, %v4707_v6, %v3532_v19  ;;  %v1557_v53 = vsel %vm1237_vm13, %v3470_v63, %v3534_v3  ;;  %v5324_v26 = vpop.permute.xlu1 %2338 }
  0xfa   : > { %2394 = vrot.lane.b32.xlu1 %v2301_v17, %s4011_s14  ;;  %vm1170_vm12 = vcmp.gt.f32.partialorder %v4451_v21, %v1103_v25  ;;  %vm1172_vm2 = vcmp.gt.f32.partialorder %v4451_v21, %v1108_v18  ;;  %v1586_v49 = vpack.c.bf16 %v1552_v42, %v1550_v16  ;;  %v1589_v35 = vpack.c.bf16 %v1557_v53, %v1555_v8 }
  0xfb   : > { %vm1234_vm10 = vcmp.eq.f32.partialorder %v4451_v21, %v1103_v25  ;;  %vm1236_vm0 = vcmp.eq.f32.partialorder %v4451_v21, %v1108_v18  ;;  %v3531_v43 = vsel %vm1170_vm12, 1.0, %v6517_v38  ;;  %v3533_v6 = vsel %vm1172_vm2, 1.0, %v6517_v38 }
  0xfc   : > { %v1554_v2 = vsel %vm1234_vm10, 1.0, %v3531_v43  ;;  %v1556_v47 = vsel %vm1236_vm0, 1.0, %v3533_v6  ;;  %v2275_v28 = vsub.f32 1.0, %v5316_v62  ;;  %v2303_v11 = vsub.f32 1.0, %v3953_v4 }
  0xfd   : > { %v1588_v15 = vpack.c.bf16 %v1556_v47, %v1554_v2  ;;  %v5326_v54 = vpop.permute.xlu1 %2340 }
  0xfe   : > { %2396 = vrot.lane.b32.xlu1 %v2302_v56, %s4011_s14  ;;  %1751 = vmatmul.mubr.bf16.gmra.mrb[24].mxu1 %v1586_v49 }
  0xff   : > { %1758 = vmatprep.mubr.bf16.mxu1 %v1589_v35  ;;  %2342 = vrot.lane.b32.xlu0 %v2275_v28, %s4011_s14 }
 0x101   : > { %v5328_v44 = vpop.permute.xlu1 %2344 }
 0x103   : > { %2398 = vrot.lane.b32.xlu0 %v2303_v11, %s4011_s14 }
 0x105   : > { %v5330_v12 = vpop.permute.xlu1 %2346 }
 0x106   : > { %1759 = vmatmul.mubr.bf16.gmra.mrb[28].mxu1 %v1588_v15 }
 0x109   : > { %v5332_v14 = vpop.permute.xlu1 %2348 }
 0x10d   : > { %v5334_v0 = vpop.permute.xlu1 %2350 }
 0x111   : > { %v5336_v20 = vpop.permute.xlu1 %2352 }
 0x115   : > { %v5338_v50 = vpop.permute.xlu1 %2354 }
 0x119   : > { %v5340_v1 = vpop.permute.xlu1 %2356 }
 0x11d   : > { %v5342_v22 = vpop.permute.xlu1 %2358 }
 0x11f   : > { %v1943_v13 = vpop.xlane.xlu0 %1942 }
 0x120   : > { %v1944_v45 = vrot.slane %v1943_v13, 4 }
 0x121   : > { %v5344_v46 = vpop.permute.xlu1 %2360 }
 0x122   : > { %v1945_v21 = vadd.f32 %v1944_v45, %v1943_v13 }
 0x124   : > { %v1946_v10 = vrot.slane %v1945_v21, 2 }
 0x125   : > { %v5348_v55 = vpop.permute.xlu1 %2362 }
 0x126   : > { %v1947_v34 = vadd.f32 %v1946_v10, %v1945_v21  ;;  %6583 = vst [vmem:[#allocation38_spill] sm:$0xff] %v5348_v55 }
 0x128   : > { %v1948_v48 = vrot.slane %v1947_v34, 1 }
 0x129   : > { %v5356_v9 = vpop.permute.xlu1 %2364 }
 0x12a   : > { %v1949_v52 = vadd.f32 %v1948_v48, %v1947_v34  ;;  %6585 = vst [vmem:[#allocation37_spill] sm:$0xff] %v5356_v9 }
 0x12c   : > { %3708 = vpush %v1949_v52 }
 0x134   : > { %v5364_v18 = vpop.permute.xlu1 %2366 }
 0x135   : > { %6586 = vst [vmem:[#allocation43_spill] sm:$0xff] %v5364_v18 }
 0x138   : > { %v5382_v16 = vpop.permute.xlu1 %2368 }
 0x13c   : > { %v5400_v11 = vpop.permute.xlu1 %2370 }
 0x15d   : > { %s3709_s15 = spop %3708 }
 0x15e   : > { %v5511_v18 = vstv %s3709_s15 }
 0x171   : > { %v2343_v9 = vpop.permute.xlu0 %2342 }
 0x175   : > { %v5519_v55 = vpop.permute.xlu0 %2398 }
 0x192   : > { %v3596_v36 = vpop.f32.mrb[0].mxu0 }
 0x193   : > { %v3597_v57 = vpop.f32.mrb[1].mxu0 }
 0x194   : > { %v5346_v24 = vadd.f32 %v3597_v57, %v3596_v36  ;;  %v3599_v51 = vpop.f32.mrb[2].mxu0 }
 0x195   : > { %v3600_v59 = vpop.f32.mrb[3].mxu0 }
 0x196   : > { %6582 = vst [vmem:[#allocation39_spill] sm:$0xff] %v5346_v24  ;;  %v5350_v60 = vadd.f32 %v3600_v59, %v3599_v51  ;;  %1799 = vrot.lane.b32.xlu1 %v5346_v24, %s4011_s14  ;;  %vm2464_vm11 = vcmp.gt.f32.partialorder %v5346_v24, 1.0 }
 0x198   : > { %6584 = vst [vmem:[#allocation36_spill] sm:$0xff] %v5350_v60  ;;  %vm2465_vm1 = vcmp.gt.f32.partialorder %v5350_v60, 1.0 }
 0x19a   : > { %v3602_v40 = vpop.f32.mrb[4].mxu0  ;;  %1801 = vrot.lane.b32.xlu1 %v5350_v60, %s4011_s14 }
 0x19b   : > { %v3603_v7 = vpop.f32.mrb[5].mxu0 }
 0x19c   : > { %v5358_v17 = vadd.f32 %v3603_v7, %v3602_v40  ;;  %v3605_v23 = vpop.f32.mrb[6].mxu0  ;;  %v5416_v7 = vpop.permute.xlu1 %2372 }
 0x19d   : > { %v3606_v29 = vpop.f32.mrb[7].mxu0 }
 0x19e   : > { %v5360_v25 = vadd.f32 %v3606_v29, %v3605_v23  ;;  %1803 = vrot.lane.b32.xlu1 %v5358_v17, %s4011_s14  ;;  %vm2466_vm4 = vcmp.gt.f32.partialorder %v5358_v17, 1.0 }
 0x1a0   : > { %v3644_v58 = vpop.f32.mrb[0].mxu1  ;;  %vm2467_vm7 = vcmp.gt.f32.partialorder %v5360_v25, 1.0 }
 0x1a1   : > { %v3645_v33 = vpop.f32.mrb[1].mxu1 }
 0x1a2   : > { %v5366_v61 = vadd.f32 %v3645_v33, %v3644_v58  ;;  %v3608_v32 = vpop.f32.mrb[8].mxu0  ;;  %v3647_v37 = vpop.f32.mrb[2].mxu1  ;;  %1805 = vrot.lane.b32.xlu1 %v5360_v25, %s4011_s14 }
 0x1a3   : > { %v3609_v39 = vpop.f32.mrb[9].mxu0  ;;  %v3648_v41 = vpop.f32.mrb[3].mxu1 }
 0x1a4   : > { %v5370_v30 = vadd.f32 %v3609_v39, %v3608_v32  ;;  %v5372_v31 = vadd.f32 %v3648_v41, %v3647_v37  ;;  %1831 = vrot.lane.b32.xlu0 %v5366_v61, %s4011_s14  ;;  %v3611_v63 = vpop.f32.mrb[10].mxu0  ;;  %vm2480_vm15 = vcmp.gt.f32.partialorder %v5366_v61, 1.0 }
 0x1a5   : > { %v3612_v19 = vpop.f32.mrb[11].mxu0 }
 0x1a6   : > { %v5376_v3 = vadd.f32 %v3612_v19, %v3611_v63  ;;  %1807 = vrot.lane.b32.xlu1 %v5370_v30, %s4011_s14  ;;  %vm2481_vm3 = vcmp.gt.f32.partialorder %v5372_v31, 1.0  ;;  %vm2468_vm12 = vcmp.gt.f32.partialorder %v5370_v30, 1.0 }
 0x1a8   : > { %1833 = vrot.lane.b32.xlu0 %v5372_v31, %s4011_s14  ;;  %vm2469_vm6 = vcmp.gt.f32.partialorder %v5376_v3, 1.0 }
 0x1a9   : > { %v3650_v5 = vpop.f32.mrb[4].mxu1 }
 0x1aa   : > { %v3651_v56 = vpop.f32.mrb[5].mxu1  ;;  %v3614_v8 = vpop.f32.mrb[12].mxu0  ;;  %1809 = vrot.lane.b32.xlu1 %v5376_v3, %s4011_s14 }
 0x1ab   : > { %v5384_v42 = vadd.f32 %v3651_v56, %v3650_v5  ;;  %v3653_v53 = vpop.f32.mrb[6].mxu1  ;;  %v3615_v49 = vpop.f32.mrb[13].mxu0 }
 0x1ac   : > { %v3654_v35 = vpop.f32.mrb[7].mxu1  ;;  %v5388_v43 = vadd.f32 %v3615_v49, %v3614_v8  ;;  %v3617_v2 = vpop.f32.mrb[14].mxu0 }
 0x1ad   : > { %v5390_v6 = vadd.f32 %v3654_v35, %v3653_v53  ;;  %1835 = vrot.lane.b32.xlu0 %v5384_v42, %s4011_s14  ;;  %v3618_v47 = vpop.f32.mrb[15].mxu0  ;;  %v5430_v56 = vpop.permute.xlu1 %2374  ;;  %vm2482_vm8 = vcmp.gt.f32.partialorder %v5384_v42, 1.0 }
 0x1ae   : > { %v5394_v15 = vadd.f32 %v3618_v47, %v3617_v2  ;;  %1811 = vrot.lane.b32.xlu1 %v5388_v43, %s4011_s14 }
 0x1af   : > { %vm2483_vm5 = vcmp.gt.f32.partialorder %v5390_v6, 1.0 }
 0x1b0   : > { %vm2471_vm9 = vcmp.gt.f32.partialorder %v5394_v15, 1.0 }
 0x1b1   : > { %v3656_v28 = vpop.f32.mrb[8].mxu1  ;;  %1837 = vrot.lane.b32.xlu0 %v5390_v6, %s4011_s14 }
 0x1b2   : > { %v3657_v4 = vpop.f32.mrb[9].mxu1  ;;  %v3620_v45 = vpop.f32.mrb[16].mxu0  ;;  %1813 = vrot.lane.b32.xlu1 %v5394_v15, %s4011_s14 }
 0x1b3   : > { %v5402_v13 = vadd.f32 %v3657_v4, %v3656_v28  ;;  %v3659_v21 = vpop.f32.mrb[10].mxu1  ;;  %v3621_v10 = vpop.f32.mrb[17].mxu0 }
 0x1b4   : > { %v3660_v34 = vpop.f32.mrb[11].mxu1  ;;  %v5406_v48 = vadd.f32 %v3621_v10, %v3620_v45  ;;  %v3623_v36 = vpop.f32.mrb[18].mxu0 }
 0x1b5   : > { %v5408_v52 = vadd.f32 %v3660_v34, %v3659_v21  ;;  %1839 = vrot.lane.b32.xlu0 %v5402_v13, %s4011_s14  ;;  %v3624_v57 = vpop.f32.mrb[19].mxu0  ;;  %v5442_v34 = vpop.permute.xlu1 %2376  ;;  %vm6458_vm2 = vcmp.gt.f32.partialorder %v5402_v13, 1.0 }
 0x1b6   : > { %v5412_v51 = vadd.f32 %v3624_v57, %v3623_v36 }
 0x1b7   : > { %vm6456_vm14 = vcmp.gt.f32.partialorder %v5408_v52, 1.0 }
 0x1b8   : > { %vm6460_vm10 = vcmp.gt.f32.partialorder %v5412_v51, 1.0 }
 0x1b9   : > { %v3662_v59 = vpop.f32.mrb[12].mxu1  ;;  %1841 = vrot.lane.b32.xlu0 %v5408_v52, %s4011_s14 }
 0x1ba   : > { %v3663_v40 = vpop.f32.mrb[13].mxu1  ;;  %v3626_v29 = vpop.f32.mrb[20].mxu0 }
 0x1bb   : > { %v5418_v23 = vadd.f32 %v3663_v40, %v3662_v59  ;;  %v3665_v58 = vpop.f32.mrb[14].mxu1  ;;  %v3627_v33 = vpop.f32.mrb[21].mxu0 }
 0x1bc   : > { %v3666_v32 = vpop.f32.mrb[15].mxu1  ;;  %v5420_v37 = vadd.f32 %v3627_v33, %v3626_v29  ;;  %v3629_v41 = vpop.f32.mrb[22].mxu0 }
 0x1bd   : > { %v5422_v39 = vadd.f32 %v3666_v32, %v3665_v58  ;;  %1843 = vrot.lane.b32.xlu0 %v5418_v23, %s4011_s14  ;;  %v3630_v63 = vpop.f32.mrb[23].mxu0 }
 0x1be   : > { %v5426_v19 = vadd.f32 %v3630_v63, %v3629_v41 }
 0x1bf   : > { %6587 = vst [vmem:[#allocation42_spill] sm:$0xff] %v5422_v39  ;;  %vm6455_vm13 = vcmp.gt.f32.partialorder %v5422_v39, 1.0 }
 0x1c1   : > { %v3668_v5 = vpop.f32.mrb[16].mxu1  ;;  %1845 = vrot.lane.b32.xlu0 %v5422_v39, %s4011_s14 }
 0x1c2   : > { %v3669_v8 = vpop.f32.mrb[17].mxu1  ;;  %v3632_v49 = vpop.f32.mrb[24].mxu0 }
 0x1c3   : > { %v5432_v53 = vadd.f32 %v3669_v8, %v3668_v5  ;;  %v3671_v35 = vpop.f32.mrb[18].mxu1  ;;  %v3633_v2 = vpop.f32.mrb[25].mxu0 }
 0x1c4   : > { %v3672_v47 = vpop.f32.mrb[19].mxu1  ;;  %v5434_v28 = vadd.f32 %v3633_v2, %v3632_v49  ;;  %v3635_v45 = vpop.f32.mrb[26].mxu0 }
 0x1c5   : > { %6588 = vst [vmem:[#allocation40_spill] sm:$0xff] %v5432_v53  ;;  %v5436_v4 = vadd.f32 %v3672_v47, %v3671_v35  ;;  %1815 = vrot.lane.b32.xlu0 %v5406_v48, %s4011_s14  ;;  %v3636_v21 = vpop.f32.mrb[27].mxu0  ;;  %v5454_v5 = vpop.permute.xlu1 %2378 }
 0x1c6   : > { %v5440_v10 = vadd.f32 %v3636_v21, %v3635_v45 }
 0x1c7   : > { %vm6459_vm0 = vcmp.gt.f32.partialorder %v5436_v4, 1.0 }
 0x1c9   : > { %v3674_v36 = vpop.f32.mrb[20].mxu1  ;;  %1847 = vrot.lane.b32.xlu0 %v5432_v53, %s4011_s14  ;;  %v5462_v21 = vpop.permute.xlu1 %2380 }
 0x1ca   : > { %v3675_v57 = vpop.f32.mrb[21].mxu1 }
 0x1cb   : > { %v5446_v59 = vadd.f32 %v3675_v57, %v3674_v36  ;;  %v3638_v40 = vpop.f32.mrb[28].mxu0  ;;  %v3677_v29 = vpop.f32.mrb[22].mxu1 }
 0x1cc   : > { %v3639_v58 = vpop.f32.mrb[29].mxu0  ;;  %v3678_v33 = vpop.f32.mrb[23].mxu1 }
 0x1cd   : > { %v5448_v32 = vadd.f32 %v3639_v58, %v3638_v40  ;;  %v5450_v41 = vadd.f32 %v3678_v33, %v3677_v29  ;;  %v3641_v63 = vpop.f32.mrb[30].mxu0  ;;  %1817 = vrot.lane.b32.xlu0 %v5412_v51, %s4011_s14  ;;  %v5470_v29 = vpop.permute.xlu1 %2382 }
 0x1ce   : > { %v3642_v8 = vpop.f32.mrb[31].mxu0 }
 0x1cf   : > { %6589 = vst [vmem:[#allocation41_spill] sm:$0xff] %v5448_v32  ;;  %v5456_v49 = vadd.f32 %v3642_v8, %v3641_v63 }
 0x1d1   : > { %6590 = vst [vmem:[#allocation45_spill] sm:$0xff] %v5456_v49  ;;  %v3680_v35 = vpop.f32.mrb[24].mxu1  ;;  %1849 = vrot.lane.b32.xlu0 %v5436_v4, %s4011_s14 }
 0x1d2   : > { %v3681_v2 = vpop.f32.mrb[25].mxu1 }
 0x1d3   : > { %v5460_v47 = vadd.f32 %v3681_v2, %v3680_v35  ;;  %v3683_v45 = vpop.f32.mrb[26].mxu1  ;;  %v5478_v2 = vpop.permute.xlu1 %2384 }
 0x1d4   : > { %v3684_v36 = vpop.f32.mrb[27].mxu1 }
 0x1d5   : > { %v5464_v57 = vadd.f32 %v3684_v36, %v3683_v45  ;;  %1819 = vrot.lane.b32.xlu0 %v5420_v37, %s4011_s14 }
 0x1d7   : > { %6591 = vst [vmem:[#allocation44_spill] sm:$0xff] %v5464_v57  ;;  %v5484_v45 = vpop.permute.xlu1 %2386 }
 0x1d9   : > { %v3686_v40 = vpop.f32.mrb[28].mxu1  ;;  %1851 = vrot.lane.b32.xlu0 %v5446_v59, %s4011_s14 }
 0x1da   : > { %v3687_v58 = vpop.f32.mrb[29].mxu1 }
 0x1db   : > { %v5472_v33 = vadd.f32 %v3687_v58, %v3686_v40  ;;  %v3689_v63 = vpop.f32.mrb[30].mxu1  ;;  %v5488_v36 = vpop.permute.xlu1 %2388 }
 0x1dc   : > { %v3690_v8 = vpop.f32.mrb[31].mxu1 }
 0x1dd   : > { %6592 = vst [vmem:[#allocation46_spill] sm:$0xff] %v5472_v33  ;;  %v5474_v35 = vadd.f32 %v3690_v8, %v3689_v63  ;;  %1821 = vrot.lane.b32.xlu0 %v5426_v19, %s4011_s14 }
 0x1df   : > { %6593 = vst [vmem:[#allocation47_spill] sm:$0xff] %v5474_v35  ;;  %v5494_v40 = vpop.permute.xlu1 %2390 }
 0x1e1   : > { %1853 = vrot.lane.b32.xlu0 %v5450_v41, %s4011_s14 }
 0x1e3   : > { %v5498_v58 = vpop.permute.xlu1 %2392 }
 0x1e4   : > { %6594 = vst [vmem:[#allocation48_spill] sm:$0xff] %v5498_v58 }
 0x1e5   : > { %1823 = vrot.lane.b32.xlu0 %v5434_v28, %s4011_s14 }
 0x1e7   : > { %v5504_v63 = vpop.permute.xlu1 %2394 }
 0x1e8   : > { %6595 = vst [vmem:[#allocation49_spill] sm:$0xff] %v5504_v63 }
 0x1e9   : > { %1855 = vrot.lane.b32.xlu0 %v5460_v47, %s4011_s14 }
 0x1eb   : > { %v5508_v8 = vpop.permute.xlu1 %2396 }
 0x1ec   : > { %6596 = vst [vmem:[#allocation50_spill] sm:$0xff] %v5508_v8 }
 0x1ed   : > { %1825 = vrot.lane.b32.xlu0 %v5440_v10, %s4011_s14 }
 0x1f1   : > { %1857 = vrot.lane.b32.xlu0 %v5464_v57, %s4011_s14 }
 0x1f5   : > { %1827 = vrot.lane.b32.xlu0 %v5448_v32, %s4011_s14 }
 0x1f9   : > { %1859 = vrot.lane.b32.xlu0 %v5472_v33, %s4011_s14 }
 0x1fd   : > { %1829 = vrot.lane.b32.xlu0 %v5456_v49, %s4011_s14 }
 0x201   : > { %1861 = vrot.lane.b32.xlu0 %v5474_v35, %s4011_s14 }
 0x208   : > { %v1800_v38 = vpop.permute.xlu1 %1799 }
 0x209   : > { %v1895_v62 = vsub.f32 %v5346_v24, %v1800_v38 }
 0x20b   : > { %v1984_v32 = vadd.f32 %v5511_v18, %v1895_v62  ;;  %v2432_v33 = vsub.f32 %v1895_v62, %v5322_v27 }
 0x20c   : > { %v1802_v57 = vpop.permute.xlu1 %1801 }
 0x20d   : > { %v1896_v49 = vsub.f32 %v5350_v60, %v1802_v57  ;;  %2048 = vrot.lane.b32.xlu0 %v1984_v32, %s4012_s16  ;;  %v2496_v38 = vadd.f32 %v2432_v33, %v5511_v18 }
 0x20f   : > { %v1985_v35 = vadd.f32 %v5511_v18, %v1896_v49  ;;  %v2433_v8 = vsub.f32 %v1896_v49, %v5324_v26  ;;  %v2528_v26 = vsel %vm2464_vm11, %v2496_v38, 1.0 }
 0x210   : > { %v1804_v63 = vpop.permute.xlu1 %1803 }
 0x211   : > { %2050 = vrot.lane.b32.xlu1 %v1985_v35, %s4012_s16  ;;  %v2497_v58 = vadd.f32 %v2433_v8, %v5511_v18  ;;  %v1897_v38 = vsub.f32 %v5358_v17, %v1804_v63 }
 0x213   : > { %v2529_v62 = vsel %vm2465_vm1, %v2497_v58, 1.0 }
 0x214   : > { %2626 = vrot.lane.b32.xlu0 %v2529_v62, %s4012_s16  ;;  %v1806_v27 = vpop.permute.xlu1 %1805 }
 0x215   : > { %2624 = vrot.lane.b32.xlu1 %v2528_v26, %s4012_s16  ;;  %v1898_v33 = vsub.f32 %v5360_v25, %v1806_v27 }
 0x216   : > { %v1832_v32 = vpop.permute.xlu0 %1831 }
 0x217   : > { %v5533_v49 = vsub.f32 %v5366_v61, %v1832_v32  ;;  %v2435_v26 = vsub.f32 %v1898_v33, %v2343_v9 }
 0x218   : > { %v1808_v57 = vpop.permute.xlu1 %1807 }
 0x219   : > { %v2448_v35 = vsub.f32 %v5533_v49, %v5382_v16 }
 0x21a   : > { %v1834_v58 = vpop.permute.xlu0 %1833 }
 0x21b   : > { %v5539_v8 = vsub.f32 %v5372_v31, %v1834_v58  ;;  %v2512_v62 = vadd.f32 %v2448_v35, %v5511_v18  ;;  %v1986_v58 = vadd.f32 %v5511_v18, %v1897_v38  ;;  %v2434_v35 = vsub.f32 %v1897_v38, %v5326_v54 }
 0x21c   : > { %v1810_v24 = vpop.permute.xlu1 %1809  ;;  %v1987_v38 = vadd.f32 %v5511_v18, %v1898_v33 }
 0x21d   : > { %6597 = vst [vmem:[#allocation51_spill] sm:$0xff] %v5539_v8  ;;  %v2449_v32 = vsub.f32 %v5539_v8, %v5400_v11  ;;  %v2544_v27 = vsel %vm2480_vm15, %v2512_v62, 1.0  ;;  %v1900_v9 = vsub.f32 %v5376_v3, %v1810_v24  ;;  %v2498_v24 = vadd.f32 %v2434_v35, %v5511_v18 }
 0x21e   : > { %2656 = vrot.lane.b32.xlu1 %v2544_v27, %s4012_s16  ;;  %v2499_v27 = vadd.f32 %v2435_v26, %v5511_v18 }
 0x21f   : > { %v1836_v60 = vpop.permute.xlu0 %1835  ;;  %v2513_v16 = vadd.f32 %v2449_v32, %v5511_v18 }
 0x220   : > { %v5552_v63 = vpop.permute.xlu1 %1811  ;;  %v5557_v11 = vsub.f32 %v5384_v42, %v1836_v60  ;;  %v2437_v60 = vsub.f32 %v1900_v9, %v5330_v12  ;;  %v2530_v12 = vsel %vm2466_vm4, %v2498_v24, 1.0 }
 0x221   : > { %v2545_v62 = vsel %vm2481_vm3, %v2513_v16, 1.0  ;;  %v2531_v16 = vsel %vm2467_vm7, %v2499_v27, 1.0 }
 0x222   : > { %2658 = vrot.lane.b32.xlu0 %v2545_v62, %s4012_s16  ;;  %2052 = vrot.lane.b32.xlu1 %v1986_v58, %s4012_s16  ;;  %v2450_v32 = vsub.f32 %v5557_v11, %v5416_v7  ;;  %v2501_v35 = vadd.f32 %v2437_v60, %v5511_v18 }
 0x223   : > { %v1838_v8 = vpop.permute.xlu0 %1837 }
 0x224   : > { %v5565_v54 = vsub.f32 %v5390_v6, %v1838_v8  ;;  %v1814_v58 = vpop.permute.xlu1 %1813  ;;  %v2514_v62 = vadd.f32 %v2450_v32, %v5511_v18  ;;  %v2533_v32 = vsel %vm2469_vm6, %v2501_v35, 1.0 }
 0x225   : > { %v1902_v7 = vsub.f32 %v5394_v15, %v1814_v58 }
 0x226   : > { %v2451_v26 = vsub.f32 %v5565_v54, %v5430_v56  ;;  %2630 = vrot.lane.b32.xlu0 %v2531_v16, %s4012_s16  ;;  %2054 = vrot.lane.b32.xlu1 %v1987_v38, %s4012_s16  ;;  %v2546_v16 = vsel %vm2482_vm8, %v2514_v62, 1.0 }
 0x227   : > { %v1840_v8 = vpop.permute.xlu0 %1839  ;;  %v2439_v24 = vsub.f32 %v1902_v7, %v5334_v0 }
 0x228   : > { %v2515_v33 = vadd.f32 %v2451_v26, %v5511_v18  ;;  %v1899_v26 = vsub.f32 %v5370_v30, %v1808_v57 }
 0x22a   : > { %v2547_v56 = vsel %vm2483_vm5, %v2515_v33, 1.0  ;;  %2628 = vrot.lane.b32.xlu1 %v2530_v12, %s4012_s16  ;;  %v1988_v33 = vadd.f32 %v5511_v18, %v1899_v26  ;;  %v2436_v0 = vsub.f32 %v1899_v26, %v5328_v44 }
 0x22b   : > { %v1842_v27 = vpop.permute.xlu0 %1841  ;;  %2662 = vrot.lane.b32.xlu0 %v2547_v56, %s4012_s16  ;;  %v2503_v56 = vadd.f32 %v2439_v24, %v5511_v18 }
 0x22c   : > { %v5592_v38 = vsub.f32 %v5408_v52, %v1842_v27  ;;  %v1989_v27 = vadd.f32 %v5511_v18, %v1900_v9  ;;  %v2500_v24 = vadd.f32 %v2436_v0, %v5511_v18 }
 0x22d   : > { %v2535_v26 = vsel %vm2471_vm9, %v2503_v56, 1.0 }
 0x22e   : > { %v2453_v60 = vsub.f32 %v5592_v38, %v5454_v5  ;;  %2660 = vrot.lane.b32.xlu1 %v2546_v16, %s4012_s16  ;;  %v5611_v5 = vsub.f32 %v5402_v13, %v1840_v8 }
 0x22f   : > { %v1844_v58 = vpop.permute.xlu0 %1843  ;;  %2634 = vrot.lane.b32.xlu0 %v2533_v32, %s4012_s16 }
 0x230   : > { %v2517_v57 = vadd.f32 %v2453_v60, %v5511_v18  ;;  %v2452_v44 = vsub.f32 %v5611_v5, %v5442_v34 }
 0x232   : > { %v2549_v12 = vsel %vm6456_vm14, %v2517_v57, 1.0  ;;  %2056 = vrot.lane.b32.xlu1 %v1988_v33, %s4012_s16  ;;  %v2516_v32 = vadd.f32 %v2452_v44, %v5511_v18  ;;  %v1901_v57 = vsub.f32 %v5388_v43, %v5552_v63  ;;  %vm6457_vm14 = vcmp.gt.f32.partialorder %v5418_v23, 1.0 }
 0x233   : > { %v1846_v35 = vpop.permute.xlu0 %1845  ;;  %2666 = vrot.lane.b32.xlu0 %v2549_v12, %s4012_s16 }
 0x234   : > { %v5619_v62 = vsub.f32 %v5422_v39, %v1846_v35  ;;  %v2548_v33 = vsel %vm6458_vm2, %v2516_v32, 1.0  ;;  %v1990_v56 = vadd.f32 %v5511_v18, %v1901_v57  ;;  %v2438_v35 = vsub.f32 %v1901_v57, %v5332_v14 }
 0x235   : > { %vm6461_vm2 = vcmp.gt.f32.partialorder %v5426_v19, 1.0 }
 0x236   : > { %v2455_v8 = vsub.f32 %v5619_v62, %v5470_v29  ;;  %2058 = vrot.lane.b32.xlu1 %v1989_v27, %s4012_s16  ;;  %v2532_v29 = vsel %vm2468_vm12, %v2500_v24, 1.0  ;;  %v5654_v27 = vsub.f32 %v5418_v23, %v1844_v58  ;;  %v1991_v24 = vadd.f32 %v5511_v18, %v1902_v7 }
 0x237   : > { %v1816_v60 = vpop.permute.xlu0 %1815  ;;  %2638 = vrot.lane.b32.xlu0 %v2535_v26, %s4012_s16 }
 0x238   : > { %v2519_v9 = vadd.f32 %v2455_v8, %v5511_v18  ;;  %v2454_v14 = vsub.f32 %v5654_v27, %v5462_v21 }
 0x23a   : > { %v2551_v34 = vsel %vm6455_vm13, %v2519_v9, 1.0  ;;  %2632 = vrot.lane.b32.xlu1 %v2532_v29, %s4012_s16  ;;  %v2502_v9 = vadd.f32 %v2438_v35, %v5511_v18  ;;  %v1903_v29 = vsub.f32 %v5406_v48, %v1816_v60  ;;  %vm2470_vm13 = vcmp.gt.f32.partialorder %v5388_v43, 1.0 }
 0x23b   : > { %v1848_v16 = vpop.permute.xlu0 %1847  ;;  %2670 = vrot.lane.b32.xlu0 %v2551_v34, %s4012_s16  ;;  %v2518_v32 = vadd.f32 %v2454_v14, %v5511_v18 }
 0x23c   : > { %v5687_v60 = vsub.f32 %v5432_v53, %v1848_v16 }
 0x23e   : > { %2664 = vrot.lane.b32.xlu1 %v2548_v33, %s4012_s16  ;;  %v2440_v33 = vsub.f32 %v1903_v29, %v5336_v20 }
 0x23f   : > { %v1818_v0 = vpop.permute.xlu0 %1817 }
 0x240   : > { %v5649_v12 = vsub.f32 %v5412_v51, %v1818_v0  ;;  %v2550_v0 = vsel %vm6457_vm14, %v2518_v32, 1.0  ;;  %v2504_v20 = vadd.f32 %v2440_v33, %v5511_v18  ;;  %vm6466_vm14 = vcmp.gt.f32.partialorder %v5406_v48, 1.0 }
 0x242   : > { %v2441_v63 = vsub.f32 %v5649_v12, %v5338_v50  ;;  %2060 = vrot.lane.b32.xlu1 %v1990_v56, %s4012_s16 }
 0x243   : > { %v1850_v44 = vpop.permute.xlu0 %1849 }
 0x244   : > { %v5660_v8 = vsub.f32 %v5436_v4, %v1850_v44  ;;  %v2505_v26 = vadd.f32 %v2441_v63, %v5511_v18  ;;  %v1992_v63 = vadd.f32 %v5511_v18, %v1903_v29  ;;  %v2456_v44 = vsub.f32 %v5687_v60, %v5478_v2 }
 0x245   : > { %v2536_v2 = vsel %vm6466_vm14, %v2504_v20, 1.0  ;;  %vm6468_vm14 = vcmp.gt.f32.partialorder %v5460_v47, 1.0 }
 0x246   : > { %v2457_v58 = vsub.f32 %v5660_v8, %v5484_v45  ;;  %v2537_v50 = vsel %vm6460_vm10, %v2505_v26, 1.0  ;;  %2062 = vrot.lane.b32.xlu1 %v1991_v24, %s4012_s16  ;;  %v2534_v45 = vsel %vm2470_vm13, %v2502_v9, 1.0  ;;  %vm6463_vm10 = vcmp.gt.f32.partialorder %v5450_v41, 1.0 }
 0x247   : > { %v1820_v34 = vpop.permute.xlu0 %1819  ;;  %2642 = vrot.lane.b32.xlu0 %v2537_v50, %s4012_s16  ;;  %v2520_v50 = vadd.f32 %v2456_v44, %v5511_v18 }
 0x248   : > { %v2521_v7 = vadd.f32 %v2457_v58, %v5511_v18  ;;  %v5701_v16 = vsub.f32 %v5420_v37, %v1820_v34 }
 0x24a   : > { %v2553_v21 = vsel %vm6459_vm0, %v2521_v7, 1.0  ;;  %2636 = vrot.lane.b32.xlu1 %v2534_v45, %s4012_s16  ;;  %vm6462_vm0 = vcmp.gt.f32.partialorder %v5432_v53, 1.0 }
 0x24b   : > { %v1852_v57 = vpop.permute.xlu0 %1851  ;;  %2674 = vrot.lane.b32.xlu0 %v2553_v21, %s4012_s16 }
 0x24c   : > { %v5718_v9 = vsub.f32 %v5446_v59, %v1852_v57 }
 0x24e   : > { %2668 = vrot.lane.b32.xlu1 %v2550_v0, %s4012_s16 }
 0x24f   : > { %v1822_v56 = vpop.permute.xlu0 %1821 }
 0x250   : > { %v5694_v35 = vsub.f32 %v5426_v19, %v1822_v56 }
 0x252   : > { %v2443_v26 = vsub.f32 %v5694_v35, %v5342_v22  ;;  %2064 = vrot.lane.b32.xlu1 %v1992_v63, %s4012_s16  ;;  %v2442_v22 = vsub.f32 %v5701_v16, %v5340_v1  ;;  %v2552_v1 = vsel %vm6462_vm0, %v2520_v50, 1.0  ;;  %vm6465_vm0 = vcmp.gt.f32.partialorder %v5446_v59, 1.0 }
 0x253   : > { %v1854_v24 = vpop.permute.xlu0 %1853 }
 0x254   : > { %v5707_v14 = vsub.f32 %v5450_v41, %v1854_v24  ;;  %v2507_v58 = vadd.f32 %v2443_v26, %v5511_v18  ;;  %v2506_v57 = vadd.f32 %v2442_v22, %v5511_v18  ;;  %v6600_v26 = vld [vmem:[#allocation48_spill] sm:$0xff] }
 0x256   : > { %6598 = vst [vmem:[#allocation52_spill] sm:$0xff] %v5707_v14  ;;  %v2459_v34 = vsub.f32 %v5707_v14, %v5494_v40  ;;  %v2539_v7 = vsel %vm6461_vm2, %v2507_v58, 1.0  ;;  %2640 = vrot.lane.b32.xlu1 %v2536_v2, %s4012_s16  ;;  %v2458_v40 = vsub.f32 %v5718_v9, %v5488_v36  ;;  %vm6464_vm2 = vcmp.gt.f32.partialorder %v5420_v37, 1.0  ;;  %v6601_v58 = vld [vmem:[#allocation38_spill] sm:$0xff] }
 0x257   : > { %v1824_v29 = vpop.permute.xlu0 %1823  ;;  %2646 = vrot.lane.b32.xlu0 %v2539_v7, %s4012_s16  ;;  %v2538_v36 = vsel %vm6464_vm2, %v2506_v57, 1.0  ;;  %vm2476_vm2 = vcmp.gt.f32.partialorder %v5434_v28, 1.0 }
 0x258   : > { %v2523_v21 = vadd.f32 %v2459_v34, %v5511_v18  ;;  %v1907_v45 = vsub.f32 %v5434_v28, %v1824_v29  ;;  %v2522_v63 = vadd.f32 %v2458_v40, %v5511_v18  ;;  %v6602_v34 = vld [vmem:[#allocation44_spill] sm:$0xff] }
 0x25a   : > { %v2555_v32 = vsel %vm6463_vm10, %v2523_v21, 1.0  ;;  %2672 = vrot.lane.b32.xlu1 %v2552_v1, %s4012_s16  ;;  %v2444_v0 = vsub.f32 %v1907_v45, %v5344_v46  ;;  %v2554_v2 = vsel %vm6465_vm0, %v2522_v63, 1.0  ;;  %vm6467_vm10 = vcmp.gt.f32.partialorder %v5440_v10, 1.0  ;;  %v6604_v21 = vld [vmem:[#allocation49_spill] sm:$0xff] }
 0x25b   : > { %v1856_v33 = vpop.permute.xlu0 %1855  ;;  %2678 = vrot.lane.b32.xlu0 %v2555_v32, %s4012_s16  ;;  %vm6470_vm0 = vcmp.gt.f32.partialorder %v6602_v34, 1.0 }
 0x25c   : > { %v5742_v56 = vsub.f32 %v5460_v47, %v1856_v33  ;;  %v2508_v50 = vadd.f32 %v2444_v0, %v5511_v18  ;;  %v6605_v0 = vld [vmem:[#allocation41_spill] sm:$0xff] }
 0x25e   : > { %6599 = vst [vmem:[#allocation53_spill] sm:$0xff] %v5742_v56  ;;  %2644 = vrot.lane.b32.xlu1 %v2538_v36, %s4012_s16  ;;  %v2460_v24 = vsub.f32 %v5742_v56, %v6600_v26  ;;  %v2540_v32 = vsel %vm2476_vm2, %v2508_v50, 1.0 }
 0x25f   : > { %v1826_v44 = vpop.permute.xlu0 %1825 }
 0x260   : > { %v1908_v20 = vsub.f32 %v5440_v10, %v1826_v44  ;;  %v2524_v57 = vadd.f32 %v2460_v24, %v5511_v18  ;;  %v6606_v44 = vld [vmem:[#allocation37_spill] sm:$0xff] }
 0x262   : > { %v2445_v46 = vsub.f32 %v1908_v20, %v6601_v58  ;;  %2676 = vrot.lane.b32.xlu1 %v2554_v2, %s4012_s16  ;;  %v2556_v24 = vsel %vm6468_vm14, %v2524_v57, 1.0  ;;  %v6607_v2 = vld [vmem:[#allocation46_spill] sm:$0xff]  ;;  %v1995_v57 = vadd.f32 %v5511_v18, %v5694_v35  ;;  %v1997_v35 = vadd.f32 %v5511_v18, %v1908_v20 }
 0x263   : > { %v1858_v22 = vpop.permute.xlu0 %1857  ;;  %vm6469_vm14 = vcmp.gt.f32.partialorder %v6607_v2, 1.0 }
 0x264   : > { %v5758_v7 = vsub.f32 %v6602_v34, %v1858_v22  ;;  %v2509_v29 = vadd.f32 %v2445_v46, %v5511_v18 }
 0x266   : > { %6603 = vst [vmem:[#allocation48_spill] sm:$0xff] %v5758_v7  ;;  %v2461_v1 = vsub.f32 %v5758_v7, %v6604_v21  ;;  %v2541_v40 = vsel %vm6467_vm10, %v2509_v29, 1.0  ;;  %2648 = vrot.lane.b32.xlu1 %v2540_v32, %s4012_s16  ;;  %v1994_v29 = vadd.f32 %v5511_v18, %v5701_v16  ;;  %vm2478_vm10 = vcmp.gt.f32.partialorder %v6605_v0, 1.0  ;;  %v6609_v21 = vld [vmem:[#allocation50_spill] sm:$0xff] }
 0x267   : > { %v1828_v33 = vpop.permute.xlu0 %1827  ;;  %2650 = vrot.lane.b32.xlu0 %v2541_v40, %s4012_s16  ;;  %v1993_v32 = vadd.f32 %v5511_v18, %v5649_v12 }
 0x268   : > { %v1909_v36 = vsub.f32 %v6605_v0, %v1828_v33  ;;  %v2525_v63 = vadd.f32 %v2461_v1, %v5511_v18 }
 0x26a   : > { %v2446_v26 = vsub.f32 %v1909_v36, %v6606_v44  ;;  %v2557_v58 = vsel %vm6470_vm0, %v2525_v63, 1.0  ;;  %2680 = vrot.lane.b32.xlu1 %v2556_v24, %s4012_s16  ;;  %v1996_v63 = vadd.f32 %v5511_v18, %v1907_v45  ;;  %v6610_v44 = vld [vmem:[#allocation45_spill] sm:$0xff]  ;;  %v6611_v24 = vld [vmem:[#allocation43_spill] sm:$0xff] }
 0x26b   : > { %v1860_v46 = vpop.permute.xlu0 %1859  ;;  %2682 = vrot.lane.b32.xlu0 %v2557_v58, %s4012_s16 }
 0x26c   : > { %v5784_v50 = vsub.f32 %v6607_v2, %v1860_v46  ;;  %v2510_v22 = vadd.f32 %v2446_v26, %v5511_v18 }
 0x26e   : > { %6608 = vst [vmem:[#allocation38_spill] sm:$0xff] %v5784_v50  ;;  %v2462_v1 = vsub.f32 %v5784_v50, %v6609_v21  ;;  %v2542_v40 = vsel %vm2478_vm10, %v2510_v22, 1.0  ;;  %v6612_v22 = vld [vmem:[#allocation47_spill] sm:$0xff] }
 0x26f   : > { %2068 = vrot.lane.b32.xlu0 %v1994_v29, %s4012_s16  ;;  %2652 = vrot.lane.b32.xlu1 %v2542_v40, %s4012_s16  ;;  %v1830_v33 = vpop.permute.xlu0 %1829  ;;  %v1998_v29 = vadd.f32 %v5511_v18, %v1909_v36  ;;  %vm2495_vm0 = vcmp.gt.f32.partialorder %v6612_v22, 1.0 }
 0x270   : > { %v2526_v16 = vadd.f32 %v2462_v1, %v5511_v18  ;;  %v5806_v26 = vsub.f32 %v6610_v44, %v1830_v33 }
 0x272   : > { %v2558_v12 = vsel %vm6469_vm14, %v2526_v16, 1.0  ;;  %v2447_v46 = vsub.f32 %v5806_v26, %v6611_v24  ;;  %vm2479_vm14 = vcmp.gt.f32.partialorder %v6610_v44, 1.0  ;;  %v3954_v16 = vld [vmem:[%s4094_s28 + $0x8] sm:$0xff] }
 0x273   : > { %2070 = vrot.lane.b32.xlu0 %v1995_v57, %s4012_s16  ;;  %2066 = vrot.lane.b32.xlu1 %v1993_v32, %s4012_s16  ;;  %v1862_v58 = vpop.permute.xlu0 %1861 }
 0x274   : > { %v5816_v45 = vsub.f32 %v6612_v22, %v1862_v58  ;;  %v2511_v1 = vadd.f32 %v2447_v46, %v5511_v18  ;;  %v3955_v58 = vld [vmem:[%s4094_s28] sm:$0xff] }
 0x276   : > { %6613 = vst [vmem:[#allocation44_spill] sm:$0xff] %v5816_v45  ;;  %v2463_v21 = vsub.f32 %v5816_v45, %v5519_v55  ;;  %v2543_v20 = vsel %vm2479_vm14, %v2511_v1, 1.0 }
 0x277   : > { %2072 = vrot.lane.b32.xlu0 %v1996_v63, %s4012_s16  ;;  %2684 = vrot.lane.b32.xlu1 %v2558_v12, %s4012_s16  ;;  %v6616_v63 = vld [vmem:[#allocation36_spill] sm:$0xff] }
 0x278   : > { %v2527_v40 = vadd.f32 %v2463_v21, %v5511_v18  ;;  %v2241_v12 = vsub.f32 %v6616_v63, %v3954_v16 }
 0x27a   : > { %v2559_v55 = vsel %vm2495_vm0, %v2527_v40, 1.0 }
 0x27b   : > { %2074 = vrot.lane.b32.xlu0 %v1997_v35, %s4012_s16  ;;  %v6617_v35 = vld [vmem:[#allocation39_spill] sm:$0xff] }
 0x27c   : > { %v2240_v24 = vsub.f32 %v6617_v35, %v3955_v58  ;;  %v3956_v58 = vld [vmem:[%s4094_s28 + $0x80] sm:$0xff] }
 0x27e   : > { %v2560_v1 = vsub.f32 %v5511_v18, %v2240_v24 }
 0x27f   : > { %2076 = vrot.lane.b32.xlu0 %v1998_v29, %s4012_s16  ;;  %v5828_v32 = vpop.permute.xlu0 %2048  ;;  %v2561_v29 = vsub.f32 %v5511_v18, %v2241_v12 }
 0x280   : > { %6614 = vst [vmem:[#allocation49_spill] sm:$0xff] %v5828_v32 }
 0x283   : > { %2654 = vrot.lane.b32.xlu0 %v2543_v20, %s4012_s16  ;;  %v5831_v36 = vpop.permute.xlu1 %2050 }
 0x284   : > { %6615 = vst [vmem:[#allocation41_spill] sm:$0xff] %v5831_v36  ;;  %v2256_v36 = vsub.f32 %v5366_v61, %v3956_v58 }
 0x286   : > { %v2627_v57 = vpop.permute.xlu0 %2626  ;;  %v2576_v24 = vsub.f32 %v5511_v18, %v2256_v36 }
 0x287   : > { %2686 = vrot.lane.b32.xlu0 %v2559_v55, %s4012_s16  ;;  %3822 = vrcp.f32 %v2627_v57  ;;  %v2625_v33 = vpop.permute.xlu1 %2624 }
 0x288   : > { %3824 = vrcp.f32 %v2625_v33 }
 0x290   : > { %v2657_v46 = vpop.permute.xlu1 %2656 }
 0x291   : > { %v3823_v21 = vpop.eup %3822  ;;  %3826 = vrcp.f32 %v2657_v46 }
 0x292   : > { %v3825_v20 = vpop.eup %3824  ;;  %v2723_v40 = vmul.f32 %v3823_v21, %v2561_v29  ;;  %v3957_v29 = vld [vmem:[%s4094_s28 + $0x88] sm:$0xff] }
 0x293   : > { %v2721_v55 = vmul.f32 %v3825_v20, %v2560_v1  ;;  %v2257_v21 = vsub.f32 %v5372_v31, %v3957_v29 }
 0x294   : > { %v2659_v57 = vpop.permute.xlu0 %2658  ;;  %v5843_v33 = vpop.permute.xlu1 %2052  ;;  %v2785_v32 = vsub.f32 1.0, %v2723_v40 }
 0x295   : > { %6618 = vst [vmem:[#allocation37_spill] sm:$0xff] %v5843_v33  ;;  %3828 = vrcp.f32 %v2659_v57  ;;  %v2784_v16 = vsub.f32 1.0, %v2721_v55  ;;  %v2577_v57 = vsub.f32 %v5511_v18, %v2257_v21 }
 0x296   : > { %2850 = vrot.lane.b32.xlu0 %v2785_v32, %s4011_s14 }
 0x297   : > { %2848 = vrot.lane.b32.xlu1 %v2784_v16, %s4011_s14  ;;  %v6620_v16 = vld [vmem:[#allocation35_spill] sm:$0xff] }
 0x298   : > { %v2631_v12 = vpop.permute.xlu0 %2630  ;;  %v5849_v46 = vpop.permute.xlu1 %2054  ;;  %v2243_v58 = vsub.f32 %v5360_v25, %v6620_v16 }
 0x299   : > { %6619 = vst [vmem:[#allocation50_spill] sm:$0xff] %v5849_v46  ;;  %3830 = vrcp.f32 %v2631_v12 }
 0x29b   : > { %v3827_v1 = vpop.eup %3826 }
 0x29c   : > { %v2629_v40 = vpop.permute.xlu1 %2628  ;;  %v2753_v55 = vmul.f32 %v3827_v1, %v2576_v24  ;;  %v2563_v24 = vsub.f32 %v5511_v18, %v2243_v58  ;;  %v3958_v1 = vld [vmem:[%s4094_s28 + $0x98] sm:$0xff]  ;;  %v3960_v58 = vld [vmem:[%s4094_s28 + $0x28] sm:$0xff] }
 0x29d   : > { %v2663_v20 = vpop.permute.xlu0 %2662 }
 0x29e   : > { %3832 = vrcp.f32 %v2663_v20  ;;  %v2800_v32 = vsub.f32 1.0, %v2753_v55  ;;  %v2259_v20 = vsub.f32 %v5390_v6, %v3958_v1  ;;  %v3961_v1 = vld [vmem:[%s4094_s28 + $0x90] sm:$0xff] }
 0x29f   : > { %3834 = vrcp.f32 %v2629_v40  ;;  %v3829_v12 = vpop.eup %3828  ;;  %v3959_v40 = vld [vmem:[%s4094_s28 + $0x10] sm:$0xff] }
 0x2a0   : > { %v2661_v36 = vpop.permute.xlu1 %2660  ;;  %2880 = vrot.lane.b32.xlu1 %v2800_v32, %s4011_s14  ;;  %v2755_v29 = vmul.f32 %v3829_v12, %v2577_v57  ;;  %v2242_v55 = vsub.f32 %v5358_v17, %v3959_v40  ;;  %v2579_v57 = vsub.f32 %v5511_v18, %v2259_v20  ;;  %v2245_v12 = vsub.f32 %v5376_v3, %v3960_v58 }
 0x2a1   : > { %v2635_v46 = vpop.permute.xlu0 %2634  ;;  %v2258_v40 = vsub.f32 %v5384_v42, %v3961_v1 }
 0x2a2   : > { %3836 = vrcp.f32 %v2635_v46  ;;  %v2801_v33 = vsub.f32 1.0, %v2755_v29  ;;  %v2562_v29 = vsub.f32 %v5511_v18, %v2242_v55 }
 0x2a3   : > { %3838 = vrcp.f32 %v2661_v36  ;;  %v3831_v21 = vpop.eup %3830  ;;  %v2578_v1 = vsub.f32 %v5511_v18, %v2258_v40 }
 0x2a4   : > { %2882 = vrot.lane.b32.xlu0 %v2801_v33, %s4011_s14  ;;  %v5864_v45 = vpop.permute.xlu1 %2056  ;;  %v2727_v32 = vmul.f32 %v3831_v21, %v2563_v24 }
 0x2a5   : > { %v2667_v16 = vpop.permute.xlu0 %2666  ;;  %6621 = vst [vmem:[#allocation45_spill] sm:$0xff] %v5864_v45 }
 0x2a6   : > { %3840 = vrcp.f32 %v2667_v16  ;;  %v2787_v46 = vsub.f32 1.0, %v2727_v32  ;;  %v2565_v16 = vsub.f32 %v5511_v18, %v2245_v12  ;;  %v3962_v32 = vld [vmem:[%s4094_s28 + $0xa8] sm:$0xff] }
 0x2a7   : > { %v2261_v58 = vsub.f32 %v5408_v52, %v3962_v32 }
 0x2a8   : > { %v3833_v36 = vpop.eup %3832  ;;  %2854 = vrot.lane.b32.xlu0 %v2787_v46, %s4011_s14  ;;  %v5873_v45 = vpop.permute.xlu1 %2058 }
 0x2a9   : > { %v3835_v50 = vpop.eup %3834  ;;  %v2639_v33 = vpop.permute.xlu0 %2638  ;;  %6622 = vst [vmem:[#allocation43_spill] sm:$0xff] %v5873_v45  ;;  %v2759_v24 = vmul.f32 %v3833_v36, %v2579_v57  ;;  %v2581_v12 = vsub.f32 %v5511_v18, %v2261_v58  ;;  %v3963_v36 = vld [vmem:[%s4094_s28 + $0x38] sm:$0xff] }
 0x2aa   : > { %3842 = vrcp.f32 %v2639_v33  ;;  %v2725_v21 = vmul.f32 %v3835_v50, %v2562_v29  ;;  %v2247_v29 = vsub.f32 %v5394_v15, %v3963_v36 }
 0x2ab   : > { %v2803_v20 = vsub.f32 1.0, %v2759_v24 }
 0x2ac   : > { %v3837_v55 = vpop.eup %3836  ;;  %v2786_v7 = vsub.f32 1.0, %v2725_v21  ;;  %v2633_v14 = vpop.permute.xlu1 %2632 }
 0x2ad   : > { %v3839_v56 = vpop.eup %3838  ;;  %2886 = vrot.lane.b32.xlu0 %v2803_v20, %s4011_s14  ;;  %v2671_v46 = vpop.permute.xlu0 %2670  ;;  %v2731_v45 = vmul.f32 %v3837_v55, %v2565_v16  ;;  %v3965_v16 = vld [vmem:[%s4094_s28 + $0x20] sm:$0xff] }
 0x2ae   : > { %3844 = vrcp.f32 %v2671_v46  ;;  %2852 = vrot.lane.b32.xlu1 %v2786_v7, %s4011_s14  ;;  %v2757_v50 = vmul.f32 %v3839_v56, %v2578_v1  ;;  %v3964_v56 = vld [vmem:[%s4094_s28 + $0xb8] sm:$0xff]  ;;  %v2244_v32 = vsub.f32 %v5370_v30, %v3965_v16 }
 0x2af   : > { %3846 = vrcp.f32 %v2633_v14  ;;  %v2789_v57 = vsub.f32 1.0, %v2731_v45  ;;  %v2567_v14 = vsub.f32 %v5511_v18, %v2247_v29  ;;  %v2263_v45 = vsub.f32 %v5422_v39, %v3964_v56 }
 0x2b0   : > { %v3841_v40 = vpop.eup %3840  ;;  %v2802_v33 = vsub.f32 1.0, %v2757_v50  ;;  %v2665_v24 = vpop.permute.xlu1 %2664  ;;  %v3966_v50 = vld [vmem:[%s4094_s28 + $0xa0] sm:$0xff]  ;;  %v2564_v36 = vsub.f32 %v5511_v18, %v2244_v32 }
 0x2b1   : > { %2858 = vrot.lane.b32.xlu0 %v2789_v57, %s4011_s14  ;;  %v2763_v21 = vmul.f32 %v3841_v40, %v2581_v12  ;;  %3848 = vrcp.f32 %v2665_v24  ;;  %v2583_v46 = vsub.f32 %v5511_v18, %v2263_v45  ;;  %v2260_v57 = vsub.f32 %v5402_v13, %v3966_v50 }
 0x2b2   : > { %2884 = vrot.lane.b32.xlu1 %v2802_v33, %s4011_s14 }
 0x2b3   : > { %v2805_v7 = vsub.f32 1.0, %v2763_v21 }
 0x2b4   : > { %v3843_v20 = vpop.eup %3842  ;;  %v5892_v58 = vpop.permute.xlu1 %2060 }
 0x2b5   : > { %2890 = vrot.lane.b32.xlu0 %v2805_v7, %s4011_s14  ;;  %6623 = vst [vmem:[#allocation36_spill] sm:$0xff] %v5892_v58  ;;  %v2735_v55 = vmul.f32 %v3843_v20, %v2567_v14  ;;  %v2580_v7 = vsub.f32 %v5511_v18, %v2260_v57  ;;  %v3968_v57 = vld [vmem:[%s4094_s28 + $0xb0] sm:$0xff] }
 0x2b7   : > { %v2791_v1 = vsub.f32 1.0, %v2735_v55  ;;  %v3967_v55 = vld [vmem:[%s4094_s28 + $0x30] sm:$0xff] }
 0x2b8   : > { %v3845_v12 = vpop.eup %3844  ;;  %v5899_v40 = vpop.permute.xlu1 %2062 }
 0x2b9   : > { %v3847_v29 = vpop.eup %3846  ;;  %2862 = vrot.lane.b32.xlu0 %v2791_v1, %s4011_s14  ;;  %6624 = vst [vmem:[#allocation39_spill] sm:$0xff] %v5899_v40  ;;  %v2767_v33 = vmul.f32 %v3845_v12, %v2583_v46  ;;  %v2246_v1 = vsub.f32 %v5388_v43, %v3967_v55  ;;  %v2643_v46 = vpop.permute.xlu0 %2642  ;;  %v2262_v12 = vsub.f32 %v5418_v23, %v3968_v57  ;;  %v3969_v55 = vld [vmem:[%s4094_s28 + $0x40] sm:$0xff] }
 0x2ba   : > { %v2729_v24 = vmul.f32 %v3847_v29, %v2564_v36 }
 0x2bb   : > { %v2807_v21 = vsub.f32 1.0, %v2767_v33  ;;  %v3849_v14 = vpop.eup %3848  ;;  %v2566_v36 = vsub.f32 %v5511_v18, %v2246_v1  ;;  %v2248_v1 = vsub.f32 %v5406_v48, %v3969_v55 }
 0x2bc   : > { %v2788_v56 = vsub.f32 1.0, %v2729_v24  ;;  %v2637_v45 = vpop.permute.xlu1 %2636  ;;  %v2761_v20 = vmul.f32 %v3849_v14, %v2580_v7  ;;  %v2582_v7 = vsub.f32 %v5511_v18, %v2262_v12 }
 0x2bd   : > { %2894 = vrot.lane.b32.xlu0 %v2807_v21, %s4011_s14  ;;  %3850 = vrcp.f32 %v2637_v45  ;;  %v2675_v21 = vpop.permute.xlu0 %2674  ;;  %v2568_v12 = vsub.f32 %v5511_v18, %v2248_v1 }
 0x2be   : > { %2856 = vrot.lane.b32.xlu1 %v2788_v56, %s4011_s14  ;;  %v2804_v16 = vsub.f32 1.0, %v2761_v20 }
 0x2c0   : > { %v2669_v32 = vpop.permute.xlu1 %2668 }
 0x2c1   : > { %3852 = vrcp.f32 %v2669_v32 }
 0x2c2   : > { %2888 = vrot.lane.b32.xlu1 %v2804_v16, %s4011_s14 }
 0x2c4   : > { %v5907_v50 = vpop.permute.xlu1 %2064 }
 0x2c5   : > { %6625 = vst [vmem:[#allocation35_spill] sm:$0xff] %v5907_v50 }
 0x2c7   : > { %v3851_v29 = vpop.eup %3850 }
 0x2c8   : > { %v2641_v33 = vpop.permute.xlu1 %2640  ;;  %v2733_v24 = vmul.f32 %v3851_v29, %v2566_v36  ;;  %v3970_v36 = vld [vmem:[%s4094_s28 + $0xc0] sm:$0xff] }
 0x2c9   : > { %3854 = vrcp.f32 %v2641_v33  ;;  %v2647_v16 = vpop.permute.xlu0 %2646 }
 0x2ca   : > { %v2790_v56 = vsub.f32 1.0, %v2733_v24  ;;  %3856 = vrcp.f32 %v2643_v46  ;;  %v2264_v46 = vsub.f32 %v5432_v53, %v3970_v36 }
 0x2cb   : > { %v3853_v14 = vpop.eup %3852 }
 0x2cc   : > { %v2673_v45 = vpop.permute.xlu1 %2672  ;;  %v2765_v20 = vmul.f32 %v3853_v14, %v2582_v7  ;;  %2860 = vrot.lane.b32.xlu1 %v2790_v56, %s4011_s14  ;;  %v3971_v14 = vld [vmem:[%s4094_s28 + $0x48] sm:$0xff] }
 0x2cd   : > { %3858 = vrcp.f32 %v2673_v45  ;;  %v2679_v33 = vpop.permute.xlu0 %2678  ;;  %v2249_v56 = vsub.f32 %v5412_v51, %v3971_v14  ;;  %v3972_v45 = vld [vmem:[%s4094_s28 + $0x50] sm:$0xff] }
 0x2ce   : > { %v2806_v32 = vsub.f32 1.0, %v2765_v20  ;;  %v2250_v20 = vsub.f32 %v5420_v37, %v3972_v45 }
 0x2cf   : > { %v2569_v36 = vsub.f32 %v5511_v18, %v2249_v56  ;;  %v3974_v56 = vld [vmem:[%s4094_s28 + $0xd0] sm:$0xff] }
 0x2d0   : > { %v2645_v57 = vpop.permute.xlu1 %2644  ;;  %2892 = vrot.lane.b32.xlu1 %v2806_v32, %s4011_s14  ;;  %v2570_v14 = vsub.f32 %v5511_v18, %v2250_v20 }
 0x2d1   : > { %3860 = vrcp.f32 %v2645_v57 }
 0x2d2   : > { %3862 = vrcp.f32 %v2675_v21  ;;  %v2584_v21 = vsub.f32 %v5511_v18, %v2264_v46 }
 0x2d3   : > { %v3855_v29 = vpop.eup %3854 }
 0x2d4   : > { %v2677_v24 = vpop.permute.xlu1 %2676  ;;  %v2737_v7 = vmul.f32 %v3855_v29, %v2568_v12  ;;  %v3857_v55 = vpop.eup %3856  ;;  %v3973_v29 = vld [vmem:[%s4094_s28 + $0xc8] sm:$0xff] }
 0x2d5   : > { %3864 = vrcp.f32 %v2677_v24  ;;  %v2265_v24 = vsub.f32 %v5436_v4, %v3973_v29  ;;  %v2739_v46 = vmul.f32 %v3857_v55, %v2569_v36  ;;  %v3975_v29 = vld [vmem:[%s4094_s28 + $0x60] sm:$0xff] }
 0x2d6   : > { %v2792_v32 = vsub.f32 1.0, %v2737_v7  ;;  %3866 = vrcp.f32 %v2647_v16 }
 0x2d7   : > { %v3859_v1 = vpop.eup %3858 }
 0x2d8   : > { %v2649_v50 = vpop.permute.xlu1 %2648  ;;  %2864 = vrot.lane.b32.xlu1 %v2792_v32, %s4011_s14  ;;  %v2769_v12 = vmul.f32 %v3859_v1, %v2584_v21  ;;  %v2585_v32 = vsub.f32 %v5511_v18, %v2265_v24  ;;  %v2266_v21 = vsub.f32 %v5446_v59, %v3974_v56  ;;  %v2793_v1 = vsub.f32 1.0, %v2739_v46 }
 0x2d9   : > { %v2651_v57 = vpop.permute.xlu0 %2650  ;;  %3868 = vrcp.f32 %v2649_v50 }
 0x2da   : > { %v2808_v45 = vsub.f32 1.0, %v2769_v12  ;;  %3870 = vrcp.f32 %v2679_v33  ;;  %v2252_v12 = vsub.f32 %v5434_v28, %v3975_v29  ;;  %v2586_v24 = vsub.f32 %v5511_v18, %v2266_v21 }
 0x2db   : > { %v3861_v7 = vpop.eup %3860 }
 0x2dc   : > { %v3863_v40 = vpop.eup %3862  ;;  %v2681_v53 = vpop.permute.xlu1 %2680  ;;  %v2741_v16 = vmul.f32 %v3861_v7, %v2570_v14  ;;  %2896 = vrot.lane.b32.xlu0 %v2808_v45, %s4011_s14  ;;  %v3976_v14 = vld [vmem:[%s4094_s28 + $0x58] sm:$0xff]  ;;  %v2572_v46 = vsub.f32 %v5511_v18, %v2252_v12 }
 0x2dd   : > { %v2683_v58 = vpop.permute.xlu0 %2682  ;;  %v2771_v20 = vmul.f32 %v3863_v40, %v2585_v32  ;;  %3872 = vrcp.f32 %v2681_v53  ;;  %v2251_v33 = vsub.f32 %v5426_v19, %v3976_v14 }
 0x2de   : > { %v2794_v50 = vsub.f32 1.0, %v2741_v16 }
 0x2df   : > { %v3865_v55 = vpop.eup %3864  ;;  %v2809_v7 = vsub.f32 1.0, %v2771_v20  ;;  %v2571_v21 = vsub.f32 %v5511_v18, %v2251_v33 }
 0x2e0   : > { %2868 = vrot.lane.b32.xlu1 %v2794_v50, %s4011_s14  ;;  %2866 = vrot.lane.b32.xlu0 %v2793_v1, %s4011_s14  ;;  %v3867_v40 = vpop.eup %3866  ;;  %v2773_v45 = vmul.f32 %v3865_v55, %v2586_v24  ;;  %v3977_v50 = vld [vmem:[%s4094_s28 + $0xd8] sm:$0xff]  ;;  %v3978_v55 = vld [vmem:[%s4094_s28 + $0x70] sm:$0xff] }
 0x2e1   : > { %v5936_v36 = vpop.permute.xlu0 %2068  ;;  %v2653_v39 = vpop.permute.xlu1 %2652  ;;  %v2743_v29 = vmul.f32 %v3867_v40, %v2571_v21  ;;  %v2254_v12 = vsub.f32 %v6605_v0, %v3978_v55 }
 0x2e2   : > { %3874 = vrcp.f32 %v2653_v39  ;;  %v2267_v39 = vsub.f32 %v5450_v41, %v3977_v50  ;;  %v2810_v1 = vsub.f32 1.0, %v2773_v45 }
 0x2e3   : > { %v3869_v16 = vpop.eup %3868  ;;  %3876 = vrcp.f32 %v2651_v57  ;;  %v2795_v40 = vsub.f32 1.0, %v2743_v29 }
 0x2e4   : > { %2898 = vrot.lane.b32.xlu0 %v2809_v7, %s4011_s14  ;;  %v2745_v56 = vmul.f32 %v3869_v16, %v2572_v46  ;;  %v3871_v24 = vpop.eup %3870  ;;  %v2587_v33 = vsub.f32 %v5511_v18, %v2267_v39  ;;  %v3979_v7 = vld [vmem:[%s4094_s28 + $0xe0] sm:$0xff]  ;;  %3878 = vrcp.f32 %v2683_v58  ;;  %v3980_v39 = vld [vmem:[%s4094_s28 + $0x68] sm:$0xff] }
 0x2e5   : > { %v5944_v32 = vpop.permute.xlu0 %2070  ;;  %v5947_v53 = vpop.permute.xlu1 %2066  ;;  %v2268_v46 = vsub.f32 %v5460_v47, %v3979_v7  ;;  %v2253_v55 = vsub.f32 %v5440_v10, %v3980_v39 }
 0x2e6   : > { %v2796_v20 = vsub.f32 1.0, %v2745_v56  ;;  %v2775_v16 = vmul.f32 %v3871_v24, %v2587_v33  ;;  %v2574_v56 = vsub.f32 %v5511_v18, %v2254_v12 }
 0x2e7   : > { %v3873_v57 = vpop.eup %3872  ;;  %v2573_v12 = vsub.f32 %v5511_v18, %v2253_v55 }
 0x2e8   : > { %2900 = vrot.lane.b32.xlu0 %v2810_v1, %s4011_s14  ;;  %2872 = vrot.lane.b32.xlu1 %v2796_v20, %s4011_s14  ;;  %v2588_v20 = vsub.f32 %v5511_v18, %v2268_v46  ;;  %v2811_v58 = vsub.f32 1.0, %v2775_v16 }
 0x2e9   : > { %v5954_v14 = vpop.permute.xlu0 %2072  ;;  %v2685_v45 = vpop.permute.xlu1 %2684 }
 0x2ea   : > { %3880 = vrcp.f32 %v2685_v45  ;;  %v2777_v29 = vmul.f32 %v3873_v57, %v2588_v20 }
 0x2ec   : > { %v3875_v21 = vpop.eup %3874  ;;  %2870 = vrot.lane.b32.xlu0 %v2795_v40, %s4011_s14  ;;  %v3981_v40 = vld [vmem:[%s4094_s28 + $0xe8] sm:$0xff] }
 0x2ed   : > { %v5962_v50 = vpop.permute.xlu0 %2074  ;;  %v2749_v1 = vmul.f32 %v3875_v21, %v2574_v56  ;;  %v3877_v24 = vpop.eup %3876  ;;  %v2269_v46 = vsub.f32 %v6602_v34, %v3981_v40  ;;  %v2812_v56 = vsub.f32 1.0, %v2777_v29  ;;  %v3983_v40 = vld [vmem:[%s4094_s28 + $0x78] sm:$0xff] }
 0x2ee   : > { %v2747_v21 = vmul.f32 %v3877_v24, %v2573_v12  ;;  %v3879_v45 = vpop.eup %3878  ;;  %v2255_v29 = vsub.f32 %v6610_v44, %v3983_v40 }
 0x2ef   : > { %v2798_v7 = vsub.f32 1.0, %v2749_v1  ;;  %v2589_v57 = vsub.f32 %v5511_v18, %v2269_v46  ;;  %v3982_v1 = vld [vmem:[%s4094_s28 + $0xf0] sm:$0xff] }
 0x2f0   : > { %2902 = vrot.lane.b32.xlu0 %v2811_v58, %s4011_s14  ;;  %v2270_v20 = vsub.f32 %v6607_v2, %v3982_v1  ;;  %v2797_v39 = vsub.f32 1.0, %v2747_v21 }
 0x2f1   : > { %v5968_v33 = vpop.permute.xlu0 %2076  ;;  %2876 = vrot.lane.b32.xlu1 %v2798_v7, %s4011_s14  ;;  %v2779_v58 = vmul.f32 %v3879_v45, %v2589_v57  ;;  %v1999_v45 = vadd.f32 %v5511_v18, %v5806_v26 }
 0x2f2   : > { %6626 = vst [vmem:[#allocation54_spill] sm:$0xff] %v5968_v33  ;;  %v2590_v55 = vsub.f32 %v5511_v18, %v2270_v20  ;;  %v2000_v20 = vadd.f32 %v5511_v18, %v5533_v49  ;;  %v3984_v49 = vld [vmem:[%s4094_s28 + $0xf8] sm:$0xff] }
 0x2f3   : > { %v2813_v24 = vsub.f32 1.0, %v2779_v58 }
 0x2f4   : > { %2904 = vrot.lane.b32.xlu0 %v2812_v56, %s4011_s14  ;;  %v3881_v7 = vpop.eup %3880  ;;  %v2575_v56 = vsub.f32 %v5511_v18, %v2255_v29  ;;  %v2271_v29 = vsub.f32 %v6612_v22, %v3984_v49 }
 0x2f5   : > { %v2655_v16 = vpop.permute.xlu0 %2654  ;;  %v2781_v12 = vmul.f32 %v3881_v7, %v2590_v55  ;;  %v2002_v55 = vadd.f32 %v5511_v18, %v5557_v11 }
 0x2f6   : > { %3882 = vrcp.f32 %v2655_v16  ;;  %v2591_v11 = vsub.f32 %v5511_v18, %v2271_v29 }
 0x2f7   : > { %v2814_v16 = vsub.f32 1.0, %v2781_v12  ;;  %v2003_v12 = vadd.f32 %v5511_v18, %v5565_v54 }
 0x2f8   : > { %2874 = vrot.lane.b32.xlu0 %v2797_v39, %s4011_s14 }
 0x2f9   : > { %v2687_v39 = vpop.permute.xlu0 %2686 }
 0x2fa   : > { %3884 = vrcp.f32 %v2687_v39 }
 0x2fc   : > { %2906 = vrot.lane.b32.xlu0 %v2813_v24, %s4011_s14 }
 0x300   : > { %v3883_v46 = vpop.eup %3882  ;;  %2908 = vrot.lane.b32.xlu0 %v2814_v16, %s4011_s14  ;;  %v2004_v16 = vadd.f32 %v5511_v18, %v5611_v5 }
 0x301   : > { %v2751_v33 = vmul.f32 %v3883_v46, %v2575_v56 }
 0x303   : > { %v2799_v21 = vsub.f32 1.0, %v2751_v33  ;;  %v6627_v33 = vld [vmem:[#allocation51_spill] sm:$0xff] }
 0x304   : > { %v2001_v58 = vadd.f32 %v5511_v18, %v6627_v33  ;;  %v3885_v46 = vpop.eup %3884  ;;  %v2005_v33 = vadd.f32 %v5511_v18, %v5592_v38  ;;  %v2007_v38 = vadd.f32 %v5511_v18, %v5619_v62  ;;  %v2009_v62 = vadd.f32 %v5511_v18, %v5660_v8  ;;  %v6629_v8 = vld [vmem:[#allocation53_spill] sm:$0xff] }
 0x305   : > { %2878 = vrot.lane.b32.xlu0 %v2799_v21, %s4011_s14  ;;  %v2783_v21 = vmul.f32 %v3885_v46, %v2591_v11 }
 0x308   : > { %v2851_v26 = vpop.permute.xlu0 %2850 }
 0x309   : > { %2078 = vrot.lane.b32.xlu0 %v1999_v45, %s4012_s16  ;;  %v2849_v57 = vpop.permute.xlu1 %2848  ;;  %v2945_v39 = vsel %vm2465_vm1, %v2851_v26, 0.0  ;;  %v2006_v26 = vadd.f32 %v5511_v18, %v5654_v27  ;;  %v2008_v27 = vadd.f32 %v5511_v18, %v5687_v60  ;;  %v6628_v60 = vld [vmem:[#allocation52_spill] sm:$0xff]  ;;  %vm6632_vm1 = vcmp.gt.f32.partialorder %v5406_v48, 1.0 }
 0x30a   : > { %v2944_v1 = vsel %vm2464_vm11, %v2849_v57, 0.0  ;;  %v2815_v57 = vsub.f32 1.0, %v2783_v21  ;;  %v2011_v11 = vadd.f32 %v5511_v18, %v6628_v60  ;;  %vm6634_vm11 = vcmp.gt.f32.partialorder %v5412_v51, 1.0 }
 0x30b   : > { %3008 = vrot.lane.b32.xlu1 %v2944_v1, %s4012_s16 }
 0x30d   : > { %2080 = vrot.lane.b32.xlu0 %v2000_v20, %s4012_s16 }
 0x311   : > { %2082 = vrot.lane.b32.xlu0 %v2001_v58, %s4012_s16 }
 0x312   : > { %v2881_v7 = vpop.permute.xlu1 %2880 }
 0x313   : > { %v2960_v40 = vsel %vm2480_vm15, %v2881_v7, 0.0  ;;  %vm6635_vm15 = vcmp.gt.f32.partialorder %v5420_v37, 1.0 }
 0x314   : > { %3040 = vrot.lane.b32.xlu1 %v2960_v40, %s4012_s16 }
 0x315   : > { %2084 = vrot.lane.b32.xlu0 %v2002_v55, %s4012_s16 }
 0x316   : > { %v2883_v24 = vpop.permute.xlu0 %2882 }
 0x317   : > { %v2961_v56 = vsel %vm2481_vm3, %v2883_v24, 0.0  ;;  %vm6636_vm3 = vcmp.gt.f32.partialorder %v5436_v4, 1.0 }
 0x318   : > { %3042 = vrot.lane.b32.xlu1 %v2961_v56, %s4012_s16 }
 0x319   : > { %2086 = vrot.lane.b32.xlu0 %v2003_v12, %s4012_s16  ;;  %v2010_v12 = vadd.f32 %v5511_v18, %v5718_v9 }
 0x31a   : > { %v2855_v1 = vpop.permute.xlu0 %2854 }
 0x31b   : > { %v2947_v58 = vsel %vm2467_vm7, %v2855_v1, 0.0  ;;  %vm6637_vm7 = vcmp.gt.f32.partialorder %v5426_v19, 1.0 }
 0x31d   : > { %2088 = vrot.lane.b32.xlu0 %v2004_v16, %s4012_s16 }
 0x31f   : > { %v2887_v7 = vpop.permute.xlu0 %2886 }
 0x320   : > { %v2853_v45 = vpop.permute.xlu1 %2852  ;;  %v2963_v55 = vsel %vm2483_vm5, %v2887_v7, 0.0  ;;  %vm6639_vm5 = vcmp.gt.f32.partialorder %v5440_v10, 1.0 }
 0x321   : > { %v2946_v54 = vsel %vm2466_vm4, %v2853_v45, 0.0  ;;  %2910 = vrot.lane.b32.xlu0 %v2815_v57, %s4011_s14  ;;  %v2012_v57 = vadd.f32 %v5511_v18, %v6629_v8  ;;  %vm6638_vm4 = vcmp.gt.f32.partialorder %v5450_v41, 1.0 }
 0x322   : > { %3012 = vrot.lane.b32.xlu1 %v2946_v54, %s4012_s16  ;;  %v6630_v54 = vld [vmem:[#allocation48_spill] sm:$0xff] }
 0x323   : > { %v2859_v29 = vpop.permute.xlu0 %2858  ;;  %v2013_v1 = vadd.f32 %v5511_v18, %v6630_v54 }
 0x324   : > { %v2885_v20 = vpop.permute.xlu1 %2884  ;;  %v2949_v24 = vsel %vm2469_vm6, %v2859_v29, 0.0  ;;  %vm6640_vm6 = vcmp.gt.f32.partialorder %v6602_v34, 1.0 }
 0x325   : > { %v2962_v5 = vsel %vm2482_vm8, %v2885_v20, 0.0  ;;  %3010 = vrot.lane.b32.xlu0 %v2945_v39, %s4012_s16  ;;  %v6631_v39 = vld [vmem:[#allocation38_spill] sm:$0xff]  ;;  %vm6641_vm8 = vcmp.gt.f32.partialorder %v5402_v13, 1.0 }
 0x326   : > { %3044 = vrot.lane.b32.xlu1 %v2962_v5, %s4012_s16  ;;  %v2014_v5 = vadd.f32 %v5511_v18, %v6631_v39 }
 0x327   : > { %v2891_v56 = vpop.permute.xlu0 %2890 }
 0x329   : > { %2090 = vrot.lane.b32.xlu0 %v2005_v33, %s4012_s16 }
 0x32a   : > { %3014 = vrot.lane.b32.xlu1 %v2947_v58, %s4012_s16 }
 0x32b   : > { %v2863_v45 = vpop.permute.xlu0 %2862 }
 0x32c   : > { %v2951_v9 = vsel %vm2471_vm9, %v2863_v45, 0.0  ;;  %vm6642_vm9 = vcmp.gt.f32.partialorder %v5408_v52, 1.0 }
 0x32d   : > { %2092 = vrot.lane.b32.xlu0 %v2006_v26, %s4012_s16  ;;  %v6633_v26 = vld [vmem:[#allocation44_spill] sm:$0xff] }
 0x32e   : > { %3046 = vrot.lane.b32.xlu1 %v2963_v55, %s4012_s16  ;;  %v2015_v55 = vadd.f32 %v5511_v18, %v6633_v26 }
 0x32f   : > { %v2895_v33 = vpop.permute.xlu0 %2894 }
 0x330   : > { %v2857_v40 = vpop.permute.xlu1 %2856 }
 0x331   : > { %v2948_v49 = vsel %vm2468_vm12, %v2857_v40, 0.0  ;;  %2094 = vrot.lane.b32.xlu0 %v2007_v38, %s4012_s16 }
 0x332   : > { %3016 = vrot.lane.b32.xlu1 %v2948_v49, %s4012_s16 }
 0x334   : > { %v2889_v46 = vpop.permute.xlu1 %2888 }
 0x335   : > { %2096 = vrot.lane.b32.xlu0 %v2008_v27, %s4012_s16 }
 0x336   : > { %3018 = vrot.lane.b32.xlu1 %v2949_v24, %s4012_s16 }
 0x339   : > { %2098 = vrot.lane.b32.xlu0 %v2009_v62, %s4012_s16 }
 0x33d   : > { %2100 = vrot.lane.b32.xlu0 %v2010_v12, %s4012_s16 }
 0x33e   : > { %v2861_v16 = vpop.permute.xlu1 %2860 }
 0x33f   : > { %v2950_v21 = vsel %vm2470_vm13, %v2861_v16, 0.0  ;;  %vm6643_vm13 = vcmp.gt.f32.partialorder %v5418_v23, 1.0 }
 0x340   : > { %3020 = vrot.lane.b32.xlu1 %v2950_v21, %s4012_s16 }
 0x341   : > { %2102 = vrot.lane.b32.xlu0 %v2011_v11, %s4012_s16 }
 0x342   : > { %v2893_v20 = vpop.permute.xlu1 %2892 }
 0x344   : > { %3022 = vrot.lane.b32.xlu1 %v2951_v9, %s4012_s16 }
 0x345   : > { %2104 = vrot.lane.b32.xlu0 %v2012_v57, %s4012_s16 }
 0x349   : > { %2106 = vrot.lane.b32.xlu0 %v2013_v1, %s4012_s16 }
 0x34a   : > { %v2865_v58 = vpop.permute.xlu1 %2864 }
 0x34b   : > { %v2952_v7 = vsel %vm6632_vm1, %v2865_v58, 0.0  ;;  %vm6650_vm1 = vcmp.gt.f32.partialorder %v6607_v2, 1.0 }
 0x34c   : > { %3024 = vrot.lane.b32.xlu1 %v2952_v7, %s4012_s16 }
 0x34d   : > { %2108 = vrot.lane.b32.xlu0 %v2014_v5, %s4012_s16 }
 0x34e   : > { %v2897_v38 = vpop.permute.xlu0 %2896 }
 0x351   : > { %2110 = vrot.lane.b32.xlu0 %v2015_v55, %s4012_s16 }
 0x352   : > { %v2867_v40 = vpop.permute.xlu0 %2866  ;;  %v2869_v29 = vpop.permute.xlu1 %2868 }
 0x353   : > { %v2953_v49 = vsel %vm6634_vm11, %v2867_v40, 0.0  ;;  %v2954_v24 = vsel %vm6635_vm15, %v2869_v29, 0.0  ;;  %vm345_vm11 = vcmask 0  }
 0x354   : > { %3026 = vrot.lane.b32.xlu1 %v2953_v49, %s4012_s16  ;;  %v2964_v49 = vsel %vm6641_vm8, %v2889_v46, 0.0  ;;  %v6644_v46 = vld [vmem:[#allocation42_spill] sm:$0xff] }
 0x356   : > { %v2899_v27 = vpop.permute.xlu0 %2898 }
 0x357   : > { %v2969_v62 = vsel %vm6636_vm3, %v2899_v27, 0.0  ;;  %v2965_v27 = vsel %vm6642_vm9, %v2891_v56, 0.0  ;;  %v1968_v56 = vsub.f32 %v5511_v18, %v5366_v61 }
 0x358   : > { %3058 = vrot.lane.b32.xlu0 %v2969_v62, %s4012_s16  ;;  %3028 = vrot.lane.b32.xlu1 %v2954_v24, %s4012_s16  ;;  %v2966_v62 = vsel %vm6643_vm13, %v2893_v20, 0.0  ;;  %v6646_v20 = vld [vmem:[#allocation40_spill] sm:$0xff] }
 0x359   : > { %vm6647_vm12 = vcmp.gt.f32.partialorder %v6646_v20, 1.0 }
 0x35a   : > { %v2901_v12 = vpop.permute.xlu0 %2900  ;;  %v2873_v16 = vpop.permute.xlu1 %2872 }
 0x35b   : > { %v2956_v45 = vsel %vm2476_vm2, %v2873_v16, 0.0  ;;  %vm6648_vm2 = vcmp.gt.f32.partialorder %v5446_v59, 1.0 }
 0x35e   : > { %v2871_v60 = vpop.permute.xlu0 %2870 }
 0x35f   : > { %v2955_v11 = vsel %vm6637_vm7, %v2871_v60, 0.0 }
 0x360   : > { %3030 = vrot.lane.b32.xlu1 %v2955_v11, %s4012_s16 }
 0x362   : > { %v2903_v21 = vpop.permute.xlu0 %2902 }
 0x363   : > { %v2971_v8 = vsel %vm6638_vm4, %v2903_v21, 0.0  ;;  %v2877_v1 = vpop.permute.xlu1 %2876 }
 0x364   : > { %3062 = vrot.lane.b32.xlu0 %v2971_v8, %s4012_s16  ;;  %3032 = vrot.lane.b32.xlu1 %v2956_v45, %s4012_s16  ;;  %v2958_v5 = vsel %vm2478_vm10, %v2877_v1, 0.0  ;;  %vm6649_vm10 = vcmp.gt.f32.partialorder %v5460_v47, 1.0 }
 0x366   : > { %v2905_v57 = vpop.permute.xlu0 %2904 }
 0x36a   : > { %v2875_v9 = vpop.permute.xlu0 %2874 }
 0x36b   : > { %v2957_v54 = vsel %vm6639_vm5, %v2875_v9, 0.0 }
 0x36c   : > { %3034 = vrot.lane.b32.xlu1 %v2957_v54, %s4012_s16  ;;  %v2968_v54 = vsel %vm6647_vm12, %v2897_v38, 0.0  ;;  %v1970_v38 = vsub.f32 %v5511_v18, %v5384_v42 }
 0x36e   : > { %v2907_v39 = vpop.permute.xlu0 %2906 }
 0x36f   : > { %v2973_v58 = vsel %vm6640_vm6, %v2907_v39, 0.0  ;;  %v1969_v39 = vsub.f32 %v5511_v18, %v5372_v31 }
 0x370   : > { %3066 = vrot.lane.b32.xlu0 %v2973_v58, %s4012_s16  ;;  %3036 = vrot.lane.b32.xlu1 %v2958_v5, %s4012_s16 }
 0x372   : > { %v2909_v7 = vpop.permute.xlu0 %2908 }
 0x373   : > { %v2974_v42 = vsel %vm6650_vm1, %v2909_v7, 0.0  ;;  %v1953_v7 = vsub.f32 %v5511_v18, %v6616_v63 }
 0x377   : > { %v2879_v26 = vpop.permute.xlu0 %2878 }
 0x378   : > { %v2959_v55 = vsel %vm2479_vm14, %v2879_v26, 0.0  ;;  %vm6645_vm14 = vcmp.gt.f32.partialorder %v6644_v46, 1.0 }
 0x379   : > { %3038 = vrot.lane.b32.xlu1 %v2959_v55, %s4012_s16  ;;  %v2967_v16 = vsel %vm6645_vm14, %v2895_v33, 0.0  ;;  %v2970_v55 = vsel %vm6648_vm2, %v2901_v12, 0.0 }
 0x37b   : > { %v6111_v40 = vpop.permute.xlu0 %2078 }
 0x37d   : > { %3048 = vrot.lane.b32.xlu1 %v2964_v49, %s4012_s16  ;;  %v6121_v60 = vpop.permute.xlu1 %3008 }
 0x37f   : > { %v2081_v29 = vpop.permute.xlu0 %2080 }
 0x380   : > { %3886 = vrcp.f32 %v2081_v29 }
 0x381   : > { %3050 = vrot.lane.b32.xlu1 %v2965_v27, %s4012_s16 }
 0x383   : > { %v2083_v24 = vpop.permute.xlu0 %2082 }
 0x384   : > { %3888 = vrcp.f32 %v2083_v24 }
 0x385   : > { %3052 = vrot.lane.b32.xlu1 %v2966_v62, %s4012_s16 }
 0x386   : > { %v3041_v21 = vpop.permute.xlu1 %3040 }
 0x387   : > { %v2085_v11 = vpop.permute.xlu0 %2084 }
 0x388   : > { %3890 = vrcp.f32 %v2085_v11  ;;  %v2972_v11 = vsel %vm6649_vm10, %v2905_v57, 0.0 }
 0x389   : > { %3054 = vrot.lane.b32.xlu1 %v2967_v16, %s4012_s16 }
 0x38a   : > { %v3887_v45 = vpop.eup %3886  ;;  %v3043_v58 = vpop.permute.xlu1 %3042 }
 0x38b   : > { %v2177_v8 = vmul.f32 %v3887_v45, %v1968_v56  ;;  %v6129_v9 = vpop.permute.xlu0 %2086  ;;  %v6651_v45 = vld [vmem:[#allocation41_spill] sm:$0xff] }
 0x38c   : > { %3892 = vrcp.f32 %v6651_v45 }
 0x38d   : > { %v2224_v1 = vsub.f32 1.0, %v2177_v8  ;;  %3056 = vrot.lane.b32.xlu1 %v2968_v54, %s4012_s16  ;;  %v6652_v8 = vld [vmem:[#allocation49_spill] sm:$0xff] }
 0x38e   : > { %v3889_v33 = vpop.eup %3888  ;;  %3894 = vrcp.f32 %v6652_v8  ;;  %v6653_v54 = vld [vmem:[#allocation37_spill] sm:$0xff]  ;;  %v1955_v8 = vsub.f32 %v5511_v18, %v5360_v25  ;;  %v1957_v25 = vsub.f32 %v5511_v18, %v5376_v3 }
 0x38f   : > { %v6136_v5 = vsub.f32 %v2224_v1, %v3041_v21  ;;  %v2179_v61 = vmul.f32 %v3889_v33, %v1969_v39  ;;  %v6138_v26 = vpop.permute.xlu0 %2088  ;;  %3896 = vrcp.f32 %v6653_v54  ;;  %v6654_v1 = vld [vmem:[#allocation50_spill] sm:$0xff]  ;;  %v6655_v33 = vld [vmem:[#allocation45_spill] sm:$0xff] }
 0x390   : > { %3898 = vrcp.f32 %v6654_v1 }
 0x391   : > { %v2225_v49 = vsub.f32 1.0, %v2179_v61  ;;  %3060 = vrot.lane.b32.xlu1 %v2970_v55, %s4012_s16  ;;  %3900 = vrcp.f32 %v6655_v33  ;;  %v6660_v33 = vld [vmem:[#allocation3_spill] sm:$0xff] }
 0x392   : > { %v3891_v29 = vpop.eup %3890 }
 0x393   : > { %v6145_v31 = vsub.f32 %v2225_v49, %v3043_v58  ;;  %v2911_v27 = vpop.permute.xlu0 %2910  ;;  %v2181_v62 = vmul.f32 %v3891_v29, %v1970_v38  ;;  %v6656_v58 = vld [vmem:[#allocation43_spill] sm:$0xff]  ;;  %v6657_v49 = vld [vmem:[#allocation36_spill] sm:$0xff]  ;;  %v1952_v38 = vsub.f32 %v5511_v18, %v6617_v35 }
 0x394   : > { %v3013_v24 = vpop.permute.xlu1 %3012  ;;  %v2975_v16 = vsel %vm2495_vm0, %v2911_v27, 0.0  ;;  %3902 = vrcp.f32 %v6656_v58  ;;  %vm3200_vm0 = vcmask 7168  }
 0x395   : > { %3070 = vrot.lane.b32.xlu0 %v2975_v16, %s4012_s16  ;;  %3064 = vrot.lane.b32.xlu1 %v2972_v11, %s4012_s16  ;;  %v2226_v12 = vsub.f32 1.0, %v2181_v62  ;;  %3904 = vrcp.f32 %v6657_v49  ;;  %v6658_v62 = vld [vmem:[#allocation39_spill] sm:$0xff] }
 0x396   : > { %v3893_v61 = vpop.eup %3892  ;;  %3906 = vrcp.f32 %v6658_v62  ;;  %v6662_v62 = vld [vmem:[#allocation4_spill] sm:$0xff] }
 0x397   : > { %v2147_v29 = vmul.f32 %v3893_v61, %v1953_v7  ;;  %v6661_v61 = vsub.f32 1.0, %v6660_v33 }
 0x398   : > { %v3045_v56 = vpop.permute.xlu1 %3044  ;;  %v3895_v55 = vpop.eup %3894 }
 0x399   : > { %v6155_v21 = vsub.f32 %v2226_v12, %v3045_v56  ;;  %3068 = vrot.lane.b32.xlu1 %v2974_v42, %s4012_s16  ;;  %v2145_v11 = vmul.f32 %v3895_v55, %v1952_v38  ;;  %v3897_v16 = vpop.eup %3896  ;;  %v3011_v12 = vpop.permute.xlu0 %3010  ;;  %v6659_v56 = vld [vmem:[#allocation35_spill] sm:$0xff]  ;;  %v1954_v42 = vsub.f32 %v5511_v18, %v5358_v17  ;;  %v2209_v45 = vsub.f32 1.0, %v2147_v29 }
 0x39a   : > { %3908 = vrcp.f32 %v6659_v56  ;;  %v3899_v63 = vpop.eup %3898  ;;  %v3137_v58 = vmax.f32 %v6661_v61, 0.0  ;;  %v1956_v55 = vsub.f32 %v5511_v18, %v5370_v30  ;;  %v6663_v56 = vsub.f32 1.0, %v6662_v62  ;;  %v6664_v62 = vld [vmem:[#allocation6_spill] sm:$0xff] }
 0x39b   : > { %v3901_v54 = vpop.eup %3900  ;;  %v2208_v1 = vsub.f32 1.0, %v2145_v11  ;;  %v2149_v35 = vmul.f32 %v3897_v16, %v1954_v42  ;;  %v3105_v7 = vsub.f32 %v2209_v45, %v3011_v12  ;;  %v2151_v2 = vmul.f32 %v3899_v63, %v1955_v8 }
 0x39c   : > { %v3015_v57 = vpop.permute.xlu1 %3014  ;;  %v3136_v17 = vmax.f32 %v6663_v56, 0.0  ;;  %v2153_v22 = vmul.f32 %v3901_v54, %v1956_v55  ;;  %3910 = vrcp.f32 %v5947_v53  ;;  %v1958_v30 = vsub.f32 %v5511_v18, %v5388_v43 }
 0x39d   : > { %v3104_v29 = vsub.f32 %v2208_v1, %v6121_v60  ;;  %v2210_v16 = vsub.f32 1.0, %v2149_v35  ;;  %v3169_v12 = vmul.f32 %v3137_v58, %v3105_v7  ;;  %v6665_v56 = vsub.f32 1.0, %v6664_v62  ;;  %v6195_v43 = vpop.permute.xlu0 %2090  ;;  %v6666_v58 = vld [vmem:[#allocation5_spill] sm:$0xff] }
 0x39e   : > { %v3903_v38 = vpop.eup %3902  ;;  %v2211_v8 = vsub.f32 1.0, %v2151_v2  ;;  %v2212_v54 = vsub.f32 1.0, %v2153_v22  ;;  %v1959_v53 = vsub.f32 %v5511_v18, %v5394_v15  ;;  %3912 = vrcp.f32 %v5936_v36  ;;  %v6668_v15 = vld [vmem:[#allocation8_spill] sm:$0xff] }
 0x39f   : > { %v3905_v11 = vpop.eup %3904  ;;  %v2155_v42 = vmul.f32 %v3903_v38, %v1957_v25  ;;  %v3168_v61 = vmul.f32 %v3136_v17, %v3104_v29  ;;  %v3138_v60 = vmax.f32 %v6665_v56, 0.0  ;;  %v3106_v63 = vsub.f32 %v2210_v16, %v3013_v24  ;;  %v6670_v56 = vld [vmem:[#allocation7_spill] sm:$0xff] }
 0x3a0   : > { %v6162_v39 = vpop.permute.xlu1 %3046  ;;  %v3907_v33 = vpop.eup %3906  ;;  %v2157_v3 = vmul.f32 %v3905_v11, %v1958_v30  ;;  %v3202_v35 = vsel %vm3200_vm0, %v3169_v12, 0.0  ;;  %v6667_v7 = vsub.f32 1.0, %v6666_v58  ;;  %v3107_v38 = vsub.f32 %v2211_v8, %v3015_v57 }
 0x3a1   : > { %v2213_v17 = vsub.f32 1.0, %v2155_v42  ;;  %v2159_v24 = vmul.f32 %v3907_v33, %v1959_v53  ;;  %v1960_v2 = vsub.f32 %v5511_v18, %v5406_v48  ;;  %v3201_v22 = vsel %vm3200_vm0, %v3168_v61, 0.0  ;;  %v6207_v53 = vpop.permute.xlu0 %2092 }
 0x3a2   : > { %v3139_v55 = vmax.f32 %v6667_v7, 0.0  ;;  %v3170_v29 = vmul.f32 %v3138_v60, %v3106_v63  ;;  %v6669_v25 = vsub.f32 1.0, %v6668_v15  ;;  %v3203_v16 = vadd.f32 %v3202_v35, %v3201_v22  ;;  %v6672_v60 = vld [vmem:[#allocation10_spill] sm:$0xff] }
 0x3a3   : > { %v6671_v58 = vsub.f32 1.0, %v6670_v56  ;;  %v2214_v42 = vsub.f32 1.0, %v2157_v3  ;;  %v2215_v33 = vsub.f32 1.0, %v2159_v24  ;;  %v6673_v63 = vsub.f32 1.0, %v6672_v60 }
 0x3a4   : > { %v3017_v27 = vpop.permute.xlu1 %3016  ;;  %v3909_v1 = vpop.eup %3908  ;;  %v3140_v11 = vmax.f32 %v6669_v25, 0.0  ;;  %v3171_v62 = vmul.f32 %v3139_v55, %v3107_v38  ;;  %v3204_v48 = vsel %vm3200_vm0, %v3170_v29, 0.0  ;;  %v1961_v55 = vsub.f32 %v5511_v18, %v5412_v51  ;;  %v6674_v38 = vld [vmem:[#allocation9_spill] sm:$0xff] }
 0x3a5   : > { %v3108_v36 = vsub.f32 %v2212_v54, %v3017_v27  ;;  %v2161_v30 = vmul.f32 %v3909_v1, %v1960_v2  ;;  %v3141_v7 = vmax.f32 %v6671_v58, 0.0  ;;  %v3142_v15 = vmax.f32 %v6673_v63, 0.0 }
 0x3a6   : > { %v3911_v8 = vpop.eup %3910  ;;  %v3205_v54 = vadd.f32 %v3204_v48, %v3203_v16  ;;  %3914 = vrcp.f32 %v5944_v32  ;;  %v1962_v51 = vsub.f32 %v5511_v18, %v5420_v37 }
 0x3a7   : > { %v3172_v61 = vmul.f32 %v3140_v11, %v3108_v36  ;;  %v2216_v35 = vsub.f32 1.0, %v2161_v30  ;;  %v2163_v22 = vmul.f32 %v3911_v8, %v1961_v55  ;;  %v6676_v11 = vld [vmem:[#allocation14_spill] sm:$0xff]  ;;  %3916 = vrcp.f32 %v5954_v14  ;;  %v6678_v8 = vld [vmem:[#allocation13_spill] sm:$0xff] }
 0x3a8   : > { %v3019_v49 = vpop.permute.xlu1 %3018  ;;  %v3913_v29 = vpop.eup %3912  ;;  %v6677_v36 = vsub.f32 1.0, %v6676_v11  ;;  %v6679_v48 = vsub.f32 1.0, %v6678_v8  ;;  %v6680_v55 = vld [vmem:[#allocation18_spill] sm:$0xff]  ;;  %3918 = vrcp.f32 %v5962_v50 }
 0x3a9   : > { %v3109_v57 = vsub.f32 %v2213_v17, %v3019_v49  ;;  %v3206_v49 = vsel %vm3200_vm0, %v3171_v62, 0.0  ;;  %v6675_v17 = vsub.f32 1.0, %v6674_v38  ;;  %v3208_v25 = vsel %vm3200_vm0, %v3172_v61, 0.0  ;;  %v6222_v62 = vpop.permute.xlu0 %2094 }
 0x3aa   : > { %v3144_v16 = vmax.f32 %v6677_v36, 0.0  ;;  %v3207_v56 = vadd.f32 %v3206_v49, %v3205_v54  ;;  %v3145_v61 = vmax.f32 %v6679_v48, 0.0  ;;  %v6681_v49 = vsub.f32 1.0, %v6680_v55 }
 0x3ab   : > { %v3173_v3 = vmul.f32 %v3141_v7, %v3109_v57  ;;  %v3143_v24 = vmax.f32 %v6675_v17, 0.0  ;;  %v2165_v7 = vmul.f32 %v3913_v29, %v1962_v51  ;;  %v1963_v29 = vsub.f32 %v5511_v18, %v5426_v19 }
 0x3ac   : > { %v3209_v32 = vadd.f32 %v3208_v25, %v3207_v56  ;;  %v1964_v51 = vsub.f32 %v5511_v18, %v5434_v28 }
 0x3ad   : > { %v3210_v58 = vsel %vm3200_vm0, %v3173_v3, 0.0  ;;  %v6230_v54 = vpop.permute.xlu0 %2096  ;;  %v3146_v3 = vmax.f32 %v6681_v49, 0.0 }
 0x3ae   : > { %v3211_v60 = vadd.f32 %v3210_v58, %v3209_v32  ;;  %v6682_v58 = vld [vmem:[#allocation54_spill] sm:$0xff] }
 0x3af   : > { %3920 = vrcp.f32 %v6682_v58 }
 0x3b0   : > { %v3915_v38 = vpop.eup %3914  ;;  %3922 = vrcp.f32 %v6111_v40 }
 0x3b1   : > { %v2167_v11 = vmul.f32 %v3915_v38, %v1963_v29  ;;  %v3917_v36 = vpop.eup %3916  ;;  %3924 = vrcp.f32 %v6129_v9  ;;  %v6687_v29 = vld [vmem:[#allocation21_spill] sm:$0xff] }
 0x3b2   : > { %v3021_v45 = vpop.permute.xlu1 %3020  ;;  %3926 = vrcp.f32 %v6138_v26 }
 0x3b3   : > { %v3110_v27 = vsub.f32 %v2214_v42, %v3021_v45  ;;  %v2219_v32 = vsub.f32 1.0, %v2167_v11  ;;  %3928 = vrcp.f32 %v6195_v43 }
 0x3b4   : > { %3930 = vrcp.f32 %v6207_v53  ;;  %v6693_v53 = vld [vmem:[#allocation25_spill] sm:$0xff] }
 0x3b5   : > { %v3174_v45 = vmul.f32 %v3142_v15, %v3110_v27  ;;  %3932 = vrcp.f32 %v6222_v62 }
 0x3b6   : > { %v3023_v12 = vpop.permute.xlu1 %3022 }
 0x3b7   : > { %v3111_v2 = vsub.f32 %v2215_v33, %v3023_v12  ;;  %v3212_v57 = vsel %vm3200_vm0, %v3174_v45, 0.0  ;;  %v2217_v33 = vsub.f32 1.0, %v2163_v22 }
 0x3b8   : > { %v3213_v27 = vadd.f32 %v3212_v57, %v3211_v60  ;;  %v6685_v60 = vld [vmem:[#allocation22_spill] sm:$0xff] }
 0x3b9   : > { %v3175_v12 = vmul.f32 %v3143_v24, %v3111_v2 }
 0x3bb   : > { %v3214_v37 = vsel %vm3200_vm0, %v3175_v12, 0.0 }
 0x3bc   : > { %v3215_v17 = vadd.f32 %v3214_v37, %v3213_v27 }
 0x3be   : > { %v3025_v1 = vpop.permute.xlu1 %3024 }
 0x3bf   : > { %v3112_v30 = vsub.f32 %v2216_v35, %v3025_v1  ;;  %v2218_v1 = vsub.f32 1.0, %v2165_v7  ;;  %v6683_v7 = vld [vmem:[#allocation17_spill] sm:$0xff] }
 0x3c0   : > { %v6684_v57 = vsub.f32 1.0, %v6683_v7 }
 0x3c1   : > { %v3176_v42 = vmul.f32 %v3144_v16, %v3112_v30  ;;  %v2099_v30 = vpop.permute.xlu0 %2098 }
 0x3c2   : > { %v3147_v19 = vmax.f32 %v6684_v57, 0.0  ;;  %v1967_v57 = vsub.f32 %v5511_v18, %v6610_v44  ;;  %3934 = vrcp.f32 %v2099_v30 }
 0x3c3   : > { %v3216_v35 = vsel %vm3200_vm0, %v3176_v42, 0.0  ;;  %v2169_v42 = vmul.f32 %v3917_v36, %v1964_v51  ;;  %3936 = vrcp.f32 %v6230_v54 }
 0x3c4   : > { %v3217_v25 = vadd.f32 %v3216_v35, %v3215_v17 }
 0x3c5   : > { %v6245_v8 = vpop.permute.xlu0 %2100 }
 0x3c6   : > { %v3027_v63 = vpop.permute.xlu1 %3026 }
 0x3c7   : > { %v3113_v15 = vsub.f32 %v2217_v33, %v3027_v63  ;;  %v6686_v63 = vsub.f32 1.0, %v6685_v60  ;;  %v6691_v60 = vld [vmem:[#allocation12_spill] sm:$0xff] }
 0x3c9   : > { %v3177_v14 = vmul.f32 %v3145_v61, %v3113_v15  ;;  %v2220_v61 = vsub.f32 1.0, %v2169_v42  ;;  %v3148_v37 = vmax.f32 %v6686_v63, 0.0  ;;  %v3919_v15 = vpop.eup %3918  ;;  %v2103_v38 = vpop.permute.xlu0 %2102  ;;  %v6692_v63 = vsub.f32 1.0, %v6691_v60 }
 0x3ca   : > { %v3029_v24 = vpop.permute.xlu1 %3028  ;;  %3938 = vrcp.f32 %v2103_v38 }
 0x3cb   : > { %v3218_v2 = vsel %vm3200_vm0, %v3177_v14, 0.0  ;;  %v3114_v22 = vsub.f32 %v2218_v1, %v3029_v24  ;;  %v1965_v14 = vsub.f32 %v5511_v18, %v5440_v10  ;;  %v1966_v24 = vsub.f32 %v5511_v18, %v6605_v0 }
 0x3cc   : > { %v3219_v16 = vadd.f32 %v3218_v2, %v3217_v25  ;;  %v6688_v25 = vsub.f32 1.0, %v6687_v29  ;;  %v6697_v29 = vld [vmem:[#allocation16_spill] sm:$0xff]  ;;  %3940 = vrcp.f32 %v6245_v8 }
 0x3cd   : > { %v3178_v45 = vmul.f32 %v3146_v3, %v3114_v22  ;;  %v2171_v49 = vmul.f32 %v3919_v15, %v1965_v14  ;;  %v3921_v3 = vpop.eup %3920  ;;  %v6261_v36 = vpop.permute.xlu0 %2104  ;;  %v1972_v14 = vsub.f32 %v5511_v18, %v5402_v13 }
 0x3ce   : > { %v2173_v10 = vmul.f32 %v3921_v3, %v1966_v24  ;;  %v3923_v0 = vpop.eup %3922 }
 0x3cf   : > { %v3220_v56 = vsel %vm3200_vm0, %v3178_v45, 0.0  ;;  %v2221_v22 = vsub.f32 1.0, %v2171_v49  ;;  %v3149_v45 = vmax.f32 %v6688_v25, 0.0  ;;  %v2175_v42 = vmul.f32 %v3923_v0, %v1967_v57  ;;  %v6695_v49 = vld [vmem:[#allocation11_spill] sm:$0xff] }
 0x3d0   : > { %v3221_v12 = vadd.f32 %v3220_v56, %v3219_v16  ;;  %v2222_v16 = vsub.f32 1.0, %v2173_v10  ;;  %v6689_v56 = vld [vmem:[#allocation26_spill] sm:$0xff]  ;;  %v6696_v3 = vsub.f32 1.0, %v6695_v49  ;;  %v6698_v25 = vsub.f32 1.0, %v6697_v29 }
 0x3d1   : > { %v6690_v51 = vsub.f32 1.0, %v6689_v56  ;;  %v1976_v49 = vsub.f32 %v5511_v18, %v6646_v20  ;;  %v1981_v20 = vsub.f32 %v5511_v18, %v6602_v34 }
 0x3d2   : > { %v3031_v50 = vpop.permute.xlu1 %3030 }
 0x3d3   : > { %v3115_v33 = vsub.f32 %v2219_v32, %v3031_v50  ;;  %v3150_v58 = vmax.f32 %v6690_v51, 0.0  ;;  %v1971_v50 = vsub.f32 %v5511_v18, %v5390_v6 }
 0x3d5   : > { %v3179_v48 = vmul.f32 %v3147_v19, %v3115_v33  ;;  %v3925_v19 = vpop.eup %3924  ;;  %v2107_v33 = vpop.permute.xlu0 %2106 }
 0x3d6   : > { %v3033_v27 = vpop.permute.xlu1 %3032  ;;  %v2183_v15 = vmul.f32 %v3925_v19, %v1971_v50  ;;  %3942 = vrcp.f32 %v2107_v33  ;;  %v6705_v33 = vld [vmem:[#allocation24_spill] sm:$0xff] }
 0x3d7   : > { %v3222_v28 = vsel %vm3200_vm0, %v3179_v48, 0.0  ;;  %v3116_v35 = vsub.f32 %v2220_v61, %v3033_v27  ;;  %v3927_v61 = vpop.eup %3926  ;;  %v2223_v27 = vsub.f32 1.0, %v2175_v42  ;;  %3944 = vrcp.f32 %v6261_v36 }
 0x3d8   : > { %v3223_v1 = vadd.f32 %v3222_v28, %v3221_v12  ;;  %v6694_v28 = vsub.f32 1.0, %v6693_v53  ;;  %v2185_v24 = vmul.f32 %v3927_v61, %v1972_v14  ;;  %v6703_v61 = vld [vmem:[#allocation19_spill] sm:$0xff] }
 0x3d9   : > { %v3180_v55 = vmul.f32 %v3148_v37, %v3116_v35  ;;  %v3152_v37 = vmax.f32 %v6692_v63, 0.0  ;;  %v2109_v13 = vpop.permute.xlu0 %2108  ;;  %v6704_v60 = vsub.f32 1.0, %v6703_v61 }
 0x3da   : > { %v3151_v35 = vmax.f32 %v6694_v28, 0.0 }
 0x3db   : > { %v3224_v17 = vsel %vm3200_vm0, %v3180_v55, 0.0  ;;  %v1973_v55 = vsub.f32 %v5511_v18, %v5408_v52  ;;  %v3157_v63 = vmax.f32 %v6704_v60, 0.0 }
 0x3dc   : > { %v3225_v2 = vadd.f32 %v3224_v17, %v3223_v1  ;;  %v3929_v1 = vpop.eup %3928  ;;  %v3153_v17 = vmax.f32 %v6696_v3, 0.0 }
 0x3dd   : > { %v2187_v30 = vmul.f32 %v3929_v1, %v1973_v55  ;;  %v2111_v8 = vpop.permute.xlu0 %2110 }
 0x3de   : > { %v3035_v40 = vpop.permute.xlu1 %3034  ;;  %v3185_v54 = vmul.f32 %v3153_v17, %v6145_v31  ;;  %3946 = vrcp.f32 %v2111_v8 }
 0x3df   : > { %v3117_v11 = vsub.f32 %v2221_v22, %v3035_v40  ;;  %v2227_v22 = vsub.f32 1.0, %v2183_v15  ;;  %v3931_v40 = vpop.eup %3930  ;;  %v1977_v15 = vsub.f32 %v5511_v18, %v5436_v4  ;;  %3948 = vrcp.f32 %v2109_v13 }
 0x3e0   : > { %v3933_v31 = vpop.eup %3932 }
 0x3e1   : > { %v3181_v9 = vmul.f32 %v3149_v45, %v3117_v11  ;;  %v3154_v45 = vmax.f32 %v6698_v25, 0.0  ;;  %v6699_v11 = vld [vmem:[#allocation15_spill] sm:$0xff] }
 0x3e2   : > { %v3037_v12 = vpop.permute.xlu1 %3036 }
 0x3e3   : > { %v3226_v32 = vsel %vm3200_vm0, %v3181_v9, 0.0  ;;  %v3118_v7 = vsub.f32 %v2222_v16, %v3037_v12  ;;  %v6700_v9 = vsub.f32 1.0, %v6699_v11  ;;  %v3123_v16 = vsub.f32 %v2227_v22, %v6162_v39 }
 0x3e4   : > { %v3227_v26 = vadd.f32 %v3226_v32, %v3225_v2  ;;  %v3184_v2 = vmul.f32 %v3152_v37, %v6136_v5  ;;  %v2228_v5 = vsub.f32 1.0, %v2185_v24  ;;  %v6701_v32 = vld [vmem:[#allocation20_spill] sm:$0xff]  ;;  %v3186_v39 = vmul.f32 %v3154_v45, %v6155_v21  ;;  %v3935_v37 = vpop.eup %3934 }
 0x3e5   : > { %v3182_v43 = vmul.f32 %v3150_v58, %v3118_v7  ;;  %v3155_v52 = vmax.f32 %v6700_v9, 0.0  ;;  %v1974_v58 = vsub.f32 %v5511_v18, %v5418_v23  ;;  %v6702_v7 = vsub.f32 1.0, %v6701_v32  ;;  %v3937_v28 = vpop.eup %3936  ;;  %v3059_v9 = vpop.permute.xlu0 %3058 }
 0x3e6   : > { %v3232_v0 = vsel %vm3200_vm0, %v3184_v2, 0.0  ;;  %v1975_v23 = vsub.f32 %v5511_v18, %v6644_v46  ;;  %v3236_v46 = vsel %vm3200_vm0, %v3186_v39, 0.0  ;;  %v2195_v4 = vmul.f32 %v3935_v37, %v1977_v15 }
 0x3e7   : > { %v3228_v48 = vsel %vm3200_vm0, %v3182_v43, 0.0  ;;  %v3156_v57 = vmax.f32 %v6702_v7, 0.0  ;;  %v2189_v19 = vmul.f32 %v3931_v40, %v1974_v58  ;;  %v3187_v43 = vmul.f32 %v3155_v52, %v3123_v16  ;;  %v6709_v58 = vld [vmem:[#allocation27_spill] sm:$0xff] }
 0x3e8   : > { %v3229_v44 = vadd.f32 %v3228_v48, %v3227_v26  ;;  %v2229_v26 = vsub.f32 1.0, %v2187_v30  ;;  %v3234_v48 = vsel %vm3200_vm0, %v3185_v54, 0.0  ;;  %v2191_v1 = vmul.f32 %v3933_v31, %v1975_v23 }
 0x3e9   : > { %v2230_v14 = vsub.f32 1.0, %v2189_v19  ;;  %v3238_v36 = vsel %vm3200_vm0, %v3187_v43, 0.0  ;;  %v1979_v24 = vsub.f32 %v5511_v18, %v5450_v41  ;;  %v2193_v22 = vmul.f32 %v3937_v28, %v1976_v49  ;;  %v3063_v43 = vpop.permute.xlu0 %3062 }
 0x3ea   : > { %v2231_v45 = vsub.f32 1.0, %v2191_v1  ;;  %v1978_v16 = vsub.f32 %v5511_v18, %v5446_v59  ;;  %v2233_v41 = vsub.f32 1.0, %v2195_v4  ;;  %v1980_v23 = vsub.f32 %v5511_v18, %v5460_v47 }
 0x3eb   : > { %v3039_v6 = vpop.permute.xlu1 %3038  ;;  %v2232_v7 = vsub.f32 1.0, %v2193_v22 }
 0x3ec   : > { %v3119_v62 = vsub.f32 %v2223_v27, %v3039_v6  ;;  %v6706_v27 = vsub.f32 1.0, %v6705_v33 }
 0x3ed   : > { %v3067_v4 = vpop.permute.xlu0 %3066 }
 0x3ee   : > { %v3183_v10 = vmul.f32 %v3151_v35, %v3119_v62  ;;  %v3158_v53 = vmax.f32 %v6706_v27, 0.0  ;;  %v3939_v62 = vpop.eup %3938 }
 0x3ef   : > { %v3049_v56 = vpop.permute.xlu1 %3048  ;;  %v3941_v11 = vpop.eup %3940 }
 0x3f0   : > { %v3230_v51 = vsel %vm3200_vm0, %v3183_v10, 0.0  ;;  %v3124_v38 = vsub.f32 %v2228_v5, %v3049_v56  ;;  %v6707_v10 = vld [vmem:[#allocation23_spill] sm:$0xff]  ;;  %v2199_v56 = vmul.f32 %v3939_v62, %v1979_v24  ;;  %v3943_v5 = vpop.eup %3942  ;;  %v2197_v59 = vmul.f32 %v3941_v11, %v1978_v16  ;;  %v6720_v62 = vld [vmem:[#allocation46_spill] sm:$0xff] }
 0x3f1   : > { %v3231_v12 = vadd.f32 %v3230_v51, %v3229_v44  ;;  %v6708_v30 = vsub.f32 1.0, %v6707_v10  ;;  %v3945_v34 = vpop.eup %3944  ;;  %v2203_v8 = vmul.f32 %v3943_v5, %v1981_v20  ;;  %v1982_v24 = vsub.f32 %v5511_v18, %v6720_v62 }
 0x3f2   : > { %v3188_v35 = vmul.f32 %v3156_v57, %v3124_v38  ;;  %v6711_v57 = vld [vmem:[#allocation28_spill] sm:$0xff] }
 0x3f3   : > { %v3233_v42 = vadd.f32 %v3232_v0, %v3231_v12  ;;  %v3051_v50 = vpop.permute.xlu1 %3050  ;;  %v3159_v40 = vmax.f32 %v6708_v30, 0.0  ;;  %v6710_v0 = vsub.f32 1.0, %v6709_v58  ;;  %v6712_v39 = vsub.f32 1.0, %v6711_v57  ;;  %v6721_v30 = vld [vmem:[#allocation32_spill] sm:$0xff]  ;;  %v6725_v57 = vld [vmem:[#allocation34_spill] sm:$0xff] }
 0x3f4   : > { %v3125_v21 = vsub.f32 %v2229_v26, %v3051_v50  ;;  %v3240_v29 = vsel %vm3200_vm0, %v3188_v35, 0.0  ;;  %v3129_v26 = vsub.f32 %v2233_v41, %v3059_v9 }
 0x3f5   : > { %v3235_v44 = vadd.f32 %v3234_v48, %v3233_v42  ;;  %v3161_v12 = vmax.f32 %v6710_v0, 0.0  ;;  %v3160_v38 = vmax.f32 %v6712_v39, 0.0  ;;  %v2235_v48 = vsub.f32 1.0, %v2199_v56  ;;  %v6723_v0 = vld [vmem:[#allocation33_spill] sm:$0xff] }
 0x3f6   : > { %v3189_v3 = vmul.f32 %v3157_v63, %v3125_v21  ;;  %v3947_v63 = vpop.eup %3946  ;;  %v6713_v21 = vld [vmem:[#allocation29_spill] sm:$0xff]  ;;  %v6726_v39 = vsub.f32 1.0, %v6725_v57 }
 0x3f7   : > { %v3237_v6 = vadd.f32 %v3236_v46, %v3235_v44  ;;  %v3053_v55 = vpop.permute.xlu1 %3052  ;;  %v6714_v37 = vsub.f32 1.0, %v6713_v21  ;;  %v6715_v44 = vld [vmem:[#allocation30_spill] sm:$0xff]  ;;  %v2201_v46 = vmul.f32 %v3945_v34, %v1980_v23  ;;  %v3949_v35 = vpop.eup %3948  ;;  %v3131_v1 = vsub.f32 %v2235_v48, %v3063_v43 }
 0x3f8   : > { %v3126_v17 = vsub.f32 %v2230_v14, %v3053_v55  ;;  %v3242_v54 = vsel %vm3200_vm0, %v3189_v3, 0.0  ;;  %v6716_v33 = vsub.f32 1.0, %v6715_v44  ;;  %v3193_v14 = vmul.f32 %v3161_v12, %v3129_v26 }
 0x3f9   : > { %v3239_v2 = vadd.f32 %v3238_v36, %v3237_v6  ;;  %v3163_v15 = vmax.f32 %v6714_v37, 0.0  ;;  %v2234_v36 = vsub.f32 1.0, %v2197_v59  ;;  %v6718_v6 = vld [vmem:[#allocation31_spill] sm:$0xff]  ;;  %v2236_v10 = vsub.f32 1.0, %v2201_v46 }
 0x3fa   : > { %v3190_v25 = vmul.f32 %v3158_v53, %v3126_v17  ;;  %v3162_v27 = vmax.f32 %v6716_v33, 0.0  ;;  %v6717_v53 = vld [vmem:[#allocation47_spill] sm:$0xff]  ;;  %v6719_v55 = vsub.f32 1.0, %v6718_v6  ;;  %v2205_v9 = vmul.f32 %v3949_v35, %v1982_v24 }
 0x3fb   : > { %v3241_v13 = vadd.f32 %v3240_v29, %v3239_v2  ;;  %v3055_v52 = vpop.permute.xlu1 %3054  ;;  %v1983_v28 = vsub.f32 %v5511_v18, %v6717_v53  ;;  %v2237_v2 = vsub.f32 1.0, %v2203_v8  ;;  %v3250_v20 = vsel %vm3200_vm0, %v3193_v14, 0.0 }
 0x3fc   : > { %v3127_v51 = vsub.f32 %v2231_v45, %v3055_v52  ;;  %v3244_v19 = vsel %vm3200_vm0, %v3190_v25, 0.0  ;;  %v3165_v49 = vmax.f32 %v6719_v55, 0.0  ;;  %v6724_v12 = vsub.f32 1.0, %v6723_v0 }
 0x3fd   : > { %v3243_v32 = vadd.f32 %v3242_v54, %v3241_v13  ;;  %v2207_v25 = vmul.f32 %v3947_v63, %v1983_v28  ;;  %v3195_v13 = vmul.f32 %v3163_v15, %v3131_v1  ;;  %v3133_v52 = vsub.f32 %v2237_v2, %v3067_v4 }
 0x3fe   : > { %v3191_v31 = vmul.f32 %v3159_v40, %v3127_v51  ;;  %v6722_v40 = vsub.f32 1.0, %v6721_v30  ;;  %v6727_v44 = vmov 0.0  }
 0x3ff   : > { %v3245_v42 = vadd.f32 %v3244_v19, %v3243_v32  ;;  %v3057_v50 = vpop.permute.xlu1 %3056  ;;  %v2239_v51 = vsub.f32 1.0, %v2207_v25  ;;  %v3167_v32 = vmax.f32 %v6724_v12, 0.0  ;;  %v3254_v34 = vsel %vm3200_vm0, %v3195_v13, 0.0  ;;  %346 = vst.msk [vmem:[%s338_s23] sm:$0x1] %vm345_vm11, %v6727_v44 }
 0x400   : > { %v3246_v61 = vsel %vm3200_vm0, %v3191_v31, 0.0  ;;  %v3128_v60 = vsub.f32 %v2232_v7, %v3057_v50  ;;  %v3164_v11 = vmax.f32 %v6722_v40, 0.0  ;;  %v2238_v7 = vsub.f32 1.0, %v2205_v9 }
 0x401   : > { %v3247_v3 = vadd.f32 %v3246_v61, %v3245_v42  ;;  %v3197_v26 = vmul.f32 %v3165_v49, %v3133_v52 }
 0x402   : > { %v3192_v47 = vmul.f32 %v3160_v38, %v3128_v60  ;;  %v3166_v38 = vmax.f32 %v6726_v39, 0.0 }
 0x403   : > { %v3061_v17 = vpop.permute.xlu1 %3060  ;;  %v3258_v48 = vsel %vm3200_vm0, %v3197_v26, 0.0 }
 0x404   : > { %v3248_v22 = vsel %vm3200_vm0, %v3192_v47, 0.0  ;;  %v3130_v29 = vsub.f32 %v2234_v36, %v3061_v17 }
 0x405   : > { %v3249_v45 = vadd.f32 %v3248_v22, %v3247_v3 }
 0x406   : > { %v3194_v16 = vmul.f32 %v3162_v27, %v3130_v29  ;;  %v3273_v1 = vld [vmem:[%s338_s23] sm:$0x1] }
 0x407   : > { %v3251_v41 = vadd.f32 %v3250_v20, %v3249_v45  ;;  %v3071_v56 = vpop.permute.xlu0 %3070  ;;  %v3065_v54 = vpop.permute.xlu1 %3064 }
 0x408   : > { %v3252_v18 = vsel %vm3200_vm0, %v3194_v16, 0.0  ;;  %v3132_v5 = vsub.f32 %v2236_v10, %v3065_v54  ;;  %v3135_v19 = vsub.f32 %v2239_v51, %v3071_v56 }
 0x409   : > { %v3253_v58 = vadd.f32 %v3252_v18, %v3251_v41 }
 0x40a   : > { %v3196_v31 = vmul.f32 %v3164_v11, %v3132_v5  ;;  %v3199_v8 = vmul.f32 %v3167_v32, %v3135_v19 }
 0x40b   : > { %v3255_v59 = vadd.f32 %v3254_v34, %v3253_v58  ;;  %v3069_v43 = vpop.permute.xlu1 %3068 }
 0x40c   : > { %v3256_v42 = vsel %vm3200_vm0, %v3196_v31, 0.0  ;;  %v3134_v50 = vsub.f32 %v2238_v7, %v3069_v43  ;;  %v3262_v37 = vsel %vm3200_vm0, %v3199_v8, 0.0 }
 0x40d   : > { %v3257_v23 = vadd.f32 %v3256_v42, %v3255_v59 }
 0x40e   : > { %v3198_v61 = vmul.f32 %v3166_v38, %v3134_v50 }
 0x40f   : > { %v3259_v60 = vadd.f32 %v3258_v48, %v3257_v23 }
 0x410   : > { %v3260_v63 = vsel %vm3200_vm0, %v3198_v61, 0.0 }
 0x411   : > { %v3261_v21 = vadd.f32 %v3260_v63, %v3259_v60 }
 0x413   : > { %v3263_v15 = vadd.f32 %v3262_v37, %v3261_v21 }
 0x415   : > { %3264 = vadd.xlane.f32.xlu1 %v3263_v15 }
 0x4a2   : > { %v3265_v33 = vpop.xlane.xlu1 %3264 }
 0x4a3   : > { %v3266_v27 = vrot.slane %v3265_v33, 4 }
 0x4a5   : > { %v3267_v53 = vadd.f32 %v3266_v27, %v3265_v33 }
 0x4a7   : > { %v3268_v28 = vrot.slane %v3267_v53, 2 }
 0x4a9   : > { %v3269_v46 = vadd.f32 %v3268_v28, %v3267_v53 }
 0x4ab   : > { %v3270_v35 = vrot.slane %v3269_v46, 1 }
 0x4ad   : > { %v3271_v14 = vadd.f32 %v3270_v35, %v3269_v46 }
 0x4af   : > { %3710 = vpush %v3271_v14 }
 0x4e0   : > { %s3711_s24 = spop %3710 }
 0x4e1   : > { %v3274_v47 = vstv %s3711_s24 }
 0x4e2   : > { %v3275_v36 = vadd.f32 %v3274_v47, %v3273_v1 }
 0x4e4   : > { %3277 = vst.msk [vmem:[%s338_s23] sm:$0x1] %vm345_vm11, %v3275_v36 }
 0x4e5 PF: > { %s15_s20 = sadd.s32 1, %s4007_s20   ;;  %s6728_s18 = smov %s4003_s19 }
 0x4e6   : > { %p12_p5 = scmp.ge.s32.totalorder %s15_s20, 4   ;;  %s6729_s19 = smov %s6731_s21 }
 0x4e8   :  { %14 = sbr.rel (!%p12_p5) target bundleno = 2 (0x2), region = 86 }

</bundles_post_ra>
